<compile_context>
chip_gen: v7x
topology: tpu7x:2x2x1
jax: 0.10.0
libtpu: 0.0.40
codegen_flags: <defaults>
</compile_context>

<pallas_src>
import functools

import jax
import jax.numpy as jnp
import numpy as np
from jax.experimental import pallas as pl
from jax.experimental.pallas import tpu as pltpu


# ----------------------------- Pallas kernel ---------------------------------


def planner_kernel(
    robot_ref, x_ref, amask_ref,
    lstm_wih_ref, lstm_whh_ref, lstm_b_ref,
    re_w1_ref, re_b1_ref, re_w2_ref, re_b2_ref,
    he_w_ref, he_b_ref,
    q_w_ref, q_b_ref,
    kv_w_ref, kv_b_ref,
    te_w1_ref, te_b1_ref, te_w2_ref, te_b2_ref,
    pw_ref, pb_ref,
    out_ref,
    *, t_hist, t_fore,
):
    f32, bf16 = jnp.float32, jnp.bfloat16
    H = re_w2_ref.shape[0]
    H2 = 2 * H                                   # fused state width (128)
    N = amask_ref.shape[1]                       # padded B * num_human (mult of 8)
    T = x_ref.shape[0] // N                      # max(t_hist, t_fore)

    relu = lambda a: jnp.maximum(a, 0.0)

    def bdot(a, w):                              # bf16 MXU operands, f32 accumulate
        return jnp.dot(a.astype(bf16), w.astype(bf16), preferred_element_type=f32)

    # --- hoisted fused LSTM input projection: ONE matmul for both LSTMs and all
    #     time steps, entirely off the serial recurrence ---
    xg = bdot(x_ref[...], lstm_wih_ref[...]) + lstm_b_ref[...]      # (T*N, 8H) f32
    w_hh = lstm_whh_ref[...]                                        # (2H, 8H) bf16

    # --- fused block-diagonal recurrence: state cols [0:H]=hist, [H:2H]=fore ---
    h_cat = jnp.zeros((N, H2), f32)
    c_cat = jnp.zeros((N, H2), f32)
    hist_final = h_cat
    fore_final = h_cat
    for t in range(T):                           # small static trip count -> unrolled
        gates = xg[t * N:(t + 1) * N, :] + jnp.dot(
            h_cat.astype(bf16), w_hh, preferred_element_type=f32)   # (N, 8H) f32
        s = jax.nn.sigmoid(gates)                # one full-width, lane-aligned EUP pass
        i_cat = s[:, 0:H2]                       # all slices are 128-lane aligned
        f_cat = s[:, H2:2 * H2]
        o_cat = s[:, 2 * H2:3 * H2]
        g_cat = 2.0 * s[:, 3 * H2:4 * H2] - 1.0  # tanh(g): g columns pre-scaled by 2
        c_cat = f_cat * c_cat + i_cat * g_cat
        h_cat = o_cat * jnp.tanh(c_cat)
        if t == t_hist - 1:
            hist_final = h_cat                   # snapshot history-LSTM final state
        if t == t_fore - 1:
            fore_final = h_cat                   # snapshot forecast-LSTM final state

    # --- human encoder: ReLU -> Linear(2H, H) -> ReLU ---
    human_obs = jnp.concatenate([hist_final[:, :H], fore_final[:, H:]], axis=1)  # (N, 2H)
    human_emb = relu(bdot(relu(human_obs), he_w_ref[...]) + he_b_ref[...])        # (N, H)

    # --- robot encoder: Linear(4,H) -> ReLU -> Linear(H,H) -> ReLU ; query ---
    robot = robot_ref[...]                                            # (B, 6) f32
    r1 = relu(bdot(robot[:, 0:4], re_w1_ref[...]) + re_b1_ref[...])
    robot_emb = relu(bdot(r1, re_w2_ref[...]) + re_b2_ref[...])       # (B, H)
    query = bdot(robot_emb, q_w_ref[...]) + q_b_ref[...]              # (B, H)

    # --- attention: fused K/V projection, vectorized masked softmax over humans ---
    kv = bdot(human_emb, kv_w_ref[...]) + kv_b_ref[...]               # (N, 2H)
    att_key = kv[:, :H]
    att_val = kv[:, H:]
    logits = jnp.einsum("bh,nh->bn", query.astype(bf16), att_key.astype(bf16),
                        preferred_element_type=f32)                   # (B, N)
    logits = logits + amask_ref[...]             # -1e9 on cross-batch / padded humans
    logits = logits - jnp.max(logits, axis=-1, keepdims=True)
    p = jnp.exp(logits)
    p = p * pl.reciprocal(jnp.sum(p, axis=-1, keepdims=True), approx=True)
    attn = bdot(p, att_val)                                           # (B, H)

    # --- task encoder on re-parametrized robot state ---
    reparam = jnp.concatenate(
        [robot[:, 4:6] - robot[:, 0:2], robot[:, 2:4]], axis=1)       # (B, 4)
    t1 = relu(bdot(reparam, te_w1_ref[...]) + te_b1_ref[...])
    task = relu(bdot(t1, te_w2_ref[...]) + te_b2_ref[...])            # (B, H)

    # --- plan head: Linear(2H, 128-padded) -> lane-dense store ---
    plan_in = jnp.concatenate([task, attn], axis=-1)                  # (B, 2H)
    out_ref[...] = bdot(plan_in, pw_ref[...]) + pb_ref[...]           # (B, 128)


# ------------------------ one-time parameter packing ---------------------------


def pack_params(params, hidden_dim=64, horizon=12):
    """One-time offline repack (call once; do NOT re-run per forward call).

    * LSTM gate columns interleaved to [i_h|i_f|f_h|f_f|o_h|o_f|g_h|g_f];
      g-gate columns of W_ih / W_hh / bias pre-scaled by 2 so a single
      full-width sigmoid + (2x - 1) reproduces tanh.
    * The two recurrences fused block-diagonally: W_hh is (2H, 8H), W_ih (4, 8H).
    * K and V projections fused into one (H, 2H) matmul.
    * Plan head zero-padded to a lane-dense 128-wide output.
    * Matmul weights pre-cast to bf16; biases stay f32.
    """
    f32, bf16 = jnp.float32, jnp.bfloat16
    H = hidden_dim

    def split(w):  # PyTorch gate order [i, f, g, o] along the last axis
        return w[:, :H], w[:, H:2 * H], w[:, 2 * H:3 * H], w[:, 3 * H:]

    hi, hf, hg, ho = split(params["h_wih"])
    fi, ff, fg, fo = split(params["f_wih"])
    z2 = jnp.zeros((2, H), f32)
    w_ih = jnp.concatenate([
        jnp.concatenate([hi, z2, hf, z2, ho, z2, 2.0 * hg, z2], axis=1),
        jnp.concatenate([z2, fi, z2, ff, z2, fo, z2, 2.0 * fg], axis=1)], axis=0)   # (4, 8H)

    Hi, Hf, Hg, Ho = split(params["h_whh"])
    Fi, Ff, Fg, Fo = split(params["f_whh"])
    zH = jnp.zeros((H, H), f32)
    w_hh = jnp.concatenate([
        jnp.concatenate([Hi, zH, Hf, zH, Ho, zH, 2.0 * Hg, zH], axis=1),
        jnp.concatenate([zH, Fi, zH, Ff, zH, Fo, zH, 2.0 * Fg], axis=1)], axis=0)   # (2H, 8H)

    bhi, bhf, bhg, bho = split(params["h_b"])
    bfi, bff, bfg, bfo = split(params["f_b"])
    b = jnp.concatenate(
        [bhi, bfi, bhf, bff, bho, bfo, 2.0 * bhg, 2.0 * bfg], axis=1)               # (1, 8H)

    out_cols = max(128, ((2 * horizon + 127) // 128) * 128)
    pw = jnp.pad(params["p_w"], ((0, 0), (0, out_cols - 2 * horizon)))
    pb = jnp.pad(params["p_b"], ((0, 0), (0, out_cols - 2 * horizon)))

    return (
        w_ih.astype(bf16), w_hh.astype(bf16), b.astype(f32),
        params["re_w1"].astype(bf16), params["re_b1"].astype(f32),
        params["re_w2"].astype(bf16), params["re_b2"].astype(f32),
        params["he_w"].astype(bf16), params["he_b"].astype(f32),
        params["q_w"].astype(bf16), params["q_b"].astype(f32),
        jnp.concatenate([params["k_w"], params["v_w"]], axis=1).astype(bf16),
        jnp.concatenate([params["k_b"], params["v_b"]], axis=1).astype(f32),
        params["te_w1"].astype(bf16), params["te_b1"].astype(f32),
        params["te_w2"].astype(bf16), params["te_b2"].astype(f32),
        pw.astype(bf16), pb.astype(f32),
    )


# ------------------------------ wrapper ---------------------------------------


@functools.partial(jax.jit, static_argnames=("num_human", "hidden_dim", "horizon", "history"))
def planner_forward(packed, robot_state, human_history, forecasts, *,
                    num_human=5, hidden_dim=64, horizon=12, history=8):
    f32, bf16 = jnp.float32, jnp.bfloat16
    B = robot_state.shape[0]
    NH = num_human
    T_h = history + 1
    T_f = horizon
    T = max(T_h, T_f)
    N = B * NH
    N_pad = ((N + 7) // 8) * 8                   # sublane-aligned row count (10 -> 16)

    # fused LSTM input: time-major (T*N_pad, 4), cols [hist_xy | fore_xy], bf16
    hist = human_history.reshape(N, T_h, 2).astype(f32)
    fore = forecasts.reshape(N, T_f, 2).astype(f32)
    hist = jnp.pad(hist, ((0, N_pad - N), (0, T - T_h), (0, 0)))
    fore = jnp.pad(fore, ((0, N_pad - N), (0, T - T_f), (0, 0)))
    x4 = jnp.concatenate([hist, fore], axis=-1)                      # (N_pad, T, 4)
    x_fused = jnp.transpose(x4, (1, 0, 2)).reshape(T * N_pad, 4).astype(bf16)

    # attention validity mask (shape-only -> constant-folded by XLA)
    col = jnp.arange(N_pad)
    valid = (col[None, :] // NH == jnp.arange(B)[:, None]) & (col[None, :] < N)
    amask = jnp.where(valid, 0.0, -1e9).astype(f32)

    out_cols = packed[-1].shape[1]
    kernel = functools.partial(planner_kernel, t_hist=T_h, t_fore=T_f)
    n_in = 3 + len(packed)
    out = pl.pallas_call(
        kernel,
        out_shape=jax.ShapeDtypeStruct((B, out_cols), f32),
        in_specs=[pl.BlockSpec(memory_space=pltpu.MemorySpace.VMEM)] * n_in,
        out_specs=pl.BlockSpec(memory_space=pltpu.MemorySpace.VMEM),
    )(robot_state.astype(f32), x_fused, amask, *packed)
    return out[:, :horizon * 2].reshape(B, horizon, 2)


# ------------------------- parameters & reference ------------------------------


def init_params(key, hidden_dim=64, horizon=12):
    H = hidden_dim
    keys = iter(jax.random.split(key, 24))

    def mat(shape, scale=0.1):
        return jax.random.normal(next(keys), shape, jnp.float32) * scale

    return {
        "h_wih": mat((2, 4 * H)), "h_whh": mat((H, 4 * H)), "h_b": mat((1, 4 * H)),
        "f_wih": mat((2, 4 * H)), "f_whh": mat((H, 4 * H)), "f_b": mat((1, 4 * H)),
        "re_w1": mat((4, H)), "re_b1": mat((1, H)),
        "re_w2": mat((H, H)), "re_b2": mat((1, H)),
        "he_w": mat((2 * H, H)), "he_b": mat((1, H)),
        "q_w": mat((H, H)), "q_b": mat((1, H)),
        "k_w": mat((H, H)), "k_b": mat((1, H)),
        "v_w": mat((H, H)), "v_b": mat((1, H)),
        "te_w1": mat((4, H)), "te_b1": mat((1, H)),
        "te_w2": mat((H, H)), "te_b2": mat((1, H)),
        "p_w": mat((2 * H, horizon * 2)), "p_b": mat((1, horizon * 2)),
    }


def _lstm_ref(x, w_ih_t, w_hh_t, b):
    """Pure-JAX LSTM (PyTorch gate order [i, f, g, o]); returns final hidden state."""
    N, T, _ = x.shape
    H = w_hh_t.shape[0]
    h = jnp.zeros((N, H), jnp.float32)
    c = jnp.zeros((N, H), jnp.float32)
    for t in range(T):
        gates = x[:, t, :] @ w_ih_t + h @ w_hh_t + b
        i = jax.nn.sigmoid(gates[:, 0:H])
        f = jax.nn.sigmoid(gates[:, H:2 * H])
        g = jnp.tanh(gates[:, 2 * H:3 * H])
        o = jax.nn.sigmoid(gates[:, 3 * H:4 * H])
        c = f * c + i * g
        h = o * jnp.tanh(c)
    return h


def ref_forward(params, robot_state, human_history, forecasts,
                num_human=5, hidden_dim=64, horizon=12, history=8):
    """Pure-JAX f32 reference mirroring the PyTorch forward pass."""
    H = hidden_dim
    B = robot_state.shape[0]
    relu = lambda a: jnp.maximum(a, 0.0)
    hist = human_history.reshape(-1, history + 1, 2)
    fore = forecasts.reshape(-1, horizon, 2)
    hist_h = _lstm_ref(hist, params["h_wih"], params["h_whh"], params["h_b"])
    fore_h = _lstm_ref(fore, params["f_wih"], params["f_whh"], params["f_b"])
    human_obs = jnp.concatenate([hist_h, fore_h], axis=-1)
    human_emb = relu(relu(human_obs) @ params["he_w"] + params["he_b"])
    r1 = relu(robot_state[:, :4] @ params["re_w1"] + params["re_b1"])
    robot_emb = relu(r1 @ params["re_w2"] + params["re_b2"])
    query = robot_emb @ params["q_w"] + params["q_b"]
    key = (human_emb @ params["k_w"] + params["k_b"]).reshape(B, num_human, H)
    value = (human_emb @ params["v_w"] + params["v_b"]).reshape(B, num_human, H)
    logits = jnp.einsum("bh,bnh->bn", query, key)
    p = jax.nn.softmax(logits, axis=-1)
    attn = jnp.einsum("bn,bnh->bh", p, value)
    reparam = jnp.concatenate(
        [robot_state[:, -2:] - robot_state[:, :2], robot_state[:, 2:4]], axis=1)
    t1 = relu(reparam @ params["te_w1"] + params["te_b1"])
    task = relu(t1 @ params["te_w2"] + params["te_b2"])
    plan = jnp.concatenate([task, attn], axis=-1) @ params["p_w"] + params["p_b"]
    return plan.reshape(B, horizon, 2)


if __name__ == "__main__":
    B, NH, H, HOR, HIS = 2, 5, 64, 12, 8

    key = jax.random.PRNGKey(0)
    kp, kr, kh, kf = jax.random.split(key, 4)
    params = init_params(kp, hidden_dim=H, horizon=HOR)
    packed = pack_params(params, hidden_dim=H, horizon=HOR)     # one-time offline repack

    robot_state = jax.random.normal(kr, (B, 6), jnp.float32)          # [px,py,vx,vy,gx,gy]
    human_history = jax.random.normal(kh, (B, NH, HIS + 1, 2), jnp.float32)
    forecasts = jax.random.normal(kf, (B, NH, HOR, 2), jnp.float32)

    plan = planner_forward(packed, robot_state, human_history, forecasts,
                           num_human=NH, hidden_dim=H, horizon=HOR, history=HIS)
    plan = jax.block_until_ready(plan)
    assert plan.shape == (B, HOR, 2)

    ref = ref_forward(params, robot_state, human_history, forecasts,
                      num_human=NH, hidden_dim=H, horizon=HOR, history=HIS)
    # bf16 MXU operands + approx reciprocal vs f32 reference -> bf16-level tolerance.
    np.testing.assert_allclose(np.asarray(plan), np.asarray(ref), rtol=2e-2, atol=2e-2)

    print("KERNEL_OK")
</pallas_src>

<mosaic_0001>
module attributes {stable_mosaic.version = 11 : i64} {
  func.func @planner_kernel(%arg0: memref<2x6xf32, #tpu.memory_space<vmem>>, %arg1: memref<192x4xbf16, #tpu.memory_space<vmem>>, %arg2: memref<2x16xf32, #tpu.memory_space<vmem>>, %arg3: memref<4x512xbf16, #tpu.memory_space<vmem>>, %arg4: memref<128x512xbf16, #tpu.memory_space<vmem>>, %arg5: memref<1x512xf32, #tpu.memory_space<vmem>>, %arg6: memref<4x64xbf16, #tpu.memory_space<vmem>>, %arg7: memref<1x64xf32, #tpu.memory_space<vmem>>, %arg8: memref<64x64xbf16, #tpu.memory_space<vmem>>, %arg9: memref<1x64xf32, #tpu.memory_space<vmem>>, %arg10: memref<128x64xbf16, #tpu.memory_space<vmem>>, %arg11: memref<1x64xf32, #tpu.memory_space<vmem>>, %arg12: memref<64x64xbf16, #tpu.memory_space<vmem>>, %arg13: memref<1x64xf32, #tpu.memory_space<vmem>>, %arg14: memref<64x128xbf16, #tpu.memory_space<vmem>>, %arg15: memref<1x128xf32, #tpu.memory_space<vmem>>, %arg16: memref<4x64xbf16, #tpu.memory_space<vmem>>, %arg17: memref<1x64xf32, #tpu.memory_space<vmem>>, %arg18: memref<64x64xbf16, #tpu.memory_space<vmem>>, %arg19: memref<1x64xf32, #tpu.memory_space<vmem>>, %arg20: memref<128x128xbf16, #tpu.memory_space<vmem>>, %arg21: memref<1x128xf32, #tpu.memory_space<vmem>>, %arg22: memref<2x128xf32, #tpu.memory_space<vmem>>) attributes {dimension_semantics = [], scalar_prefetch = 0 : i64, scratch_operands = 0 : i64, tpu.core_type = #tpu.core_type<tc>} {
    %c0 = arith.constant 0 : index
    %c0_0 = arith.constant 0 : index
    %0 = vector.load %arg1[%c0, %c0_0] : memref<192x4xbf16, #tpu.memory_space<vmem>>, vector<192x4xbf16>
    %c0_1 = arith.constant 0 : index
    %c0_2 = arith.constant 0 : index
    %1 = vector.load %arg3[%c0_1, %c0_2] : memref<4x512xbf16, #tpu.memory_space<vmem>>, vector<4x512xbf16>
    %cst = arith.constant dense<0.000000e+00> : vector<192x512xf32>
    %2 = tpu.matmul %0, %1, %cst {dimension_numbers = #tpu.dot_dimension_numbers<[1], [0], [0], [1], [0, 0, 1, 1], [], []>} : vector<192x4xbf16>, vector<4x512xbf16>, vector<192x512xf32> -> vector<192x512xf32>
    %c0_3 = arith.constant 0 : index
    %c0_4 = arith.constant 0 : index
    %3 = vector.load %arg5[%c0_3, %c0_4] : memref<1x512xf32, #tpu.memory_space<vmem>>, vector<1x512xf32>
    %4 = vector.broadcast %3 : vector<1x512xf32> to vector<192x512xf32>
    %5 = arith.addf %2, %4 : vector<192x512xf32>
    %c0_5 = arith.constant 0 : index
    %c0_6 = arith.constant 0 : index
    %6 = vector.load %arg4[%c0_5, %c0_6] : memref<128x512xbf16, #tpu.memory_space<vmem>>, vector<128x512xbf16>
    %cst_7 = arith.constant 0.000000e+00 : f32
    %7 = vector.broadcast %cst_7 : f32 to vector<16x128xf32>
    %cst_8 = arith.constant 0.000000e+00 : f32
    %8 = vector.broadcast %cst_8 : f32 to vector<16x128xf32>
    %9 = vector.extract_strided_slice %5 {offsets = [0, 0], sizes = [16, 512], strides = [1, 1]} : vector<192x512xf32> to vector<16x512xf32>
    %10 = arith.truncf %7 : vector<16x128xf32> to vector<16x128xbf16>
    %cst_9 = arith.constant dense<0.000000e+00> : vector<16x512xf32>
    %11 = tpu.matmul %10, %6, %cst_9 {dimension_numbers = #tpu.dot_dimension_numbers<[1], [0], [0], [1], [0, 0, 1, 1], [], []>} : vector<16x128xbf16>, vector<128x512xbf16>, vector<16x512xf32> -> vector<16x512xf32>
    %12 = arith.addf %9, %11 : vector<16x512xf32>
    %13 = arith.negf %12 : vector<16x512xf32>
    %14 = math.exp %13 : vector<16x512xf32>
    %cst_10 = arith.constant 1.000000e+00 : f32
    %15 = vector.broadcast %cst_10 : f32 to vector<16x512xf32>
    %16 = arith.addf %15, %14 : vector<16x512xf32>
    %17 = arith.divf %15, %16 : vector<16x512xf32>
    %18 = vector.extract_strided_slice %17 {offsets = [0, 0], sizes = [16, 128], strides = [1, 1]} : vector<16x512xf32> to vector<16x128xf32>
    %19 = vector.extract_strided_slice %17 {offsets = [0, 128], sizes = [16, 128], strides = [1, 1]} : vector<16x512xf32> to vector<16x128xf32>
    %20 = vector.extract_strided_slice %17 {offsets = [0, 256], sizes = [16, 128], strides = [1, 1]} : vector<16x512xf32> to vector<16x128xf32>
    %21 = vector.extract_strided_slice %17 {offsets = [0, 384], sizes = [16, 128], strides = [1, 1]} : vector<16x512xf32> to vector<16x128xf32>
    %cst_11 = arith.constant 2.000000e+00 : f32
    %22 = vector.broadcast %cst_11 : f32 to vector<16x128xf32>
    %23 = arith.mulf %22, %21 : vector<16x128xf32>
    %cst_12 = arith.constant 1.000000e+00 : f32
    %24 = vector.broadcast %cst_12 : f32 to vector<16x128xf32>
    %25 = arith.subf %23, %24 : vector<16x128xf32>
    %26 = arith.mulf %19, %8 : vector<16x128xf32>
    %27 = arith.mulf %18, %25 : vector<16x128xf32>
    %28 = arith.addf %26, %27 : vector<16x128xf32>
    %29 = math.tanh %28 : vector<16x128xf32>
    %30 = arith.mulf %20, %29 : vector<16x128xf32>
    %31 = vector.extract_strided_slice %5 {offsets = [16, 0], sizes = [16, 512], strides = [1, 1]} : vector<192x512xf32> to vector<16x512xf32>
    %32 = arith.truncf %30 : vector<16x128xf32> to vector<16x128xbf16>
    %cst_13 = arith.constant dense<0.000000e+00> : vector<16x512xf32>
    %33 = tpu.matmul %32, %6, %cst_13 {dimension_numbers = #tpu.dot_dimension_numbers<[1], [0], [0], [1], [0, 0, 1, 1], [], []>} : vector<16x128xbf16>, vector<128x512xbf16>, vector<16x512xf32> -> vector<16x512xf32>
    %34 = arith.addf %31, %33 : vector<16x512xf32>
    %35 = arith.negf %34 : vector<16x512xf32>
    %36 = math.exp %35 : vector<16x512xf32>
    %cst_14 = arith.constant 1.000000e+00 : f32
    %37 = vector.broadcast %cst_14 : f32 to vector<16x512xf32>
    %38 = arith.addf %37, %36 : vector<16x512xf32>
    %39 = arith.divf %37, %38 : vector<16x512xf32>
    %40 = vector.extract_strided_slice %39 {offsets = [0, 0], sizes = [16, 128], strides = [1, 1]} : vector<16x512xf32> to vector<16x128xf32>
    %41 = vector.extract_strided_slice %39 {offsets = [0, 128], sizes = [16, 128], strides = [1, 1]} : vector<16x512xf32> to vector<16x128xf32>
    %42 = vector.extract_strided_slice %39 {offsets = [0, 256], sizes = [16, 128], strides = [1, 1]} : vector<16x512xf32> to vector<16x128xf32>
    %43 = vector.extract_strided_slice %39 {offsets = [0, 384], sizes = [16, 128], strides = [1, 1]} : vector<16x512xf32> to vector<16x128xf32>
    %cst_15 = arith.constant 2.000000e+00 : f32
    %44 = vector.broadcast %cst_15 : f32 to vector<16x128xf32>
    %45 = arith.mulf %44, %43 : vector<16x128xf32>
    %cst_16 = arith.constant 1.000000e+00 : f32
    %46 = vector.broadcast %cst_16 : f32 to vector<16x128xf32>
    %47 = arith.subf %45, %46 : vector<16x128xf32>
    %48 = arith.mulf %41, %28 : vector<16x128xf32>
    %49 = arith.mulf %40, %47 : vector<16x128xf32>
    %50 = arith.addf %48, %49 : vector<16x128xf32>
    %51 = math.tanh %50 : vector<16x128xf32>
    %52 = arith.mulf %42, %51 : vector<16x128xf32>
    %53 = vector.extract_strided_slice %5 {offsets = [32, 0], sizes = [16, 512], strides = [1, 1]} : vector<192x512xf32> to vector<16x512xf32>
    %54 = arith.truncf %52 : vector<16x128xf32> to vector<16x128xbf16>
    %cst_17 = arith.constant dense<0.000000e+00> : vector<16x512xf32>
    %55 = tpu.matmul %54, %6, %cst_17 {dimension_numbers = #tpu.dot_dimension_numbers<[1], [0], [0], [1], [0, 0, 1, 1], [], []>} : vector<16x128xbf16>, vector<128x512xbf16>, vector<16x512xf32> -> vector<16x512xf32>
    %56 = arith.addf %53, %55 : vector<16x512xf32>
    %57 = arith.negf %56 : vector<16x512xf32>
    %58 = math.exp %57 : vector<16x512xf32>
    %cst_18 = arith.constant 1.000000e+00 : f32
    %59 = vector.broadcast %cst_18 : f32 to vector<16x512xf32>
    %60 = arith.addf %59, %58 : vector<16x512xf32>
    %61 = arith.divf %59, %60 : vector<16x512xf32>
    %62 = vector.extract_strided_slice %61 {offsets = [0, 0], sizes = [16, 128], strides = [1, 1]} : vector<16x512xf32> to vector<16x128xf32>
    %63 = vector.extract_strided_slice %61 {offsets = [0, 128], sizes = [16, 128], strides = [1, 1]} : vector<16x512xf32> to vector<16x128xf32>
    %64 = vector.extract_strided_slice %61 {offsets = [0, 256], sizes = [16, 128], strides = [1, 1]} : vector<16x512xf32> to vector<16x128xf32>
    %65 = vector.extract_strided_slice %61 {offsets = [0, 384], sizes = [16, 128], strides = [1, 1]} : vector<16x512xf32> to vector<16x128xf32>
    %cst_19 = arith.constant 2.000000e+00 : f32
    %66 = vector.broadcast %cst_19 : f32 to vector<16x128xf32>
    %67 = arith.mulf %66, %65 : vector<16x128xf32>
    %cst_20 = arith.constant 1.000000e+00 : f32
    %68 = vector.broadcast %cst_20 : f32 to vector<16x128xf32>
    %69 = arith.subf %67, %68 : vector<16x128xf32>
    %70 = arith.mulf %63, %50 : vector<16x128xf32>
    %71 = arith.mulf %62, %69 : vector<16x128xf32>
    %72 = arith.addf %70, %71 : vector<16x128xf32>
    %73 = math.tanh %72 : vector<16x128xf32>
    %74 = arith.mulf %64, %73 : vector<16x128xf32>
    %75 = vector.extract_strided_slice %5 {offsets = [48, 0], sizes = [16, 512], strides = [1, 1]} : vector<192x512xf32> to vector<16x512xf32>
    %76 = arith.truncf %74 : vector<16x128xf32> to vector<16x128xbf16>
    %cst_21 = arith.constant dense<0.000000e+00> : vector<16x512xf32>
    %77 = tpu.matmul %76, %6, %cst_21 {dimension_numbers = #tpu.dot_dimension_numbers<[1], [0], [0], [1], [0, 0, 1, 1], [], []>} : vector<16x128xbf16>, vector<128x512xbf16>, vector<16x512xf32> -> vector<16x512xf32>
    %78 = arith.addf %75, %77 : vector<16x512xf32>
    %79 = arith.negf %78 : vector<16x512xf32>
    %80 = math.exp %79 : vector<16x512xf32>
    %cst_22 = arith.constant 1.000000e+00 : f32
    %81 = vector.broadcast %cst_22 : f32 to vector<16x512xf32>
    %82 = arith.addf %81, %80 : vector<16x512xf32>
    %83 = arith.divf %81, %82 : vector<16x512xf32>
    %84 = vector.extract_strided_slice %83 {offsets = [0, 0], sizes = [16, 128], strides = [1, 1]} : vector<16x512xf32> to vector<16x128xf32>
    %85 = vector.extract_strided_slice %83 {offsets = [0, 128], sizes = [16, 128], strides = [1, 1]} : vector<16x512xf32> to vector<16x128xf32>
    %86 = vector.extract_strided_slice %83 {offsets = [0, 256], sizes = [16, 128], strides = [1, 1]} : vector<16x512xf32> to vector<16x128xf32>
    %87 = vector.extract_strided_slice %83 {offsets = [0, 384], sizes = [16, 128], strides = [1, 1]} : vector<16x512xf32> to vector<16x128xf32>
    %cst_23 = arith.constant 2.000000e+00 : f32
    %88 = vector.broadcast %cst_23 : f32 to vector<16x128xf32>
    %89 = arith.mulf %88, %87 : vector<16x128xf32>
    %cst_24 = arith.constant 1.000000e+00 : f32
    %90 = vector.broadcast %cst_24 : f32 to vector<16x128xf32>
    %91 = arith.subf %89, %90 : vector<16x128xf32>
    %92 = arith.mulf %85, %72 : vector<16x128xf32>
    %93 = arith.mulf %84, %91 : vector<16x128xf32>
    %94 = arith.addf %92, %93 : vector<16x128xf32>
    %95 = math.tanh %94 : vector<16x128xf32>
    %96 = arith.mulf %86, %95 : vector<16x128xf32>
    %97 = vector.extract_strided_slice %5 {offsets = [64, 0], sizes = [16, 512], strides = [1, 1]} : vector<192x512xf32> to vector<16x512xf32>
    %98 = arith.truncf %96 : vector<16x128xf32> to vector<16x128xbf16>
    %cst_25 = arith.constant dense<0.000000e+00> : vector<16x512xf32>
    %99 = tpu.matmul %98, %6, %cst_25 {dimension_numbers = #tpu.dot_dimension_numbers<[1], [0], [0], [1], [0, 0, 1, 1], [], []>} : vector<16x128xbf16>, vector<128x512xbf16>, vector<16x512xf32> -> vector<16x512xf32>
    %100 = arith.addf %97, %99 : vector<16x512xf32>
    %101 = arith.negf %100 : vector<16x512xf32>
    %102 = math.exp %101 : vector<16x512xf32>
    %cst_26 = arith.constant 1.000000e+00 : f32
    %103 = vector.broadcast %cst_26 : f32 to vector<16x512xf32>
    %104 = arith.addf %103, %102 : vector<16x512xf32>
    %105 = arith.divf %103, %104 : vector<16x512xf32>
    %106 = vector.extract_strided_slice %105 {offsets = [0, 0], sizes = [16, 128], strides = [1, 1]} : vector<16x512xf32> to vector<16x128xf32>
    %107 = vector.extract_strided_slice %105 {offsets = [0, 128], sizes = [16, 128], strides = [1, 1]} : vector<16x512xf32> to vector<16x128xf32>
    %108 = vector.extract_strided_slice %105 {offsets = [0, 256], sizes = [16, 128], strides = [1, 1]} : vector<16x512xf32> to vector<16x128xf32>
    %109 = vector.extract_strided_slice %105 {offsets = [0, 384], sizes = [16, 128], strides = [1, 1]} : vector<16x512xf32> to vector<16x128xf32>
    %cst_27 = arith.constant 2.000000e+00 : f32
    %110 = vector.broadcast %cst_27 : f32 to vector<16x128xf32>
    %111 = arith.mulf %110, %109 : vector<16x128xf32>
    %cst_28 = arith.constant 1.000000e+00 : f32
    %112 = vector.broadcast %cst_28 : f32 to vector<16x128xf32>
    %113 = arith.subf %111, %112 : vector<16x128xf32>
    %114 = arith.mulf %107, %94 : vector<16x128xf32>
    %115 = arith.mulf %106, %113 : vector<16x128xf32>
    %116 = arith.addf %114, %115 : vector<16x128xf32>
    %117 = math.tanh %116 : vector<16x128xf32>
    %118 = arith.mulf %108, %117 : vector<16x128xf32>
    %119 = vector.extract_strided_slice %5 {offsets = [80, 0], sizes = [16, 512], strides = [1, 1]} : vector<192x512xf32> to vector<16x512xf32>
    %120 = arith.truncf %118 : vector<16x128xf32> to vector<16x128xbf16>
    %cst_29 = arith.constant dense<0.000000e+00> : vector<16x512xf32>
    %121 = tpu.matmul %120, %6, %cst_29 {dimension_numbers = #tpu.dot_dimension_numbers<[1], [0], [0], [1], [0, 0, 1, 1], [], []>} : vector<16x128xbf16>, vector<128x512xbf16>, vector<16x512xf32> -> vector<16x512xf32>
    %122 = arith.addf %119, %121 : vector<16x512xf32>
    %123 = arith.negf %122 : vector<16x512xf32>
    %124 = math.exp %123 : vector<16x512xf32>
    %cst_30 = arith.constant 1.000000e+00 : f32
    %125 = vector.broadcast %cst_30 : f32 to vector<16x512xf32>
    %126 = arith.addf %125, %124 : vector<16x512xf32>
    %127 = arith.divf %125, %126 : vector<16x512xf32>
    %128 = vector.extract_strided_slice %127 {offsets = [0, 0], sizes = [16, 128], strides = [1, 1]} : vector<16x512xf32> to vector<16x128xf32>
    %129 = vector.extract_strided_slice %127 {offsets = [0, 128], sizes = [16, 128], strides = [1, 1]} : vector<16x512xf32> to vector<16x128xf32>
    %130 = vector.extract_strided_slice %127 {offsets = [0, 256], sizes = [16, 128], strides = [1, 1]} : vector<16x512xf32> to vector<16x128xf32>
    %131 = vector.extract_strided_slice %127 {offsets = [0, 384], sizes = [16, 128], strides = [1, 1]} : vector<16x512xf32> to vector<16x128xf32>
    %cst_31 = arith.constant 2.000000e+00 : f32
    %132 = vector.broadcast %cst_31 : f32 to vector<16x128xf32>
    %133 = arith.mulf %132, %131 : vector<16x128xf32>
    %cst_32 = arith.constant 1.000000e+00 : f32
    %134 = vector.broadcast %cst_32 : f32 to vector<16x128xf32>
    %135 = arith.subf %133, %134 : vector<16x128xf32>
    %136 = arith.mulf %129, %116 : vector<16x128xf32>
    %137 = arith.mulf %128, %135 : vector<16x128xf32>
    %138 = arith.addf %136, %137 : vector<16x128xf32>
    %139 = math.tanh %138 : vector<16x128xf32>
    %140 = arith.mulf %130, %139 : vector<16x128xf32>
    %141 = vector.extract_strided_slice %5 {offsets = [96, 0], sizes = [16, 512], strides = [1, 1]} : vector<192x512xf32> to vector<16x512xf32>
    %142 = arith.truncf %140 : vector<16x128xf32> to vector<16x128xbf16>
    %cst_33 = arith.constant dense<0.000000e+00> : vector<16x512xf32>
    %143 = tpu.matmul %142, %6, %cst_33 {dimension_numbers = #tpu.dot_dimension_numbers<[1], [0], [0], [1], [0, 0, 1, 1], [], []>} : vector<16x128xbf16>, vector<128x512xbf16>, vector<16x512xf32> -> vector<16x512xf32>
    %144 = arith.addf %141, %143 : vector<16x512xf32>
    %145 = arith.negf %144 : vector<16x512xf32>
    %146 = math.exp %145 : vector<16x512xf32>
    %cst_34 = arith.constant 1.000000e+00 : f32
    %147 = vector.broadcast %cst_34 : f32 to vector<16x512xf32>
    %148 = arith.addf %147, %146 : vector<16x512xf32>
    %149 = arith.divf %147, %148 : vector<16x512xf32>
    %150 = vector.extract_strided_slice %149 {offsets = [0, 0], sizes = [16, 128], strides = [1, 1]} : vector<16x512xf32> to vector<16x128xf32>
    %151 = vector.extract_strided_slice %149 {offsets = [0, 128], sizes = [16, 128], strides = [1, 1]} : vector<16x512xf32> to vector<16x128xf32>
    %152 = vector.extract_strided_slice %149 {offsets = [0, 256], sizes = [16, 128], strides = [1, 1]} : vector<16x512xf32> to vector<16x128xf32>
    %153 = vector.extract_strided_slice %149 {offsets = [0, 384], sizes = [16, 128], strides = [1, 1]} : vector<16x512xf32> to vector<16x128xf32>
    %cst_35 = arith.constant 2.000000e+00 : f32
    %154 = vector.broadcast %cst_35 : f32 to vector<16x128xf32>
    %155 = arith.mulf %154, %153 : vector<16x128xf32>
    %cst_36 = arith.constant 1.000000e+00 : f32
    %156 = vector.broadcast %cst_36 : f32 to vector<16x128xf32>
    %157 = arith.subf %155, %156 : vector<16x128xf32>
    %158 = arith.mulf %151, %138 : vector<16x128xf32>
    %159 = arith.mulf %150, %157 : vector<16x128xf32>
    %160 = arith.addf %158, %159 : vector<16x128xf32>
    %161 = math.tanh %160 : vector<16x128xf32>
    %162 = arith.mulf %152, %161 : vector<16x128xf32>
    %163 = vector.extract_strided_slice %5 {offsets = [112, 0], sizes = [16, 512], strides = [1, 1]} : vector<192x512xf32> to vector<16x512xf32>
    %164 = arith.truncf %162 : vector<16x128xf32> to vector<16x128xbf16>
    %cst_37 = arith.constant dense<0.000000e+00> : vector<16x512xf32>
    %165 = tpu.matmul %164, %6, %cst_37 {dimension_numbers = #tpu.dot_dimension_numbers<[1], [0], [0], [1], [0, 0, 1, 1], [], []>} : vector<16x128xbf16>, vector<128x512xbf16>, vector<16x512xf32> -> vector<16x512xf32>
    %166 = arith.addf %163, %165 : vector<16x512xf32>
    %167 = arith.negf %166 : vector<16x512xf32>
    %168 = math.exp %167 : vector<16x512xf32>
    %cst_38 = arith.constant 1.000000e+00 : f32
    %169 = vector.broadcast %cst_38 : f32 to vector<16x512xf32>
    %170 = arith.addf %169, %168 : vector<16x512xf32>
    %171 = arith.divf %169, %170 : vector<16x512xf32>
    %172 = vector.extract_strided_slice %171 {offsets = [0, 0], sizes = [16, 128], strides = [1, 1]} : vector<16x512xf32> to vector<16x128xf32>
    %173 = vector.extract_strided_slice %171 {offsets = [0, 128], sizes = [16, 128], strides = [1, 1]} : vector<16x512xf32> to vector<16x128xf32>
    %174 = vector.extract_strided_slice %171 {offsets = [0, 256], sizes = [16, 128], strides = [1, 1]} : vector<16x512xf32> to vector<16x128xf32>
    %175 = vector.extract_strided_slice %171 {offsets = [0, 384], sizes = [16, 128], strides = [1, 1]} : vector<16x512xf32> to vector<16x128xf32>
    %cst_39 = arith.constant 2.000000e+00 : f32
    %176 = vector.broadcast %cst_39 : f32 to vector<16x128xf32>
    %177 = arith.mulf %176, %175 : vector<16x128xf32>
    %cst_40 = arith.constant 1.000000e+00 : f32
    %178 = vector.broadcast %cst_40 : f32 to vector<16x128xf32>
    %179 = arith.subf %177, %178 : vector<16x128xf32>
    %180 = arith.mulf %173, %160 : vector<16x128xf32>
    %181 = arith.mulf %172, %179 : vector<16x128xf32>
    %182 = arith.addf %180, %181 : vector<16x128xf32>
    %183 = math.tanh %182 : vector<16x128xf32>
    %184 = arith.mulf %174, %183 : vector<16x128xf32>
    %185 = vector.extract_strided_slice %5 {offsets = [128, 0], sizes = [16, 512], strides = [1, 1]} : vector<192x512xf32> to vector<16x512xf32>
    %186 = arith.truncf %184 : vector<16x128xf32> to vector<16x128xbf16>
    %cst_41 = arith.constant dense<0.000000e+00> : vector<16x512xf32>
    %187 = tpu.matmul %186, %6, %cst_41 {dimension_numbers = #tpu.dot_dimension_numbers<[1], [0], [0], [1], [0, 0, 1, 1], [], []>} : vector<16x128xbf16>, vector<128x512xbf16>, vector<16x512xf32> -> vector<16x512xf32>
    %188 = arith.addf %185, %187 : vector<16x512xf32>
    %189 = arith.negf %188 : vector<16x512xf32>
    %190 = math.exp %189 : vector<16x512xf32>
    %cst_42 = arith.constant 1.000000e+00 : f32
    %191 = vector.broadcast %cst_42 : f32 to vector<16x512xf32>
    %192 = arith.addf %191, %190 : vector<16x512xf32>
    %193 = arith.divf %191, %192 : vector<16x512xf32>
    %194 = vector.extract_strided_slice %193 {offsets = [0, 0], sizes = [16, 128], strides = [1, 1]} : vector<16x512xf32> to vector<16x128xf32>
    %195 = vector.extract_strided_slice %193 {offsets = [0, 128], sizes = [16, 128], strides = [1, 1]} : vector<16x512xf32> to vector<16x128xf32>
    %196 = vector.extract_strided_slice %193 {offsets = [0, 256], sizes = [16, 128], strides = [1, 1]} : vector<16x512xf32> to vector<16x128xf32>
    %197 = vector.extract_strided_slice %193 {offsets = [0, 384], sizes = [16, 128], strides = [1, 1]} : vector<16x512xf32> to vector<16x128xf32>
    %cst_43 = arith.constant 2.000000e+00 : f32
    %198 = vector.broadcast %cst_43 : f32 to vector<16x128xf32>
    %199 = arith.mulf %198, %197 : vector<16x128xf32>
    %cst_44 = arith.constant 1.000000e+00 : f32
    %200 = vector.broadcast %cst_44 : f32 to vector<16x128xf32>
    %201 = arith.subf %199, %200 : vector<16x128xf32>
    %202 = arith.mulf %195, %182 : vector<16x128xf32>
    %203 = arith.mulf %194, %201 : vector<16x128xf32>
    %204 = arith.addf %202, %203 : vector<16x128xf32>
    %205 = math.tanh %204 : vector<16x128xf32>
    %206 = arith.mulf %196, %205 : vector<16x128xf32>
    %207 = vector.extract_strided_slice %5 {offsets = [144, 0], sizes = [16, 512], strides = [1, 1]} : vector<192x512xf32> to vector<16x512xf32>
    %208 = arith.truncf %206 : vector<16x128xf32> to vector<16x128xbf16>
    %cst_45 = arith.constant dense<0.000000e+00> : vector<16x512xf32>
    %209 = tpu.matmul %208, %6, %cst_45 {dimension_numbers = #tpu.dot_dimension_numbers<[1], [0], [0], [1], [0, 0, 1, 1], [], []>} : vector<16x128xbf16>, vector<128x512xbf16>, vector<16x512xf32> -> vector<16x512xf32>
    %210 = arith.addf %207, %209 : vector<16x512xf32>
    %211 = arith.negf %210 : vector<16x512xf32>
    %212 = math.exp %211 : vector<16x512xf32>
    %cst_46 = arith.constant 1.000000e+00 : f32
    %213 = vector.broadcast %cst_46 : f32 to vector<16x512xf32>
    %214 = arith.addf %213, %212 : vector<16x512xf32>
    %215 = arith.divf %213, %214 : vector<16x512xf32>
    %216 = vector.extract_strided_slice %215 {offsets = [0, 0], sizes = [16, 128], strides = [1, 1]} : vector<16x512xf32> to vector<16x128xf32>
    %217 = vector.extract_strided_slice %215 {offsets = [0, 128], sizes = [16, 128], strides = [1, 1]} : vector<16x512xf32> to vector<16x128xf32>
    %218 = vector.extract_strided_slice %215 {offsets = [0, 256], sizes = [16, 128], strides = [1, 1]} : vector<16x512xf32> to vector<16x128xf32>
    %219 = vector.extract_strided_slice %215 {offsets = [0, 384], sizes = [16, 128], strides = [1, 1]} : vector<16x512xf32> to vector<16x128xf32>
    %cst_47 = arith.constant 2.000000e+00 : f32
    %220 = vector.broadcast %cst_47 : f32 to vector<16x128xf32>
    %221 = arith.mulf %220, %219 : vector<16x128xf32>
    %cst_48 = arith.constant 1.000000e+00 : f32
    %222 = vector.broadcast %cst_48 : f32 to vector<16x128xf32>
    %223 = arith.subf %221, %222 : vector<16x128xf32>
    %224 = arith.mulf %217, %204 : vector<16x128xf32>
    %225 = arith.mulf %216, %223 : vector<16x128xf32>
    %226 = arith.addf %224, %225 : vector<16x128xf32>
    %227 = math.tanh %226 : vector<16x128xf32>
    %228 = arith.mulf %218, %227 : vector<16x128xf32>
    %229 = vector.extract_strided_slice %5 {offsets = [160, 0], sizes = [16, 512], strides = [1, 1]} : vector<192x512xf32> to vector<16x512xf32>
    %230 = arith.truncf %228 : vector<16x128xf32> to vector<16x128xbf16>
    %cst_49 = arith.constant dense<0.000000e+00> : vector<16x512xf32>
    %231 = tpu.matmul %230, %6, %cst_49 {dimension_numbers = #tpu.dot_dimension_numbers<[1], [0], [0], [1], [0, 0, 1, 1], [], []>} : vector<16x128xbf16>, vector<128x512xbf16>, vector<16x512xf32> -> vector<16x512xf32>
    %232 = arith.addf %229, %231 : vector<16x512xf32>
    %233 = arith.negf %232 : vector<16x512xf32>
    %234 = math.exp %233 : vector<16x512xf32>
    %cst_50 = arith.constant 1.000000e+00 : f32
    %235 = vector.broadcast %cst_50 : f32 to vector<16x512xf32>
    %236 = arith.addf %235, %234 : vector<16x512xf32>
    %237 = arith.divf %235, %236 : vector<16x512xf32>
    %238 = vector.extract_strided_slice %237 {offsets = [0, 0], sizes = [16, 128], strides = [1, 1]} : vector<16x512xf32> to vector<16x128xf32>
    %239 = vector.extract_strided_slice %237 {offsets = [0, 128], sizes = [16, 128], strides = [1, 1]} : vector<16x512xf32> to vector<16x128xf32>
    %240 = vector.extract_strided_slice %237 {offsets = [0, 256], sizes = [16, 128], strides = [1, 1]} : vector<16x512xf32> to vector<16x128xf32>
    %241 = vector.extract_strided_slice %237 {offsets = [0, 384], sizes = [16, 128], strides = [1, 1]} : vector<16x512xf32> to vector<16x128xf32>
    %cst_51 = arith.constant 2.000000e+00 : f32
    %242 = vector.broadcast %cst_51 : f32 to vector<16x128xf32>
    %243 = arith.mulf %242, %241 : vector<16x128xf32>
    %cst_52 = arith.constant 1.000000e+00 : f32
    %244 = vector.broadcast %cst_52 : f32 to vector<16x128xf32>
    %245 = arith.subf %243, %244 : vector<16x128xf32>
    %246 = arith.mulf %239, %226 : vector<16x128xf32>
    %247 = arith.mulf %238, %245 : vector<16x128xf32>
    %248 = arith.addf %246, %247 : vector<16x128xf32>
    %249 = math.tanh %248 : vector<16x128xf32>
    %250 = arith.mulf %240, %249 : vector<16x128xf32>
    %251 = vector.extract_strided_slice %5 {offsets = [176, 0], sizes = [16, 512], strides = [1, 1]} : vector<192x512xf32> to vector<16x512xf32>
    %252 = arith.truncf %250 : vector<16x128xf32> to vector<16x128xbf16>
    %cst_53 = arith.constant dense<0.000000e+00> : vector<16x512xf32>
    %253 = tpu.matmul %252, %6, %cst_53 {dimension_numbers = #tpu.dot_dimension_numbers<[1], [0], [0], [1], [0, 0, 1, 1], [], []>} : vector<16x128xbf16>, vector<128x512xbf16>, vector<16x512xf32> -> vector<16x512xf32>
    %254 = arith.addf %251, %253 : vector<16x512xf32>
    %255 = arith.negf %254 : vector<16x512xf32>
    %256 = math.exp %255 : vector<16x512xf32>
    %cst_54 = arith.constant 1.000000e+00 : f32
    %257 = vector.broadcast %cst_54 : f32 to vector<16x512xf32>
    %258 = arith.addf %257, %256 : vector<16x512xf32>
    %259 = arith.divf %257, %258 : vector<16x512xf32>
    %260 = vector.extract_strided_slice %259 {offsets = [0, 0], sizes = [16, 128], strides = [1, 1]} : vector<16x512xf32> to vector<16x128xf32>
    %261 = vector.extract_strided_slice %259 {offsets = [0, 128], sizes = [16, 128], strides = [1, 1]} : vector<16x512xf32> to vector<16x128xf32>
    %262 = vector.extract_strided_slice %259 {offsets = [0, 256], sizes = [16, 128], strides = [1, 1]} : vector<16x512xf32> to vector<16x128xf32>
    %263 = vector.extract_strided_slice %259 {offsets = [0, 384], sizes = [16, 128], strides = [1, 1]} : vector<16x512xf32> to vector<16x128xf32>
    %cst_55 = arith.constant 2.000000e+00 : f32
    %264 = vector.broadcast %cst_55 : f32 to vector<16x128xf32>
    %265 = arith.mulf %264, %263 : vector<16x128xf32>
    %cst_56 = arith.constant 1.000000e+00 : f32
    %266 = vector.broadcast %cst_56 : f32 to vector<16x128xf32>
    %267 = arith.subf %265, %266 : vector<16x128xf32>
    %268 = arith.mulf %261, %248 : vector<16x128xf32>
    %269 = arith.mulf %260, %267 : vector<16x128xf32>
    %270 = arith.addf %268, %269 : vector<16x128xf32>
    %271 = math.tanh %270 : vector<16x128xf32>
    %272 = arith.mulf %262, %271 : vector<16x128xf32>
    %273 = vector.extract_strided_slice %206 {offsets = [0, 0], sizes = [16, 64], strides = [1, 1]} : vector<16x128xf32> to vector<16x64xf32>
    %274 = vector.extract_strided_slice %272 {offsets = [0, 64], sizes = [16, 64], strides = [1, 1]} : vector<16x128xf32> to vector<16x64xf32>
    %275 = tpu.concatenate %273, %274 in 1 : vector<16x64xf32>, vector<16x64xf32> -> vector<16x128xf32>
    %cst_57 = arith.constant 0.000000e+00 : f32
    %276 = vector.broadcast %cst_57 : f32 to vector<16x128xf32>
    %277 = arith.maximumf %275, %276 : vector<16x128xf32>
    %c0_58 = arith.constant 0 : index
    %c0_59 = arith.constant 0 : index
    %278 = vector.load %arg10[%c0_58, %c0_59] : memref<128x64xbf16, #tpu.memory_space<vmem>>, vector<128x64xbf16>
    %279 = arith.truncf %277 : vector<16x128xf32> to vector<16x128xbf16>
    %cst_60 = arith.constant dense<0.000000e+00> : vector<16x64xf32>
    %280 = tpu.matmul %279, %278, %cst_60 {dimension_numbers = #tpu.dot_dimension_numbers<[1], [0], [0], [1], [0, 0, 1, 1], [], []>} : vector<16x128xbf16>, vector<128x64xbf16>, vector<16x64xf32> -> vector<16x64xf32>
    %c0_61 = arith.constant 0 : index
    %c0_62 = arith.constant 0 : index
    %281 = vector.load %arg11[%c0_61, %c0_62] : memref<1x64xf32, #tpu.memory_space<vmem>>, vector<1x64xf32>
    %282 = vector.broadcast %281 : vector<1x64xf32> to vector<16x64xf32>
    %283 = arith.addf %280, %282 : vector<16x64xf32>
    %cst_63 = arith.constant 0.000000e+00 : f32
    %284 = vector.broadcast %cst_63 : f32 to vector<16x64xf32>
    %285 = arith.maximumf %283, %284 : vector<16x64xf32>
    %c0_64 = arith.constant 0 : index
    %c0_65 = arith.constant 0 : index
    %286 = vector.load %arg0[%c0_64, %c0_65] : memref<2x6xf32, #tpu.memory_space<vmem>>, vector<2x6xf32>
    %287 = vector.extract_strided_slice %286 {offsets = [0, 0], sizes = [2, 4], strides = [1, 1]} : vector<2x6xf32> to vector<2x4xf32>
    %c0_66 = arith.constant 0 : index
    %c0_67 = arith.constant 0 : index
    %288 = vector.load %arg6[%c0_66, %c0_67] : memref<4x64xbf16, #tpu.memory_space<vmem>>, vector<4x64xbf16>
    %289 = arith.truncf %287 : vector<2x4xf32> to vector<2x4xbf16>
    %cst_68 = arith.constant dense<0.000000e+00> : vector<2x64xf32>
    %290 = tpu.matmul %289, %288, %cst_68 {dimension_numbers = #tpu.dot_dimension_numbers<[1], [0], [0], [1], [0, 0, 1, 1], [], []>} : vector<2x4xbf16>, vector<4x64xbf16>, vector<2x64xf32> -> vector<2x64xf32>
    %c0_69 = arith.constant 0 : index
    %c0_70 = arith.constant 0 : index
    %291 = vector.load %arg7[%c0_69, %c0_70] : memref<1x64xf32, #tpu.memory_space<vmem>>, vector<1x64xf32>
    %292 = vector.broadcast %291 : vector<1x64xf32> to vector<2x64xf32>
    %293 = arith.addf %290, %292 : vector<2x64xf32>
    %cst_71 = arith.constant 0.000000e+00 : f32
    %294 = vector.broadcast %cst_71 : f32 to vector<2x64xf32>
    %295 = arith.maximumf %293, %294 : vector<2x64xf32>
    %c0_72 = arith.constant 0 : index
    %c0_73 = arith.constant 0 : index
    %296 = vector.load %arg8[%c0_72, %c0_73] : memref<64x64xbf16, #tpu.memory_space<vmem>>, vector<64x64xbf16>
    %297 = arith.truncf %295 : vector<2x64xf32> to vector<2x64xbf16>
    %cst_74 = arith.constant dense<0.000000e+00> : vector<2x64xf32>
    %298 = tpu.matmul %297, %296, %cst_74 {dimension_numbers = #tpu.dot_dimension_numbers<[1], [0], [0], [1], [0, 0, 1, 1], [], []>} : vector<2x64xbf16>, vector<64x64xbf16>, vector<2x64xf32> -> vector<2x64xf32>
    %c0_75 = arith.constant 0 : index
    %c0_76 = arith.constant 0 : index
    %299 = vector.load %arg9[%c0_75, %c0_76] : memref<1x64xf32, #tpu.memory_space<vmem>>, vector<1x64xf32>
    %300 = vector.broadcast %299 : vector<1x64xf32> to vector<2x64xf32>
    %301 = arith.addf %298, %300 : vector<2x64xf32>
    %cst_77 = arith.constant 0.000000e+00 : f32
    %302 = vector.broadcast %cst_77 : f32 to vector<2x64xf32>
    %303 = arith.maximumf %301, %302 : vector<2x64xf32>
    %c0_78 = arith.constant 0 : index
    %c0_79 = arith.constant 0 : index
    %304 = vector.load %arg12[%c0_78, %c0_79] : memref<64x64xbf16, #tpu.memory_space<vmem>>, vector<64x64xbf16>
    %305 = arith.truncf %303 : vector<2x64xf32> to vector<2x64xbf16>
    %cst_80 = arith.constant dense<0.000000e+00> : vector<2x64xf32>
    %306 = tpu.matmul %305, %304, %cst_80 {dimension_numbers = #tpu.dot_dimension_numbers<[1], [0], [0], [1], [0, 0, 1, 1], [], []>} : vector<2x64xbf16>, vector<64x64xbf16>, vector<2x64xf32> -> vector<2x64xf32>
    %c0_81 = arith.constant 0 : index
    %c0_82 = arith.constant 0 : index
    %307 = vector.load %arg13[%c0_81, %c0_82] : memref<1x64xf32, #tpu.memory_space<vmem>>, vector<1x64xf32>
    %308 = vector.broadcast %307 : vector<1x64xf32> to vector<2x64xf32>
    %309 = arith.addf %306, %308 : vector<2x64xf32>
    %c0_83 = arith.constant 0 : index
    %c0_84 = arith.constant 0 : index
    %310 = vector.load %arg14[%c0_83, %c0_84] : memref<64x128xbf16, #tpu.memory_space<vmem>>, vector<64x128xbf16>
    %311 = arith.truncf %285 : vector<16x64xf32> to vector<16x64xbf16>
    %cst_85 = arith.constant dense<0.000000e+00> : vector<16x128xf32>
    %312 = tpu.matmul %311, %310, %cst_85 {dimension_numbers = #tpu.dot_dimension_numbers<[1], [0], [0], [1], [0, 0, 1, 1], [], []>} : vector<16x64xbf16>, vector<64x128xbf16>, vector<16x128xf32> -> vector<16x128xf32>
    %c0_86 = arith.constant 0 : index
    %c0_87 = arith.constant 0 : index
    %313 = vector.load %arg15[%c0_86, %c0_87] : memref<1x128xf32, #tpu.memory_space<vmem>>, vector<1x128xf32>
    %314 = vector.broadcast %313 : vector<1x128xf32> to vector<16x128xf32>
    %315 = arith.addf %312, %314 : vector<16x128xf32>
    %316 = vector.extract_strided_slice %315 {offsets = [0, 0], sizes = [16, 64], strides = [1, 1]} : vector<16x128xf32> to vector<16x64xf32>
    %317 = vector.extract_strided_slice %315 {offsets = [0, 64], sizes = [16, 64], strides = [1, 1]} : vector<16x128xf32> to vector<16x64xf32>
    %318 = arith.truncf %309 : vector<2x64xf32> to vector<2x64xbf16>
    %319 = arith.truncf %316 : vector<16x64xf32> to vector<16x64xbf16>
    "tpu.trace_start"() <{level = 10 : i32, message = "bh,nh->bn"}> : () -> ()
    %cst_88 = arith.constant dense<0.000000e+00> : vector<2x16xf32>
    %320 = tpu.matmul %318, %319, %cst_88 {dimension_numbers = #tpu.dot_dimension_numbers<[1], [1], [0], [0], [0, 0, 1, 0], [], []>} : vector<2x64xbf16>, vector<16x64xbf16>, vector<2x16xf32> -> vector<2x16xf32>
    "tpu.trace_stop"() : () -> ()
    %c0_89 = arith.constant 0 : index
    %c0_90 = arith.constant 0 : index
    %321 = vector.load %arg2[%c0_89, %c0_90] : memref<2x16xf32, #tpu.memory_space<vmem>>, vector<2x16xf32>
    %322 = arith.addf %320, %321 : vector<2x16xf32>
    %cst_91 = arith.constant dense<0xFF800000> : vector<2xf32>
    %323 = vector.multi_reduction <maximumf>, %322, %cst_91 [1] : vector<2x16xf32> to vector<2xf32>
    %324 = vector.shape_cast %323 : vector<2xf32> to vector<2x1xf32>
    %325 = vector.broadcast %324 : vector<2x1xf32> to vector<2x16xf32>
    %326 = arith.subf %322, %325 : vector<2x16xf32>
    %327 = math.exp %326 : vector<2x16xf32>
    %cst_92 = arith.constant dense<0.000000e+00> : vector<2xf32>
    %328 = vector.multi_reduction <add>, %327, %cst_92 [1] : vector<2x16xf32> to vector<2xf32>
    %329 = vector.shape_cast %328 : vector<2xf32> to vector<2x1xf32>
    %330 = tpu.reciprocal %329 {approx = true} : vector<2x1xf32> -> vector<2x1xf32>
    %331 = vector.broadcast %330 : vector<2x1xf32> to vector<2x16xf32>
    %332 = arith.mulf %327, %331 : vector<2x16xf32>
    %333 = arith.truncf %332 : vector<2x16xf32> to vector<2x16xbf16>
    %334 = arith.truncf %317 : vector<16x64xf32> to vector<16x64xbf16>
    %cst_93 = arith.constant dense<0.000000e+00> : vector<2x64xf32>
    %335 = tpu.matmul %333, %334, %cst_93 {dimension_numbers = #tpu.dot_dimension_numbers<[1], [0], [0], [1], [0, 0, 1, 1], [], []>} : vector<2x16xbf16>, vector<16x64xbf16>, vector<2x64xf32> -> vector<2x64xf32>
    %336 = vector.extract_strided_slice %286 {offsets = [0, 4], sizes = [2, 2], strides = [1, 1]} : vector<2x6xf32> to vector<2x2xf32>
    %337 = vector.extract_strided_slice %286 {offsets = [0, 0], sizes = [2, 2], strides = [1, 1]} : vector<2x6xf32> to vector<2x2xf32>
    %338 = arith.subf %336, %337 : vector<2x2xf32>
    %339 = vector.extract_strided_slice %286 {offsets = [0, 2], sizes = [2, 2], strides = [1, 1]} : vector<2x6xf32> to vector<2x2xf32>
    %340 = tpu.concatenate %338, %339 in 1 : vector<2x2xf32>, vector<2x2xf32> -> vector<2x4xf32>
    %c0_94 = arith.constant 0 : index
    %c0_95 = arith.constant 0 : index
    %341 = vector.load %arg16[%c0_94, %c0_95] : memref<4x64xbf16, #tpu.memory_space<vmem>>, vector<4x64xbf16>
    %342 = arith.truncf %340 : vector<2x4xf32> to vector<2x4xbf16>
    %cst_96 = arith.constant dense<0.000000e+00> : vector<2x64xf32>
    %343 = tpu.matmul %342, %341, %cst_96 {dimension_numbers = #tpu.dot_dimension_numbers<[1], [0], [0], [1], [0, 0, 1, 1], [], []>} : vector<2x4xbf16>, vector<4x64xbf16>, vector<2x64xf32> -> vector<2x64xf32>
    %c0_97 = arith.constant 0 : index
    %c0_98 = arith.constant 0 : index
    %344 = vector.load %arg17[%c0_97, %c0_98] : memref<1x64xf32, #tpu.memory_space<vmem>>, vector<1x64xf32>
    %345 = vector.broadcast %344 : vector<1x64xf32> to vector<2x64xf32>
    %346 = arith.addf %343, %345 : vector<2x64xf32>
    %cst_99 = arith.constant 0.000000e+00 : f32
    %347 = vector.broadcast %cst_99 : f32 to vector<2x64xf32>
    %348 = arith.maximumf %346, %347 : vector<2x64xf32>
    %c0_100 = arith.constant 0 : index
    %c0_101 = arith.constant 0 : index
    %349 = vector.load %arg18[%c0_100, %c0_101] : memref<64x64xbf16, #tpu.memory_space<vmem>>, vector<64x64xbf16>
    %350 = arith.truncf %348 : vector<2x64xf32> to vector<2x64xbf16>
    %cst_102 = arith.constant dense<0.000000e+00> : vector<2x64xf32>
    %351 = tpu.matmul %350, %349, %cst_102 {dimension_numbers = #tpu.dot_dimension_numbers<[1], [0], [0], [1], [0, 0, 1, 1], [], []>} : vector<2x64xbf16>, vector<64x64xbf16>, vector<2x64xf32> -> vector<2x64xf32>
    %c0_103 = arith.constant 0 : index
    %c0_104 = arith.constant 0 : index
    %352 = vector.load %arg19[%c0_103, %c0_104] : memref<1x64xf32, #tpu.memory_space<vmem>>, vector<1x64xf32>
    %353 = vector.broadcast %352 : vector<1x64xf32> to vector<2x64xf32>
    %354 = arith.addf %351, %353 : vector<2x64xf32>
    %cst_105 = arith.constant 0.000000e+00 : f32
    %355 = vector.broadcast %cst_105 : f32 to vector<2x64xf32>
    %356 = arith.maximumf %354, %355 : vector<2x64xf32>
    %357 = tpu.concatenate %356, %335 in 1 : vector<2x64xf32>, vector<2x64xf32> -> vector<2x128xf32>
    %c0_106 = arith.constant 0 : index
    %c0_107 = arith.constant 0 : index
    %358 = vector.load %arg20[%c0_106, %c0_107] : memref<128x128xbf16, #tpu.memory_space<vmem>>, vector<128x128xbf16>
    %359 = arith.truncf %357 : vector<2x128xf32> to vector<2x128xbf16>
    %cst_108 = arith.constant dense<0.000000e+00> : vector<2x128xf32>
    %360 = tpu.matmul %359, %358, %cst_108 {dimension_numbers = #tpu.dot_dimension_numbers<[1], [0], [0], [1], [0, 0, 1, 1], [], []>} : vector<2x128xbf16>, vector<128x128xbf16>, vector<2x128xf32> -> vector<2x128xf32>
    %c0_109 = arith.constant 0 : index
    %c0_110 = arith.constant 0 : index
    %361 = vector.load %arg21[%c0_109, %c0_110] : memref<1x128xf32, #tpu.memory_space<vmem>>, vector<1x128xf32>
    %362 = vector.broadcast %361 : vector<1x128xf32> to vector<2x128xf32>
    %363 = arith.addf %360, %362 : vector<2x128xf32>
    %c0_111 = arith.constant 0 : index
    %c0_112 = arith.constant 0 : index
    %364 = vector.load %arg22[%c0_111, %c0_112] : memref<2x128xf32, #tpu.memory_space<vmem>>, vector<2x128xf32>
    tpu.vector_store %arg22[%c0_111, %c0_112], %363 {strides = array<i32>} : memref<2x128xf32, #tpu.memory_space<vmem>>, vector<2x128xf32>,
    return
  }
}

</mosaic_0001>

<bundles_post_ra>
// kernel: planner_forward.1
= control target key start
LH: loop header
LB: loop body
LE: loop exit
PB: predicated region body
PF: predicated region fallthrough
CT: control target
= control target key end

     0   :  { %s6711_s0 = inlined_call_operand.hbm [shape: f32[2,6], index: 0, kind: input, shape index: {}]   ;;  %s6712_s1 = inlined_call_operand.vmem [shape: bf16[192,4], index: 1, kind: input, shape index: {}]   ;;  %s6713_s2 = inlined_call_operand.vmem [shape: f32[2,16], index: 2, kind: input, shape index: {}]   ;;  %s6714_s3 = inlined_call_operand.vmem [shape: bf16[4,512], index: 3, kind: input, shape index: {}]   ;;  %s6715_s4 = inlined_call_operand.vmem [shape: bf16[128,512], index: 4, kind: input, shape index: {}]   ;;  %s6716_s5 = inlined_call_operand.vmem [shape: f32[1,512], index: 5, kind: input, shape index: {}]   ;;  %s6717_s6 = inlined_call_operand.hbm [shape: bf16[4,64], index: 6, kind: input, shape index: {}]   ;;  %s6718_s7 = inlined_call_operand.vmem [shape: f32[1,64], index: 7, kind: input, shape index: {}]   ;;  %s6719_s8 = inlined_call_operand.vmem [shape: bf16[64,64], index: 8, kind: input, shape index: {}]   ;;  %s6720_s9 = inlined_call_operand.hbm [shape: f32[1,64], index: 9, kind: input, shape index: {}]   ;;  %s6721_s10 = inlined_call_operand.vmem [shape: bf16[128,64], index: 10, kind: input, shape index: {}]   ;;  %s6722_s11 = inlined_call_operand.hbm [shape: f32[1,64], index: 11, kind: input, shape index: {}]   ;;  %s6723_s12 = inlined_call_operand.hbm [shape: bf16[64,64], index: 12, kind: input, shape index: {}]   ;;  %s6724_s13 = inlined_call_operand.hbm [shape: f32[1,64], index: 13, kind: input, shape index: {}]   ;;  %s6725_s14 = inlined_call_operand.vmem [shape: bf16[64,128], index: 14, kind: input, shape index: {}]   ;;  %s6726_s15 = inlined_call_operand.hbm [shape: f32[1,128], index: 15, kind: input, shape index: {}]   ;;  %s6727_s16 = inlined_call_operand.hbm [shape: bf16[4,64], index: 16, kind: input, shape index: {}]   ;;  %s6728_s17 = inlined_call_operand.hbm [shape: f32[1,64], index: 17, kind: input, shape index: {}]   ;;  %s6729_s18 = inlined_call_operand.hbm [shape: bf16[64,64], index: 18, kind: input, shape index: {}]   ;;  %s6730_s19 = inlined_call_operand.hbm [shape: f32[1,64], index: 19, kind: input, shape index: {}]   ;;  %s6731_s20 = inlined_call_operand.vmem [shape: bf16[128,128], index: 20, kind: input, shape index: {}]   ;;  %s6732_s21 = inlined_call_operand.hbm [shape: f32[1,128], index: 21, kind: input, shape index: {}]   ;;  %s6733_s22 = inlined_call_operand.vmem [shape: f32[2,128], index: 22, kind: output, shape index: {}]  }
   0x1   :  { %6738 = sst [smem:[#allocation28_spill]] %s6711_s0 }
   0x2   :  { %6739 = sst [smem:[#allocation29_spill]] %s6712_s1 }
   0x3   :  { %6740 = sst [smem:[#allocation30_spill]] %s6713_s2 }
   0x4   :  { %6741 = sst [smem:[#allocation31_spill]] %s6714_s3 }
   0x5   :  { %6742 = sst [smem:[#allocation32_spill]] %s6715_s4 }
   0x6   :  { %6743 = sst [smem:[#allocation33_spill]] %s6716_s5 }
   0x7   :  { %6744 = sst [smem:[#allocation34_spill]] %s6717_s6 }
   0x8   :  { %27 = vsyncpa [#allocation3], 0 }
   0x9   :  { %28 = vsyncpa [#allocation5], 0 }
   0xa   :  { %29 = vsyncpa [#allocation8], 0 }
   0xb   :  { %30 = vsyncpa [#allocation11], 0 }
   0xc   :  { %31 = vsyncpa [#allocation14], 0 }
   0xd   :  { %32 = vsyncpa [#allocation17], 0 }
   0xe   :  { %33 = vsyncpa [#allocation20], 0  ;;  %s5067_s3 = smov [#allocation4]   ;;  %s5068_s29 = smov [#allocation7]  }
   0xf   :  { %s60_s28 = sshll.u32 %s5067_s3, 4  ;;  %s86_s30 = sshll.u32 %s5068_s29, 4  ;;  %s61_s28 = int_to_ptr.vmem [resolvable:$true] %s60_s28  ;;  %s87_s30 = int_to_ptr.vmem [resolvable:$true] %s86_s30 }
  0x10   :  { %s6745_s23 = sld [smem:[#allocation34_spill]] }
  0x16   :  { %s4789_s1 = scalar_lea.hbm %s6745_s23, 32 }
  0x17   :  { %p4790_p0 = scmp.ne.s32.totalorder %s6745_s23, %s4789_s1  ;;  %p4793_p1 = scmp.lt.u32.totalorder %s4789_s1, %s6745_s23 }
  0x19   :  { %p4795_p2 = pnand %p4793_p1, %p4790_p0 }
  0x1b   :  { %4798 = shalt.err (!%p4795_p2)
}
  0x1c   :  { %s4799_s26 = scalar_lea.vmem %s61_s28, 32  ;;  %p4804_p4 = scmp.lt.s32.totalorder %s61_s28, %s61_s28 }
  0x1d   :  { %p4800_p3 = scmp.ne.s32.totalorder %s61_s28, %s4799_s26  ;;  %p4805_p5 = scmp.lt.s32.totalorder %s4799_s26, %s4799_s26 }
  0x1f   :  { %p4806_p6 = por %p4805_p5, %p4804_p4 }
  0x21   :  { %p4807_p7 = pnand %p4806_p6, %p4800_p3 }
  0x23   :  { %4810 = shalt.err (!%p4807_p7)
}
  0x24   :  { %63 = dma.hbm_to_vmem [thread:$0]  %s6745_s23, 32, %s61_s28, [#allocation5]  }
  0x25   :  { %s4811_s4 = scalar_lea.hbm %s6722_s11, 16 }
  0x26   :  { %p4812_p8 = scmp.ne.s32.totalorder %s6722_s11, %s4811_s4  ;;  %p4815_p9 = scmp.lt.u32.totalorder %s4811_s4, %s6722_s11 }
  0x28   :  { %p4817_p10 = pnand %p4815_p9, %p4812_p8 }
  0x2a   :  { %4820 = shalt.err (!%p4817_p10)
}
  0x2b   :  { %s4821_s6 = scalar_lea.vmem %s87_s30, 16  ;;  %s4825_s25 = scalar_lea.vmem %s87_s30, 32 }
  0x2c   :  { %p4822_p11 = scmp.ne.s32.totalorder %s87_s30, %s4821_s6  ;;  %p4826_p12 = scmp.lt.s32.totalorder %s87_s30, %s87_s30 }
  0x2d   :  { %p4827_p13 = scmp.lt.s32.totalorder %s4825_s25, %s4821_s6 }
  0x2f   :  { %p4828_p0 = por %p4827_p13, %p4826_p12 }
  0x31   :  { %p4829_p1 = pnand %p4828_p0, %p4822_p11 }
  0x33   :  { %4832 = shalt.err (!%p4829_p1)
}
  0x34   :  { %89 = dma.hbm_to_vmem [thread:$0]  %s6722_s11, 16, %s87_s30, [#allocation8]  }
  0x35   :  { %s5069_s26 = smov [#allocation10]   ;;  %s5070_s27 = smov [#allocation13]  }
  0x36   :  { %s108_s2 = sshll.u32 %s5069_s26, 4  ;;  %s130_s3 = sshll.u32 %s5070_s27, 4  ;;  %s109_s2 = int_to_ptr.vmem [resolvable:$true] %s108_s2  ;;  %s131_s3 = int_to_ptr.vmem [resolvable:$true] %s130_s3 }
  0x37   :  { %s4833_s0 = scalar_lea.hbm %s6724_s13, 16 }
  0x38   :  { %p4834_p2 = scmp.ne.s32.totalorder %s6724_s13, %s4833_s0  ;;  %p4837_p3 = scmp.lt.u32.totalorder %s4833_s0, %s6724_s13 }
  0x3a   :  { %p4839_p4 = pnand %p4837_p3, %p4834_p2 }
  0x3c   :  { %4842 = shalt.err (!%p4839_p4)
}
  0x3d   :  { %s4843_s11 = scalar_lea.vmem %s109_s2, 16  ;;  %s4847_s30 = scalar_lea.vmem %s109_s2, 32 }
  0x3e   :  { %p4844_p5 = scmp.ne.s32.totalorder %s109_s2, %s4843_s11  ;;  %p4848_p6 = scmp.lt.s32.totalorder %s109_s2, %s109_s2 }
  0x3f   :  { %p4849_p7 = scmp.lt.s32.totalorder %s4847_s30, %s4843_s11 }
  0x41   :  { %p4850_p8 = por %p4849_p7, %p4848_p6 }
  0x43   :  { %p4851_p9 = pnand %p4850_p8, %p4844_p5 }
  0x45   :  { %4854 = shalt.err (!%p4851_p9)
}
  0x46   :  { %111 = dma.hbm_to_vmem [thread:$0]  %s6724_s13, 16, %s109_s2, [#allocation11]  }
  0x47   :  { %s4855_s27 = scalar_lea.hbm %s6727_s16, 32 }
  0x48   :  { %p4856_p10 = scmp.ne.s32.totalorder %s6727_s16, %s4855_s27  ;;  %p4859_p11 = scmp.lt.u32.totalorder %s4855_s27, %s6727_s16 }
  0x4a   :  { %p4861_p12 = pnand %p4859_p11, %p4856_p10 }
  0x4c   :  { %4864 = shalt.err (!%p4861_p12)
}
  0x4d   :  { %s4865_s1 = scalar_lea.vmem %s131_s3, 32  ;;  %p4870_p0 = scmp.lt.s32.totalorder %s131_s3, %s131_s3 }
  0x4e   :  { %p4866_p13 = scmp.ne.s32.totalorder %s131_s3, %s4865_s1  ;;  %p4871_p1 = scmp.lt.s32.totalorder %s4865_s1, %s4865_s1 }
  0x50   :  { %p4872_p2 = por %p4871_p1, %p4870_p0 }
  0x52   :  { %p4873_p3 = pnand %p4872_p2, %p4866_p13 }
  0x54   :  { %4876 = shalt.err (!%p4873_p3)
}
  0x55   :  { %133 = dma.hbm_to_vmem [thread:$0]  %s6727_s16, 32, %s131_s3, [#allocation14]  }
  0x56   :  { %s5071_s24 = smov [#allocation16]   ;;  %s5072_s11 = smov [#allocation2]  }
  0x57   :  { %s149_s6 = sshll.u32 %s5071_s24, 4  ;;  %s40_s30 = sshll.u32 %s5072_s11, 4  ;;  %s150_s6 = int_to_ptr.vmem [resolvable:$true] %s149_s6  ;;  %s41_s30 = int_to_ptr.vmem [resolvable:$true] %s40_s30 }
  0x58   :  { %s4877_s23 = scalar_lea.hbm %s6729_s18, 512 }
  0x59   :  { %p4878_p4 = scmp.ne.s32.totalorder %s6729_s18, %s4877_s23  ;;  %p4881_p5 = scmp.lt.u32.totalorder %s4877_s23, %s6729_s18 }
  0x5b   :  { %p4883_p6 = pnand %p4881_p5, %p4878_p4 }
  0x5d   :  { %4886 = shalt.err (!%p4883_p6)
}
  0x5e   :  { %s4887_s16 = scalar_lea.vmem %s150_s6, 512  ;;  %p4892_p8 = scmp.lt.s32.totalorder %s150_s6, %s150_s6 }
  0x5f   :  { %p4888_p7 = scmp.ne.s32.totalorder %s150_s6, %s4887_s16  ;;  %p4893_p9 = scmp.lt.s32.totalorder %s4887_s16, %s4887_s16 }
  0x61   :  { %p4894_p10 = por %p4893_p9, %p4892_p8 }
  0x63   :  { %p4895_p11 = pnand %p4894_p10, %p4888_p7 }
  0x65   :  { %4898 = shalt.err (!%p4895_p11)
}
  0x66   :  { %s5073_s3 = smov 64   ;;  %s5074_s0 = smov 4  }
  0x67   :  { %155 = dma.hbm_to_vmem [thread:$0]  %s6729_s18, 512, %s150_s6, [#allocation17], %s5073_s3, %s5073_s3, %s5074_s0  }
  0x68   :  { %s6746_s24 = sld [smem:[#allocation28_spill]] }
  0x6e   :  { %s4899_s11 = scalar_lea.hbm %s6746_s24, 32 }
  0x6f   :  { %p4900_p12 = scmp.ne.s32.totalorder %s6746_s24, %s4899_s11  ;;  %p4903_p13 = scmp.lt.u32.totalorder %s4899_s11, %s6746_s24 }
  0x71   :  { %p4905_p0 = pnand %p4903_p13, %p4900_p12 }
  0x73   :  { %4908 = shalt.err (!%p4905_p0)
}
  0x74   :  { %s4909_s27 = scalar_lea.vmem %s41_s30, 32  ;;  %p4914_p2 = scmp.lt.s32.totalorder %s41_s30, %s41_s30 }
  0x75   :  { %p4910_p1 = scmp.ne.s32.totalorder %s41_s30, %s4909_s27  ;;  %p4915_p3 = scmp.lt.s32.totalorder %s4909_s27, %s4909_s27 }
  0x77   :  { %p4916_p4 = por %p4915_p3, %p4914_p2 }
  0x79   :  { %p4917_p5 = pnand %p4916_p4, %p4910_p1 }
  0x7b   :  { %4920 = shalt.err (!%p4917_p5)
}
  0x7c   :  { %43 = dma.hbm_to_vmem [thread:$0]  %s6746_s24, 32, %s41_s30, [#allocation3]  }
  0x7d   :  { %s5075_s29 = smov [#allocation6]   ;;  %s5076_s16 = smov [#allocation9]  }
  0x7e   :  { %s74_s4 = sshll.u32 %s5075_s29, 4  ;;  %s95_s5 = sshll.u32 %s5076_s16, 4  ;;  %s75_s4 = int_to_ptr.vmem [resolvable:$true] %s74_s4  ;;  %s5276_s5 = int_to_ptr.vmem [resolvable:$true] %s95_s5 }
  0x7f   :  { %s4921_s2 = scalar_lea.hbm %s6720_s9, 16 }
  0x80   :  { %p4922_p6 = scmp.ne.s32.totalorder %s6720_s9, %s4921_s2  ;;  %p4925_p7 = scmp.lt.u32.totalorder %s4921_s2, %s6720_s9 }
  0x82   :  { %p4927_p8 = pnand %p4925_p7, %p4922_p6 }
  0x84   :  { %4930 = shalt.err (!%p4927_p8)
}
  0x85   :  { %s4931_s30 = scalar_lea.vmem %s75_s4, 16  ;;  %s4935_s24 = scalar_lea.vmem %s75_s4, 32 }
  0x86   :  { %p4932_p9 = scmp.ne.s32.totalorder %s75_s4, %s4931_s30  ;;  %p4936_p10 = scmp.lt.s32.totalorder %s75_s4, %s75_s4 }
  0x87   :  { %p4937_p11 = scmp.lt.s32.totalorder %s4935_s24, %s4931_s30 }
  0x89   :  { %p4938_p12 = por %p4937_p11, %p4936_p10 }
  0x8b   :  { %p4939_p13 = pnand %p4938_p12, %p4932_p9 }
  0x8d   :  { %4942 = shalt.err (!%p4939_p13)
}
  0x8e   :  { %77 = dma.hbm_to_vmem [thread:$0]  %s6720_s9, 16, %s75_s4, [#allocation5]  }
  0x8f   :  { %s4943_s29 = scalar_lea.hbm %s6723_s12, 512 }
  0x90   :  { %p4944_p0 = scmp.ne.s32.totalorder %s6723_s12, %s4943_s29  ;;  %p4947_p1 = scmp.lt.u32.totalorder %s4943_s29, %s6723_s12 }
  0x92   :  { %p4949_p2 = pnand %p4947_p1, %p4944_p0 }
  0x94   :  { %4952 = shalt.err (!%p4949_p2)
}
  0x95   :  { %s4953_s11 = scalar_lea.vmem %s5276_s5, 512  ;;  %p4958_p4 = scmp.lt.s32.totalorder %s5276_s5, %s5276_s5 }
  0x96   :  { %p4954_p3 = scmp.ne.s32.totalorder %s5276_s5, %s4953_s11  ;;  %p4959_p5 = scmp.lt.s32.totalorder %s4953_s11, %s4953_s11 }
  0x98   :  { %p4960_p6 = por %p4959_p5, %p4958_p4 }
  0x9a   :  { %p4961_p7 = pnand %p4960_p6, %p4954_p3 }
  0x9c   :  { %4964 = shalt.err (!%p4961_p7)
}
  0x9d   :  { %101 = dma.hbm_to_vmem [thread:$0]  %s6723_s12, 512, %s5276_s5, [#allocation8], %s5073_s3, %s5073_s3, %s5074_s0  }
  0x9e   :  { %s5077_s25 = smov [#allocation12]   ;;  %s5078_s23 = smov [#allocation15]  }
  0x9f   :  { %s120_s28 = sshll.u32 %s5077_s25, 4  ;;  %s140_s30 = sshll.u32 %s5078_s23, 4  ;;  %s121_s28 = int_to_ptr.vmem [resolvable:$true] %s120_s28  ;;  %s141_s30 = int_to_ptr.vmem [resolvable:$true] %s140_s30 }
  0xa0   :  { %s4965_s27 = scalar_lea.hbm %s6726_s15, 16 }
  0xa1   :  { %p4966_p8 = scmp.ne.s32.totalorder %s6726_s15, %s4965_s27  ;;  %p4969_p9 = scmp.lt.u32.totalorder %s4965_s27, %s6726_s15 }
  0xa3   :  { %p4971_p10 = pnand %p4969_p9, %p4966_p8 }
  0xa5   :  { %4974 = shalt.err (!%p4971_p10)
}
  0xa6   :  { %s4975_s12 = scalar_lea.vmem %s121_s28, 16  ;;  %s4979_s5 = scalar_lea.vmem %s121_s28, 32 }
  0xa7   :  { %p4976_p11 = scmp.ne.s32.totalorder %s121_s28, %s4975_s12  ;;  %p4980_p12 = scmp.lt.s32.totalorder %s121_s28, %s121_s28 }
  0xa8   :  { %p4981_p13 = scmp.lt.s32.totalorder %s4979_s5, %s4975_s12 }
  0xaa   :  { %p4982_p0 = por %p4981_p13, %p4980_p12 }
  0xac   :  { %p4983_p1 = pnand %p4982_p0, %p4976_p11 }
  0xae   :  { %4986 = shalt.err (!%p4983_p1)
}
  0xaf   :  { %123 = dma.hbm_to_vmem [thread:$0]  %s6726_s15, 16, %s121_s28, [#allocation11]  }
  0xb0   :  { %s4987_s9 = scalar_lea.hbm %s6728_s17, 16 }
  0xb1   :  { %p4988_p2 = scmp.ne.s32.totalorder %s6728_s17, %s4987_s9  ;;  %p4991_p3 = scmp.lt.u32.totalorder %s4987_s9, %s6728_s17 }
  0xb3   :  { %p4993_p4 = pnand %p4991_p3, %p4988_p2 }
  0xb5   :  { %4996 = shalt.err (!%p4993_p4)
}
  0xb6   :  { %s4997_s26 = scalar_lea.vmem %s141_s30, 16  ;;  %s5001_s27 = scalar_lea.vmem %s141_s30, 32 }
  0xb7   :  { %p4998_p5 = scmp.ne.s32.totalorder %s141_s30, %s4997_s26  ;;  %p5002_p6 = scmp.lt.s32.totalorder %s141_s30, %s141_s30 }
  0xb8   :  { %p5003_p7 = scmp.lt.s32.totalorder %s5001_s27, %s4997_s26 }
  0xba   :  { %p5004_p8 = por %p5003_p7, %p5002_p6 }
  0xbc   :  { %p5005_p9 = pnand %p5004_p8, %p4998_p5 }
  0xbe   :  { %5008 = shalt.err (!%p5005_p9)
}
  0xbf   :  { %143 = dma.hbm_to_vmem [thread:$0]  %s6728_s17, 16, %s141_s30, [#allocation14]  }
  0xc0   :  { %s5079_s18 = smov [#allocation18]   ;;  %s5080_s29 = smov [#allocation19]  }
  0xc1   :  { %s162_s6 = sshll.u32 %s5079_s18, 4  ;;  %s174_s16 = sshll.u32 %s5080_s29, 4  ;;  %s163_s6 = int_to_ptr.vmem [resolvable:$true] %s162_s6  ;;  %s175_s16 = int_to_ptr.vmem [resolvable:$true] %s174_s16 }
  0xc2   :  { %s5009_s1 = scalar_lea.hbm %s6730_s19, 16 }
  0xc3   :  { %p5010_p10 = scmp.ne.s32.totalorder %s6730_s19, %s5009_s1  ;;  %p5013_p11 = scmp.lt.u32.totalorder %s5009_s1, %s6730_s19 }
  0xc5   :  { %p5015_p12 = pnand %p5013_p11, %p5010_p10 }
  0xc7   :  { %5018 = shalt.err (!%p5015_p12)
}
  0xc8   :  { %s5019_s17 = scalar_lea.vmem %s163_s6, 16  ;;  %s5023_s30 = scalar_lea.vmem %s163_s6, 32 }
  0xc9   :  { %p5020_p13 = scmp.ne.s32.totalorder %s163_s6, %s5019_s17  ;;  %p5024_p0 = scmp.lt.s32.totalorder %s163_s6, %s163_s6 }
  0xca   :  { %p5025_p1 = scmp.lt.s32.totalorder %s5023_s30, %s5019_s17 }
  0xcc   :  { %p5026_p2 = por %p5025_p1, %p5024_p0 }
  0xce   :  { %p5027_p3 = pnand %p5026_p2, %p5020_p13 }
  0xd0   :  { %5030 = shalt.err (!%p5027_p3)
}
  0xd1   :  { %165 = dma.hbm_to_vmem [thread:$0]  %s6730_s19, 16, %s163_s6, [#allocation17]  }
  0xd2   :  { %s5031_s26 = scalar_lea.hbm %s6732_s21, 16 }
  0xd3   :  { %p5032_p4 = scmp.ne.s32.totalorder %s6732_s21, %s5031_s26  ;;  %p5035_p5 = scmp.lt.u32.totalorder %s5031_s26, %s6732_s21 }
  0xd5   :  { %p5037_p6 = pnand %p5035_p5, %p5032_p4 }
  0xd7   :  { %5040 = shalt.err (!%p5037_p6)
}
  0xd8   :  { %s5041_s29 = scalar_lea.vmem %s175_s16, 16  ;;  %s5045_s12 = scalar_lea.vmem %s175_s16, 32 }
  0xd9   :  { %p5042_p7 = scmp.ne.s32.totalorder %s175_s16, %s5041_s29  ;;  %p5046_p8 = scmp.lt.s32.totalorder %s175_s16, %s175_s16 }
  0xda   :  { %p5047_p9 = scmp.lt.s32.totalorder %s5045_s12, %s5041_s29 }
  0xdc   :  { %p5048_p10 = por %p5047_p9, %p5046_p8 }
  0xde   :  { %p5049_p11 = pnand %p5048_p10, %p5042_p7 }
  0xe0   :  { %5052 = shalt.err (!%p5049_p11)
}
  0xe1   :  { %177 = dma.hbm_to_vmem [thread:$0]  %s6732_s21, 16, %s175_s16, [#allocation20]  }
  0xe2   :  { %5053 = dma.done.wait [#allocation3], 32  }
  0xe3   :  { %5054 = vsyncadd [#allocation3], 4294967264 }
  0xe4   :  { %5055 = dma.done.wait [#allocation5], 48  }
  0xe5   :  { %5056 = vsyncadd [#allocation5], 4294967248 }
  0xe6   :  { %5057 = dma.done.wait [#allocation8], 528  }
  0xe7   :  { %5058 = vsyncadd [#allocation8], 4294966768 }
  0xe8   :  { %5059 = dma.done.wait [#allocation11], 32  }
  0xe9   :  { %5060 = vsyncadd [#allocation11], 4294967264 }
  0xea   :  { %5061 = dma.done.wait [#allocation14], 48  }
  0xeb   :  { %5062 = vsyncadd [#allocation14], 4294967248 }
  0xec   :  { %5063 = dma.done.wait [#allocation17], 528  }
  0xed   :  { %5064 = vsyncadd [#allocation17], 4294966768 }
  0xee   :  { %5065 = dma.done.wait [#allocation20], 16  }
  0xef   :  { %5066 = vsyncadd [#allocation20], 4294967280  ;;  %v242_v0 = vlaneseq  ;;  %v5081_v1 = vmov 1983009808   ;;  %v5082_v3 = vmov 0   ;;  %s6747_s5 = sld [smem:[#allocation31_spill]] }
  0xf0   :  { %v325_v2 = vunpack.c.l.s4 %v5081_v1  ;;  %422 = vmatprep.mubr.bf16.mxu0 %v5082_v3  ;;  %575 = vmatprep.mubr.bf16.mxu1 %v5082_v3  ;;  %vm377_vm0 = vcmask 1041408   ;;  %s6748_s2 = sld [smem:[#allocation32_spill]]  ;;  %s6749_s17 = sld [smem:[#allocation29_spill]]  ;;  %vm340_vm1 = vcmask 31744   ;;  %vm5084_vm2 = vmmov 0  }
  0xf1   :  { %v5360_v4 = vshrl.u32 %v242_v0, 7  ;;  %s6750_s4 = sld [smem:[#allocation33_spill]]  ;;  %vm2771_vm3 = vcmask 523264   ;;  %s6751_s27 = sld [smem:[#allocation30_spill]]  ;;  %vm3248_vm4 = vcmask 123904   ;;  %vm3318_vm5 = vcmask 15360  }
  0xf2   :  { %v326_v5 = vunpack.c.0.s8 %v325_v2  ;;  %vm3265_vm6 = vcmask 130048  }
  0xf3   :  { %v244_v59 = vsub.s32 0, %v5360_v4  ;;  %v248_v61 = vsub.s32 1, %v5360_v4  ;;  %v256_v62 = vsub.s32 3, %v5360_v4 }
  0xf4   :  { %v329_v6 = vsub.s32 %v326_v5, %v5360_v4 }
  0xf5   :  { %v239_v7 = vld [vmem:[%s6747_s5] sm:$0xff] }
  0xf6   :  { %v330_v8 = vrot.slane %v239_v7, %v329_v6  ;;  %v323_v9 = vcombine.high %v239_v7, %v239_v7  ;;  %v5370_v13 = vld [vmem:[%s6748_s2 + $0x4] ss:$16 sps:$4 sm:$0xff]   ;;  %v5380_v17 = vld [vmem:[%s6748_s2 + $0xc] ss:$16 sps:$4 sm:$0xff]   ;;  %v5385_v18 = vld [vmem:[%s6748_s2] ss:$16 sps:$4 sm:$0xff]  }
  0xf7   :  { %v4197_v16 = vld [vmem:[%s6749_s17] sm:$0xff]   ;;  %v5397_v20 = vld [vmem:[%s6748_s2 + $0x8] ss:$16 sps:$4 sm:$0xff]   ;;  %v5404_v21 = vld [vmem:[%s6748_s2 + $0x2c] ss:$16 sps:$4 sm:$0xff]  }
  0xf8   :  { %v338_v10 = vcombine.high %v330_v8, %v330_v8  ;;  %v379_v11 = vsel %vm377_vm0, %v330_v8, 0  ;;  %v337_v12 = vrot.slane %v323_v9, %v329_v6  ;;  %v5392_v19 = vld [vmem:[%s6748_s2 + $0x24] ss:$16 sps:$4 sm:$0xff]   ;;  %v5411_v22 = vld [vmem:[%s6748_s2 + $0x20] ss:$16 sps:$4 sm:$0xff]   ;;  %v4204_v25 = vld [vmem:[%s6749_s17 + $0x8] sm:$0xff]  }
  0xf9   :  { %v5418_v23 = vld [vmem:[%s6748_s2 + $0x44] ss:$16 sps:$4 sm:$0xff]   ;;  %v5425_v24 = vld [vmem:[%s6748_s2 + $0x28] ss:$16 sps:$4 sm:$0xff]   ;;  %v5434_v26 = vld [vmem:[%s6748_s2 + $0x4c] ss:$16 sps:$4 sm:$0xff]  }
  0xfa   :  { %3601 = vmatprep.subr.msk.bf16.mxu0 %vm377_vm0, %v338_v10  ;;  %v339_v14 = vcombine.high %v337_v12, %v337_v12  ;;  %v385_v15 = vsel %vm377_vm0, %v337_v12, 0  ;;  %v5440_v27 = vld [vmem:[%s6748_s2 + $0x40] ss:$16 sps:$4 sm:$0xff]   ;;  %v5446_v28 = vld [vmem:[%s6748_s2 + $0x64] ss:$16 sps:$4 sm:$0xff]   ;;  %v4212_v41 = vld [vmem:[%s6749_s17 + $0x18] sm:$0xff]  }
  0xfb   :  { %391 = vmatpush1.bf16.msra.mxu0 %v379_v11  ;;  %v5452_v29 = vld [vmem:[%s6748_s2 + $0x48] ss:$16 sps:$4 sm:$0xff]   ;;  %v5459_v30 = vld [vmem:[%s6748_s2 + $0x6c] ss:$16 sps:$4 sm:$0xff]   ;;  %v5466_v31 = vld [vmem:[%s6748_s2 + $0x60] ss:$16 sps:$4 sm:$0xff]  }
  0xfc   :  { %3614 = vmatprep.subr.msk.bf16.mxu1 %vm377_vm0, %v339_v14  ;;  %888 = vmatprep.subr.bf16.mxu0 %v5370_v13  ;;  %v4208_v32 = vld [vmem:[%s6749_s17 + $0x10] sm:$0xff]   ;;  %v5483_v34 = vld [vmem:[%s6748_s2 + $0x68] ss:$16 sps:$4 sm:$0xff]   ;;  %v5489_v35 = vld [vmem:[%s6748_s2 + $0x8c] ss:$16 sps:$4 sm:$0xff]  }
  0xfd   :  { %544 = vmatpush1.bf16.msra.mxu1 %v385_v15  ;;  %v5476_v33 = vld [vmem:[%s6748_s2 + $0x84] ss:$16 sps:$4 sm:$0xff]   ;;  %v5495_v36 = vld [vmem:[%s6748_s2 + $0x80] ss:$16 sps:$4 sm:$0xff]   ;;  %v5502_v37 = vld [vmem:[%s6748_s2 + $0x88] ss:$16 sps:$4 sm:$0xff]  }
  0xfe   :  { %3602 = vmatmul.mubr.msk.bf16.vlgmr.msra.gmra.mrb[0].mxu0 %vm340_vm1, %v4197_v16  ;;  %931 = vmatprep.subr.bf16.mxu1 %v5380_v17  ;;  %v5507_v38 = vld [vmem:[%s6748_s2 + $0xa4] ss:$16 sps:$4 sm:$0xff]   ;;  %v5514_v39 = vld [vmem:[%s6748_s2 + $0xac] ss:$16 sps:$4 sm:$0xff]   ;;  %v5521_v40 = vld [vmem:[%s6748_s2 + $0xa0] ss:$16 sps:$4 sm:$0xff]  }
  0xff   :  { %432 = vmatprep.mubr.bf16.mxu0 %v5082_v3  ;;  %889 = vmatpush1.bf16.msra.mxu0 %v5385_v18  ;;  %v5531_v42 = vld [vmem:[%s6748_s2 + $0xc4] ss:$16 sps:$4 sm:$0xff]   ;;  %v5538_v43 = vld [vmem:[%s6748_s2 + $0xa8] ss:$16 sps:$4 sm:$0xff]   ;;  %v5544_v44 = vld [vmem:[%s6748_s2 + $0xcc] ss:$16 sps:$4 sm:$0xff]  }
 0x100   :  { %3615 = vmatmul.mubr.msk.bf16.vlgmr.msra.gmra.mrb[0].mxu1 %vm340_vm1, %v4197_v16  ;;  %890 = vmatprep.subr.bf16.mxu0 %v5392_v19  ;;  %v5550_v45 = vld [vmem:[%s6748_s2 + $0xc8] ss:$16 sps:$4 sm:$0xff]   ;;  %v5555_v46 = vld [vmem:[%s6748_s2 + $0xc0] ss:$16 sps:$4 sm:$0xff]   ;;  %v5561_v47 = vld [vmem:[%s6748_s2 + $0xec] ss:$16 sps:$4 sm:$0xff]  }
 0x101   :  { %932 = vmatpush1.bf16.msra.mxu1 %v5397_v20  ;;  %585 = vmatprep.mubr.bf16.mxu1 %v5082_v3  ;;  %v5567_v48 = vld [vmem:[%s6748_s2 + $0xe4] ss:$16 sps:$4 sm:$0xff]   ;;  %v5572_v49 = vld [vmem:[%s6748_s2 + $0xe0] ss:$16 sps:$4 sm:$0xff]   ;;  %v5581_v50 = vld [vmem:[%s6748_s2 + $0xe8] ss:$16 sps:$4 sm:$0xff]  }
 0x102   :  { %933 = vmatprep.subr.bf16.mxu1 %v5404_v21  ;;  %v4219_v51 = vld [vmem:[%s6749_s17 + $0x20] sm:$0xff]   ;;  %v4223_v52 = vld [vmem:[%s6749_s17 + $0x28] sm:$0xff]   ;;  %v4227_v53 = vld [vmem:[%s6749_s17 + $0x30] sm:$0xff]  }
 0x103   :  { %891 = vmatpush1.bf16.msra.mxu0 %v5411_v22  ;;  %v4234_v54 = vld [vmem:[%s6749_s17 + $0x38] sm:$0xff]   ;;  %v4238_v55 = vld [vmem:[%s6749_s17 + $0x40] sm:$0xff]   ;;  %v4242_v56 = vld [vmem:[%s6749_s17 + $0x48] sm:$0xff]  }
 0x104   :  { %892 = vmatprep.subr.bf16.mxu0 %v5418_v23  ;;  %v4249_v57 = vld [vmem:[%s6749_s17 + $0x50] sm:$0xff]   ;;  %v4253_v58 = vld [vmem:[%s6749_s17 + $0x58] sm:$0xff]   ;;  %v240_v60 = vld [vmem:[%s6750_s4] sm:$0xf] }
 0x105   :  { %934 = vmatpush1.bf16.msra.mxu1 %v5425_v24  ;;  %v5690_v63 = vrot.slane %v240_v60, %v244_v59  ;;  %v5692_v0 = vrot.slane %v240_v60, %v248_v61  ;;  %v5694_v1 = vrot.slane %v240_v60, %v256_v62 }
 0x106   :  { %3603 = vmatmul.mubr.msk.bf16.gmra.mrb[4].mxu0 %vm340_vm1, %v4204_v25  ;;  %935 = vmatprep.subr.bf16.mxu1 %v5434_v26 }
 0x107   :  { %442 = vmatprep.mubr.bf16.mxu0 %v5082_v3  ;;  %893 = vmatpush1.bf16.msra.mxu0 %v5440_v27 }
 0x108   :  { %3616 = vmatmul.mubr.msk.bf16.gmra.mrb[4].mxu1 %vm340_vm1, %v4204_v25  ;;  %894 = vmatprep.subr.bf16.mxu0 %v5446_v28 }
 0x109   :  { %595 = vmatprep.mubr.bf16.mxu1 %v5082_v3  ;;  %936 = vmatpush1.bf16.msra.mxu1 %v5452_v29 }
 0x10a   :  { %937 = vmatprep.subr.bf16.mxu1 %v5459_v30 }
 0x10b   :  { %895 = vmatpush1.bf16.msra.mxu0 %v5466_v31 }
 0x10c   :  { %896 = vmatprep.subr.bf16.mxu0 %v5476_v33 }
 0x10d   :  { %938 = vmatpush1.bf16.msra.mxu1 %v5483_v34 }
 0x10e   :  { %3604 = vmatmul.mubr.msk.bf16.gmra.mrb[8].mxu0 %vm340_vm1, %v4208_v32  ;;  %939 = vmatprep.subr.bf16.mxu1 %v5489_v35 }
 0x10f   :  { %452 = vmatprep.mubr.bf16.mxu0 %v5082_v3  ;;  %897 = vmatpush1.bf16.msra.mxu0 %v5495_v36 }
 0x110   :  { %3617 = vmatmul.mubr.msk.bf16.gmra.mrb[8].mxu1 %vm340_vm1, %v4208_v32  ;;  %898 = vmatprep.subr.bf16.mxu0 %v5507_v38 }
 0x111   :  { %605 = vmatprep.mubr.bf16.mxu1 %v5082_v3  ;;  %940 = vmatpush1.bf16.msra.mxu1 %v5502_v37 }
 0x112   :  { %941 = vmatprep.subr.bf16.mxu1 %v5514_v39 }
 0x113   :  { %899 = vmatpush1.bf16.msra.mxu0 %v5521_v40 }
 0x114   :  { %900 = vmatprep.subr.bf16.mxu0 %v5531_v42 }
 0x115   :  { %942 = vmatpush1.bf16.msra.mxu1 %v5538_v43 }
 0x116   :  { %3605 = vmatmul.mubr.msk.bf16.gmra.mrb[12].mxu0 %vm340_vm1, %v4212_v41  ;;  %943 = vmatprep.subr.bf16.mxu1 %v5544_v44 }
 0x117   :  { %462 = vmatprep.mubr.bf16.mxu0 %v5082_v3  ;;  %901 = vmatpush1.bf16.msra.mxu0 %v5555_v46 }
 0x118   :  { %3618 = vmatmul.mubr.msk.bf16.gmra.mrb[12].mxu1 %vm340_vm1, %v4212_v41  ;;  %902 = vmatprep.subr.bf16.mxu0 %v5567_v48  ;;  %v252_v41 = vsub.s32 2, %v5360_v4 }
 0x119   :  { %615 = vmatprep.mubr.bf16.mxu1 %v5082_v3  ;;  %944 = vmatpush1.bf16.msra.mxu1 %v5550_v45 }
 0x11a   :  { %945 = vmatprep.subr.bf16.mxu1 %v5561_v47 }
 0x11b   :  { %903 = vmatpush1.bf16.msra.mxu0 %v5572_v49 }
 0x11c   :  { %1045 = vmatprep.subr.bf16.mxu0 %v5370_v13 }
 0x11d   :  { %946 = vmatpush1.bf16.msra.mxu1 %v5581_v50 }
 0x11e   :  { %3606 = vmatmul.mubr.msk.bf16.gmra.mrb[16].mxu0 %vm340_vm1, %v4219_v51  ;;  %1088 = vmatprep.subr.bf16.mxu1 %v5380_v17 }
 0x11f   :  { %472 = vmatprep.mubr.bf16.mxu0 %v5082_v3 }
 0x120   :  { %3619 = vmatmul.mubr.msk.bf16.gmra.mrb[16].mxu1 %vm340_vm1, %v4219_v51 }
 0x121   :  { %625 = vmatprep.mubr.bf16.mxu1 %v5082_v3 }
 0x126   :  { %3607 = vmatmul.mubr.msk.bf16.gmra.mrb[20].mxu0 %vm340_vm1, %v4223_v52 }
 0x127   :  { %482 = vmatprep.mubr.bf16.mxu0 %v5082_v3 }
 0x128   :  { %3620 = vmatmul.mubr.msk.bf16.gmra.mrb[20].mxu1 %vm340_vm1, %v4223_v52 }
 0x129   :  { %635 = vmatprep.mubr.bf16.mxu1 %v5082_v3 }
 0x12e   :  { %3608 = vmatmul.mubr.msk.bf16.gmra.mrb[24].mxu0 %vm340_vm1, %v4227_v53 }
 0x12f   :  { %492 = vmatprep.mubr.bf16.mxu0 %v5082_v3 }
 0x130   :  { %3621 = vmatmul.mubr.msk.bf16.gmra.mrb[24].mxu1 %vm340_vm1, %v4227_v53 }
 0x131   :  { %645 = vmatprep.mubr.bf16.mxu1 %v5082_v3 }
 0x136   :  { %3609 = vmatmul.mubr.msk.bf16.gmra.mrb[28].mxu0 %vm340_vm1, %v4234_v54 }
 0x137   :  { %502 = vmatprep.mubr.bf16.mxu0 %v5082_v3 }
 0x138   :  { %3622 = vmatmul.mubr.msk.bf16.gmra.mrb[28].mxu1 %vm340_vm1, %v4234_v54 }
 0x139   :  { %655 = vmatprep.mubr.bf16.mxu1 %v5082_v3 }
 0x13e   :  { %3610 = vmatmul.mubr.msk.bf16.gmra.mrb[32].mxu0 %vm340_vm1, %v4238_v55 }
 0x13f   :  { %512 = vmatprep.mubr.bf16.mxu0 %v5082_v3 }
 0x140   :  { %3623 = vmatmul.mubr.msk.bf16.gmra.mrb[32].mxu1 %vm340_vm1, %v4238_v55 }
 0x141   :  { %665 = vmatprep.mubr.bf16.mxu1 %v5082_v3 }
 0x146   :  { %3611 = vmatmul.mubr.msk.bf16.gmra.mrb[36].mxu0 %vm340_vm1, %v4242_v56 }
 0x147   :  { %522 = vmatprep.mubr.bf16.mxu0 %v5082_v3 }
 0x148   :  { %3624 = vmatmul.mubr.msk.bf16.gmra.mrb[36].mxu1 %vm340_vm1, %v4242_v56 }
 0x149   :  { %675 = vmatprep.mubr.bf16.mxu1 %v5082_v3 }
 0x14e   :  { %3612 = vmatmul.mubr.msk.bf16.gmra.mrb[40].mxu0 %vm340_vm1, %v4249_v57 }
 0x14f   :  { %532 = vmatprep.mubr.bf16.mxu0 %v5082_v3 }
 0x150   :  { %3625 = vmatmul.mubr.msk.bf16.gmra.mrb[40].mxu1 %vm340_vm1, %v4249_v57  ;;  %v5703_v57 = vrot.slane %v240_v60, %v252_v41 }
 0x151   :  { %685 = vmatprep.mubr.bf16.mxu1 %v5082_v3 }
 0x156   :  { %3613 = vmatmul.mubr.msk.bf16.gmra.mrb[44].mxu0 %vm340_vm1, %v4253_v58 }
 0x157   :  { %920 = vmatprep.mubr.bf16.mxu0 %v5082_v3 }
 0x158   :  { %3626 = vmatmul.mubr.msk.bf16.gmra.mrb[44].mxu1 %vm340_vm1, %v4253_v58 }
 0x159   :  { %963 = vmatprep.mubr.bf16.mxu1 %v5082_v3 }
 0x15e   :  { %921 = vmatmul.mubr.bf16.vlgmr.msra.gmra.mrb[0].mxu0 %v5082_v3 }
 0x15f   :  { %1046 = vmatpush1.bf16.msra.mxu0 %v5385_v18  ;;  %1077 = vmatprep.mubr.bf16.mxu0 %v5082_v3 }
 0x160   :  { %964 = vmatmul.mubr.bf16.vlgmr.msra.gmra.mrb[0].mxu1 %v5082_v3  ;;  %1047 = vmatprep.subr.bf16.mxu0 %v5392_v19 }
 0x161   :  { %1089 = vmatpush1.bf16.msra.mxu1 %v5397_v20  ;;  %1120 = vmatprep.mubr.bf16.mxu1 %v5082_v3 }
 0x162   :  { %1090 = vmatprep.subr.bf16.mxu1 %v5404_v21 }
 0x163   :  { %1048 = vmatpush1.bf16.msra.mxu0 %v5411_v22 }
 0x164   :  { %1049 = vmatprep.subr.bf16.mxu0 %v5418_v23 }
 0x165   :  { %1091 = vmatpush1.bf16.msra.mxu1 %v5425_v24 }
 0x166   :  { %1092 = vmatprep.subr.bf16.mxu1 %v5434_v26 }
 0x167   :  { %1050 = vmatpush1.bf16.msra.mxu0 %v5440_v27 }
 0x168   :  { %1051 = vmatprep.subr.bf16.mxu0 %v5446_v28 }
 0x169   :  { %1093 = vmatpush1.bf16.msra.mxu1 %v5452_v29 }
 0x16a   :  { %1094 = vmatprep.subr.bf16.mxu1 %v5459_v30 }
 0x16b   :  { %1052 = vmatpush1.bf16.msra.mxu0 %v5466_v31 }
 0x16c   :  { %1053 = vmatprep.subr.bf16.mxu0 %v5476_v33 }
 0x16d   :  { %1095 = vmatpush1.bf16.msra.mxu1 %v5483_v34 }
 0x16e   :  { %1096 = vmatprep.subr.bf16.mxu1 %v5489_v35 }
 0x16f   :  { %1054 = vmatpush1.bf16.msra.mxu0 %v5495_v36 }
 0x170   :  { %1055 = vmatprep.subr.bf16.mxu0 %v5507_v38 }
 0x171   :  { %1097 = vmatpush1.bf16.msra.mxu1 %v5502_v37 }
 0x172   :  { %1098 = vmatprep.subr.bf16.mxu1 %v5514_v39 }
 0x173   :  { %1056 = vmatpush1.bf16.msra.mxu0 %v5521_v40 }
 0x174   :  { %1057 = vmatprep.subr.bf16.mxu0 %v5531_v42 }
 0x175   :  { %1099 = vmatpush1.bf16.msra.mxu1 %v5538_v43 }
 0x176   :  { %1100 = vmatprep.subr.bf16.mxu1 %v5544_v44 }
 0x177   :  { %1058 = vmatpush1.bf16.msra.mxu0 %v5555_v46 }
 0x178   :  { %1059 = vmatprep.subr.bf16.mxu0 %v5567_v48 }
 0x179   :  { %1101 = vmatpush1.bf16.msra.mxu1 %v5550_v45 }
 0x17a   :  { %1102 = vmatprep.subr.bf16.mxu1 %v5561_v47 }
 0x17b   :  { %1060 = vmatpush1.bf16.msra.mxu0 %v5572_v49 }
 0x17c   :  { %1202 = vmatprep.subr.bf16.mxu0 %v5370_v13 }
 0x17d   :  { %1103 = vmatpush1.bf16.msra.mxu1 %v5581_v50 }
 0x17e   :  { %1245 = vmatprep.subr.bf16.mxu1 %v5380_v17 }
 0x231   :  { %v922_v2 = vpop.f32.mrb[0].mxu0 }
 0x232   :  { %v3985_v5 = vadd.f32 %v922_v2, %v5690_v63  ;;  %v924_v6 = vpop.f32.mrb[1].mxu0 }
 0x233   :  { %v3986_v7 = vadd.f32 %v924_v6, %v5692_v0  ;;  %v926_v8 = vpop.f32.mrb[2].mxu0  ;;  %v965_v9 = vpop.f32.mrb[0].mxu1 }
 0x234   :  { %v3987_v10 = vadd.f32 %v926_v8, %v5690_v63  ;;  %v928_v11 = vpop.f32.mrb[3].mxu0  ;;  %v967_v12 = vpop.f32.mrb[1].mxu1  ;;  %v3659_v14 = vmul.f32 -1.442695, %v3985_v5  ;;  %v4033_v58 = vadd.f32 %v965_v9, %v5703_v57 }
 0x235   :  { %v3660_v15 = vmul.f32 -1.442695, %v3986_v7  ;;  %v3988_v16 = vadd.f32 %v928_v11, %v5692_v0  ;;  %v4034_v25 = vadd.f32 %v967_v12, %v5694_v1  ;;  %v969_v32 = vpop.f32.mrb[2].mxu1 }
 0x236   :  { %v971_v51 = vpop.f32.mrb[3].mxu1  ;;  %v3663_v55 = vmul.f32 -1.442695, %v3987_v10  ;;  %v4035_v59 = vadd.f32 %v969_v32, %v5703_v57  ;;  %v3661_v61 = vmul.f32 -1.442695, %v4033_v58 }
 0x237   :  { %v3664_v52 = vmul.f32 -1.442695, %v3988_v16  ;;  %v3662_v53 = vmul.f32 -1.442695, %v4034_v25  ;;  %v4036_v54 = vadd.f32 %v971_v51, %v5694_v1  ;;  %4289 = vpow2.f32 %v3660_v15 }
 0x238   :  { %4291 = vpow2.f32 %v3659_v14  ;;  %v3665_v2 = vmul.f32 -1.442695, %v4035_v59 }
 0x239   :  { %v3666_v56 = vmul.f32 -1.442695, %v4036_v54  ;;  %4293 = vpow2.f32 %v3664_v52 }
 0x23a   :  { %4295 = vpow2.f32 %v3662_v53 }
 0x23b   :  { %4297 = vpow2.f32 %v3663_v55 }
 0x23c   :  { %4299 = vpow2.f32 %v3666_v56 }
 0x23d   :  { %4301 = vpow2.f32 %v3661_v61 }
 0x23e   :  { %4303 = vpow2.f32 %v3665_v2 }
 0x241   :  { %v4290_v4 = vpop.eup %4289 }
 0x242   :  { %v4292_v62 = vpop.eup %4291  ;;  %v1007_v7 = vadd.f32 1.0, %v4290_v4 }
 0x243   :  { %v4294_v5 = vpop.eup %4293  ;;  %v1006_v11 = vadd.f32 1.0, %v4292_v62 }
 0x244   :  { %v4296_v6 = vpop.eup %4295  ;;  %v1011_v12 = vadd.f32 1.0, %v4294_v5 }
 0x245   :  { %v4298_v8 = vpop.eup %4297  ;;  %v1009_v10 = vadd.f32 1.0, %v4296_v6 }
 0x246   :  { %v4300_v60 = vpop.eup %4299  ;;  %v1010_v9 = vadd.f32 1.0, %v4298_v8 }
 0x247   :  { %4305 = vrcp.f32 %v1009_v10  ;;  %v1013_v14 = vadd.f32 1.0, %v4300_v60  ;;  %v4302_v15 = vpop.eup %4301 }
 0x248   :  { %4307 = vrcp.f32 %v1007_v7  ;;  %v4304_v16 = vpop.eup %4303  ;;  %v1008_v56 = vadd.f32 1.0, %v4302_v15 }
 0x249   :  { %4309 = vrcp.f32 %v1013_v14  ;;  %v1012_v62 = vadd.f32 1.0, %v4304_v16 }
 0x24a   :  { %4311 = vrcp.f32 %v1006_v11 }
 0x24b   :  { %4313 = vrcp.f32 %v1011_v12 }
 0x24c   :  { %4315 = vrcp.f32 %v1010_v9 }
 0x24d   :  { %4317 = vrcp.f32 %v1008_v56 }
 0x251   :  { %v4306_v25 = vpop.eup %4305 }
 0x252   :  { %v4308_v32 = vpop.eup %4307  ;;  %v1030_v41 = vmul.f32 2.0, %v4306_v25 }
 0x253   :  { %v4310_v51 = vpop.eup %4309  ;;  %v1034_v58 = vmul.f32 0.0, %v4308_v32 }
 0x254   :  { %v4312_v52 = vpop.eup %4311  ;;  %v3667_v53 = vadd.f32 -1.0, %v1030_v41  ;;  %v1031_v54 = vmul.f32 2.0, %v4310_v51 }
 0x255   :  { %v4314_v55 = vpop.eup %4313 }
 0x256   :  { %v1036_v59 = vmul.f32 %v4312_v52, %v3667_v53  ;;  %v3668_v4 = vadd.f32 -1.0, %v1031_v54  ;;  %v4316_v61 = vpop.eup %4315  ;;  %v1035_v2 = vmul.f32 0.0, %v4314_v55 }
 0x257   :  { %v4318_v8 = vpop.eup %4317 }
 0x258   :  { %v5707_v5 = vadd.f32 %v1036_v59, %v1034_v58  ;;  %v1037_v6 = vmul.f32 %v4316_v61, %v3668_v4 }
 0x25a   :  { %4319 = vtanh.f32 %v5707_v5  ;;  %v5710_v7 = vadd.f32 %v1037_v6, %v1035_v2 }
 0x25b   :  { %4321 = vrcp.f32 %v1012_v62 }
 0x25c   :  { %4323 = vtanh.f32 %v5710_v7 }
 0x264   :  { %v4320_v10 = vpop.eup %4319 }
 0x265   :  { %v4322_v60 = vpop.eup %4321  ;;  %v1042_v12 = vmul.f32 %v4320_v10, %v4318_v8 }
 0x266   :  { %v4324_v11 = vpop.eup %4323 }
 0x267   :  { %v1043_v14 = vmul.f32 %v4324_v11, %v4322_v60 }
 0x269   :  { %v1044_v9 = vpack.c.bf16 %v1043_v14, %v1042_v12 }
 0x26b   :  { %1078 = vmatmul.mubr.bf16.vlgmr.msra.gmra.mrb[4].mxu0 %v1044_v9  ;;  %1121 = vmatmul.mubr.bf16.vlgmr.msra.gmra.mrb[4].mxu1 %v1044_v9 }
 0x26c   :  { %1203 = vmatpush1.bf16.msra.mxu0 %v5385_v18  ;;  %1246 = vmatpush1.bf16.msra.mxu1 %v5397_v20 }
 0x26d   :  { %1204 = vmatprep.subr.bf16.mxu0 %v5392_v19  ;;  %1247 = vmatprep.subr.bf16.mxu1 %v5404_v21 }
 0x26e   :  { %1234 = vmatprep.mubr.bf16.mxu0 %v5082_v3  ;;  %1277 = vmatprep.mubr.bf16.mxu1 %v5082_v3 }
 0x270   :  { %1205 = vmatpush1.bf16.msra.mxu0 %v5411_v22  ;;  %1248 = vmatpush1.bf16.msra.mxu1 %v5425_v24 }
 0x271   :  { %1206 = vmatprep.subr.bf16.mxu0 %v5418_v23  ;;  %1249 = vmatprep.subr.bf16.mxu1 %v5434_v26 }
 0x274   :  { %1207 = vmatpush1.bf16.msra.mxu0 %v5440_v27  ;;  %1250 = vmatpush1.bf16.msra.mxu1 %v5452_v29 }
 0x275   :  { %1208 = vmatprep.subr.bf16.mxu0 %v5446_v28  ;;  %1251 = vmatprep.subr.bf16.mxu1 %v5459_v30 }
 0x278   :  { %1209 = vmatpush1.bf16.msra.mxu0 %v5466_v31  ;;  %1252 = vmatpush1.bf16.msra.mxu1 %v5483_v34 }
 0x279   :  { %1210 = vmatprep.subr.bf16.mxu0 %v5476_v33  ;;  %1253 = vmatprep.subr.bf16.mxu1 %v5489_v35 }
 0x27c   :  { %1211 = vmatpush1.bf16.msra.mxu0 %v5495_v36  ;;  %1254 = vmatpush1.bf16.msra.mxu1 %v5502_v37 }
 0x27d   :  { %1212 = vmatprep.subr.bf16.mxu0 %v5507_v38  ;;  %1255 = vmatprep.subr.bf16.mxu1 %v5514_v39 }
 0x280   :  { %1213 = vmatpush1.bf16.msra.mxu0 %v5521_v40  ;;  %1256 = vmatpush1.bf16.msra.mxu1 %v5538_v43 }
 0x281   :  { %1214 = vmatprep.subr.bf16.mxu0 %v5531_v42  ;;  %1257 = vmatprep.subr.bf16.mxu1 %v5544_v44 }
 0x284   :  { %1215 = vmatpush1.bf16.msra.mxu0 %v5555_v46  ;;  %1258 = vmatpush1.bf16.msra.mxu1 %v5550_v45 }
 0x285   :  { %1216 = vmatprep.subr.bf16.mxu0 %v5567_v48  ;;  %1259 = vmatprep.subr.bf16.mxu1 %v5561_v47 }
 0x288   :  { %1217 = vmatpush1.bf16.msra.mxu0 %v5572_v49  ;;  %1260 = vmatpush1.bf16.msra.mxu1 %v5581_v50 }
 0x289   :  { %1359 = vmatprep.subr.bf16.mxu0 %v5370_v13  ;;  %1402 = vmatprep.subr.bf16.mxu1 %v5380_v17 }
 0x33e   :  { %v1079_v15 = vpop.f32.mrb[4].mxu0  ;;  %v1122_v16 = vpop.f32.mrb[4].mxu1 }
 0x33f   :  { %v3989_v25 = vadd.f32 %v1079_v15, %v5690_v63  ;;  %v1081_v32 = vpop.f32.mrb[5].mxu0  ;;  %v1124_v41 = vpop.f32.mrb[5].mxu1  ;;  %v4037_v8 = vadd.f32 %v1122_v16, %v5703_v57 }
 0x340   :  { %v3990_v51 = vadd.f32 %v1081_v32, %v5692_v0  ;;  %v4038_v52 = vadd.f32 %v1124_v41, %v5694_v1  ;;  %v1083_v53 = vpop.f32.mrb[6].mxu0  ;;  %v1126_v54 = vpop.f32.mrb[6].mxu1 }
 0x341   :  { %v3669_v55 = vmul.f32 -1.442695, %v3989_v25  ;;  %v3991_v56 = vadd.f32 %v1083_v53, %v5690_v63  ;;  %v1085_v58 = vpop.f32.mrb[7].mxu0  ;;  %v1128_v59 = vpop.f32.mrb[7].mxu1  ;;  %v3671_v12 = vmul.f32 -1.442695, %v4037_v8  ;;  %v4039_v14 = vadd.f32 %v1126_v54, %v5703_v57 }
 0x342   :  { %v3670_v13 = vmul.f32 -1.442695, %v3990_v51  ;;  %v3672_v4 = vmul.f32 -1.442695, %v4038_v52  ;;  %v3992_v17 = vadd.f32 %v1085_v58, %v5692_v0  ;;  %v4040_v61 = vadd.f32 %v1128_v59, %v5694_v1 }
 0x343   :  { %4325 = vpow2.f32 %v3669_v55  ;;  %v3673_v62 = vmul.f32 -1.442695, %v3991_v56  ;;  %v3675_v52 = vmul.f32 -1.442695, %v4039_v14 }
 0x344   :  { %4327 = vpow2.f32 %v3670_v13  ;;  %v3674_v2 = vmul.f32 -1.442695, %v3992_v17  ;;  %v3676_v6 = vmul.f32 -1.442695, %v4040_v61 }
 0x345   :  { %4329 = vpow2.f32 %v3672_v4 }
 0x346   :  { %4331 = vpow2.f32 %v3673_v62 }
 0x347   :  { %4333 = vpow2.f32 %v3674_v2 }
 0x348   :  { %4335 = vpow2.f32 %v3676_v6 }
 0x34d   :  { %v4326_v10 = vpop.eup %4325 }
 0x34e   :  { %v4328_v60 = vpop.eup %4327  ;;  %v1163_v32 = vadd.f32 1.0, %v4326_v10 }
 0x34f   :  { %v4330_v11 = vpop.eup %4329  ;;  %v1164_v9 = vadd.f32 1.0, %v4328_v60 }
 0x350   :  { %v1166_v15 = vadd.f32 1.0, %v4330_v11  ;;  %v4332_v25 = vpop.eup %4331 }
 0x351   :  { %v4334_v41 = vpop.eup %4333  ;;  %v1167_v16 = vadd.f32 1.0, %v4332_v25 }
 0x352   :  { %4337 = vrcp.f32 %v1166_v15  ;;  %v4336_v51 = vpop.eup %4335  ;;  %v1168_v53 = vadd.f32 1.0, %v4334_v41 }
 0x353   :  { %4339 = vpow2.f32 %v3671_v12  ;;  %v1170_v55 = vadd.f32 1.0, %v4336_v51 }
 0x354   :  { %4341 = vrcp.f32 %v1164_v9 }
 0x355   :  { %4343 = vrcp.f32 %v1163_v32 }
 0x356   :  { %4345 = vrcp.f32 %v1170_v55 }
 0x357   :  { %4347 = vpow2.f32 %v3675_v52 }
 0x358   :  { %4349 = vrcp.f32 %v1168_v53 }
 0x359   :  { %4351 = vrcp.f32 %v1167_v16 }
 0x35c   :  { %v4338_v56 = vpop.eup %4337 }
 0x35d   :  { %v4340_v54 = vpop.eup %4339  ;;  %v1187_v58 = vmul.f32 2.0, %v4338_v56 }
 0x35e   :  { %v4342_v59 = vpop.eup %4341  ;;  %v1165_v10 = vadd.f32 1.0, %v4340_v54 }
 0x35f   :  { %v4344_v13 = vpop.eup %4343  ;;  %v3677_v4 = vadd.f32 -1.0, %v1187_v58  ;;  %v1191_v62 = vmul.f32 %v4342_v59, %v5707_v5 }
 0x360   :  { %v4346_v17 = vpop.eup %4345  ;;  %4353 = vrcp.f32 %v1165_v10 }
 0x361   :  { %v4348_v61 = vpop.eup %4347  ;;  %v1193_v2 = vmul.f32 %v4344_v13, %v3677_v4  ;;  %v1188_v6 = vmul.f32 2.0, %v4346_v17 }
 0x362   :  { %v4350_v8 = vpop.eup %4349  ;;  %v1169_v14 = vadd.f32 1.0, %v4348_v61 }
 0x363   :  { %v5756_v60 = vadd.f32 %v1193_v2, %v1191_v62  ;;  %v3678_v11 = vadd.f32 -1.0, %v1188_v6  ;;  %v4352_v12 = vpop.eup %4351  ;;  %v1192_v9 = vmul.f32 %v4350_v8, %v5710_v7 }
 0x365   :  { %v1194_v15 = vmul.f32 %v4352_v12, %v3678_v11  ;;  %4355 = vtanh.f32 %v5756_v60 }
 0x366   :  { %4357 = vrcp.f32 %v1169_v14 }
 0x367   :  { %v5760_v25 = vadd.f32 %v1194_v15, %v1192_v9 }
 0x369   :  { %4359 = vtanh.f32 %v5760_v25 }
 0x36a   :  { %v4354_v5 = vpop.eup %4353 }
 0x36f   :  { %v4356_v32 = vpop.eup %4355 }
 0x370   :  { %v4358_v41 = vpop.eup %4357  ;;  %v1199_v52 = vmul.f32 %v4356_v32, %v4354_v5 }
 0x373   :  { %v4360_v51 = vpop.eup %4359 }
 0x374   :  { %v1200_v53 = vmul.f32 %v4360_v51, %v4358_v41 }
 0x376   :  { %v1201_v55 = vpack.c.bf16 %v1200_v53, %v1199_v52 }
 0x378   :  { %1235 = vmatmul.mubr.bf16.vlgmr.msra.gmra.mrb[8].mxu0 %v1201_v55  ;;  %1278 = vmatmul.mubr.bf16.vlgmr.msra.gmra.mrb[8].mxu1 %v1201_v55 }
 0x379   :  { %1360 = vmatpush1.bf16.msra.mxu0 %v5385_v18  ;;  %1403 = vmatpush1.bf16.msra.mxu1 %v5397_v20  ;;  %v5798_v18 = vld [vmem:[%s6748_s2 + $0x4] ss:$16 sps:$4 sm:$0xff]  }
 0x37a   :  { %1361 = vmatprep.subr.bf16.mxu0 %v5392_v19  ;;  %1404 = vmatprep.subr.bf16.mxu1 %v5404_v21  ;;  %v5804_v19 = vld [vmem:[%s6748_s2 + $0xc] ss:$16 sps:$4 sm:$0xff]  }
 0x37b   :  { %1391 = vmatprep.mubr.bf16.mxu0 %v5082_v3  ;;  %1434 = vmatprep.mubr.bf16.mxu1 %v5082_v3 }
 0x37d   :  { %1362 = vmatpush1.bf16.msra.mxu0 %v5411_v22  ;;  %1405 = vmatpush1.bf16.msra.mxu1 %v5425_v24 }
 0x37e   :  { %1363 = vmatprep.subr.bf16.mxu0 %v5418_v23  ;;  %1406 = vmatprep.subr.bf16.mxu1 %v5434_v26 }
 0x381   :  { %1364 = vmatpush1.bf16.msra.mxu0 %v5440_v27  ;;  %1407 = vmatpush1.bf16.msra.mxu1 %v5452_v29 }
 0x382   :  { %1365 = vmatprep.subr.bf16.mxu0 %v5446_v28  ;;  %1408 = vmatprep.subr.bf16.mxu1 %v5459_v30 }
 0x385   :  { %1366 = vmatpush1.bf16.msra.mxu0 %v5466_v31  ;;  %1409 = vmatpush1.bf16.msra.mxu1 %v5483_v34 }
 0x386   :  { %1367 = vmatprep.subr.bf16.mxu0 %v5476_v33  ;;  %1410 = vmatprep.subr.bf16.mxu1 %v5489_v35 }
 0x389   :  { %1368 = vmatpush1.bf16.msra.mxu0 %v5495_v36  ;;  %1411 = vmatpush1.bf16.msra.mxu1 %v5502_v37 }
 0x38a   :  { %1369 = vmatprep.subr.bf16.mxu0 %v5507_v38  ;;  %1412 = vmatprep.subr.bf16.mxu1 %v5514_v39 }
 0x38d   :  { %1370 = vmatpush1.bf16.msra.mxu0 %v5521_v40  ;;  %1413 = vmatpush1.bf16.msra.mxu1 %v5538_v43 }
 0x38e   :  { %1371 = vmatprep.subr.bf16.mxu0 %v5531_v42  ;;  %1414 = vmatprep.subr.bf16.mxu1 %v5544_v44 }
 0x391   :  { %1372 = vmatpush1.bf16.msra.mxu0 %v5555_v46  ;;  %1415 = vmatpush1.bf16.msra.mxu1 %v5550_v45 }
 0x392   :  { %1373 = vmatprep.subr.bf16.mxu0 %v5567_v48  ;;  %1416 = vmatprep.subr.bf16.mxu1 %v5561_v47 }
 0x395   :  { %1374 = vmatpush1.bf16.msra.mxu0 %v5572_v49  ;;  %1417 = vmatpush1.bf16.msra.mxu1 %v5581_v50 }
 0x396   :  { %1516 = vmatprep.subr.bf16.mxu0 %v5798_v18  ;;  %1559 = vmatprep.subr.bf16.mxu1 %v5804_v19 }
 0x44b   :  { %v1236_v20 = vpop.f32.mrb[8].mxu0  ;;  %v1279_v21 = vpop.f32.mrb[8].mxu1 }
 0x44c   :  { %v3993_v22 = vadd.f32 %v1236_v20, %v5690_v63  ;;  %v1238_v23 = vpop.f32.mrb[9].mxu0  ;;  %v1281_v24 = vpop.f32.mrb[9].mxu1  ;;  %v4041_v43 = vadd.f32 %v1279_v21, %v5703_v57 }
 0x44d   :  { %v3994_v26 = vadd.f32 %v1238_v23, %v5692_v0  ;;  %v4042_v27 = vadd.f32 %v1281_v24, %v5694_v1  ;;  %v1240_v28 = vpop.f32.mrb[10].mxu0  ;;  %v1283_v29 = vpop.f32.mrb[10].mxu1 }
 0x44e   :  { %v3679_v30 = vmul.f32 -1.442695, %v3993_v22  ;;  %v3995_v31 = vadd.f32 %v1240_v28, %v5690_v63  ;;  %v1242_v33 = vpop.f32.mrb[11].mxu0  ;;  %v1285_v34 = vpop.f32.mrb[11].mxu1  ;;  %v3681_v47 = vmul.f32 -1.442695, %v4041_v43  ;;  %v4043_v7 = vadd.f32 %v1283_v29, %v5703_v57 }
 0x44f   :  { %v3680_v35 = vmul.f32 -1.442695, %v3994_v26  ;;  %v3682_v36 = vmul.f32 -1.442695, %v4042_v27  ;;  %v3996_v37 = vadd.f32 %v1242_v33, %v5692_v0  ;;  %v4044_v38 = vadd.f32 %v1285_v34, %v5694_v1  ;;  %v5838_v33 = vld [vmem:[%s6748_s2 + $0x24] ss:$16 sps:$4 sm:$0xff]  }
 0x450   :  { %4361 = vpow2.f32 %v3679_v30  ;;  %v3683_v39 = vmul.f32 -1.442695, %v3995_v31  ;;  %v3685_v4 = vmul.f32 -1.442695, %v4043_v7  ;;  %v5832_v31 = vld [vmem:[%s6748_s2 + $0x8] ss:$16 sps:$4 sm:$0xff]  }
 0x451   :  { %4363 = vpow2.f32 %v3680_v35  ;;  %v3684_v40 = vmul.f32 -1.442695, %v3996_v37  ;;  %v3686_v42 = vmul.f32 -1.442695, %v4044_v38  ;;  %v5844_v34 = vld [vmem:[%s6748_s2 + $0x2c] ss:$16 sps:$4 sm:$0xff]  }
 0x452   :  { %4365 = vpow2.f32 %v3682_v36  ;;  %v5852_v35 = vld [vmem:[%s6748_s2 + $0x20] ss:$16 sps:$4 sm:$0xff]   ;;  %v5858_v36 = vld [vmem:[%s6748_s2 + $0x28] ss:$16 sps:$4 sm:$0xff]   ;;  %v5864_v37 = vld [vmem:[%s6748_s2 + $0x44] ss:$16 sps:$4 sm:$0xff]  }
 0x453   :  { %4367 = vpow2.f32 %v3683_v39  ;;  %v5870_v38 = vld [vmem:[%s6748_s2 + $0x4c] ss:$16 sps:$4 sm:$0xff]   ;;  %v5876_v39 = vld [vmem:[%s6748_s2 + $0x40] ss:$16 sps:$4 sm:$0xff]  }
 0x454   :  { %4369 = vpow2.f32 %v3684_v40  ;;  %v5882_v40 = vld [vmem:[%s6748_s2 + $0x48] ss:$16 sps:$4 sm:$0xff]   ;;  %v5894_v43 = vld [vmem:[%s6748_s2 + $0x6c] ss:$16 sps:$4 sm:$0xff]   ;;  %v5924_v7 = vld [vmem:[%s6748_s2 + $0x80] ss:$16 sps:$4 sm:$0xff]  }
 0x455   :  { %4371 = vpow2.f32 %v3686_v42  ;;  %v5888_v42 = vld [vmem:[%s6748_s2 + $0x64] ss:$16 sps:$4 sm:$0xff]  }
 0x45a   :  { %v4362_v44 = vpop.eup %4361 }
 0x45b   :  { %v4364_v45 = vpop.eup %4363  ;;  %v1320_v58 = vadd.f32 1.0, %v4362_v44  ;;  %v5900_v44 = vld [vmem:[%s6748_s2 + $0x60] ss:$16 sps:$4 sm:$0xff]  }
 0x45c   :  { %v4366_v46 = vpop.eup %4365  ;;  %v1321_v16 = vadd.f32 1.0, %v4364_v45  ;;  %v5906_v45 = vld [vmem:[%s6748_s2 + $0x68] ss:$16 sps:$4 sm:$0xff]  }
 0x45d   :  { %v1323_v56 = vadd.f32 1.0, %v4366_v46  ;;  %v4368_v54 = vpop.eup %4367  ;;  %v5912_v46 = vld [vmem:[%s6748_s2 + $0x84] ss:$16 sps:$4 sm:$0xff]  }
 0x45e   :  { %v4370_v59 = vpop.eup %4369  ;;  %v1324_v62 = vadd.f32 1.0, %v4368_v54  ;;  %v5942_v54 = vld [vmem:[%s6748_s2 + $0xac] ss:$16 sps:$4 sm:$0xff]  }
 0x45f   :  { %4373 = vrcp.f32 %v1323_v56  ;;  %v4372_v13 = vpop.eup %4371  ;;  %v1325_v17 = vadd.f32 1.0, %v4370_v59  ;;  %v5936_v56 = vld [vmem:[%s6748_s2 + $0xa4] ss:$16 sps:$4 sm:$0xff]   ;;  %v5954_v59 = vld [vmem:[%s6748_s2 + $0xa8] ss:$16 sps:$4 sm:$0xff]  }
 0x460   :  { %4375 = vpow2.f32 %v3681_v47  ;;  %v1327_v61 = vadd.f32 1.0, %v4372_v13  ;;  %v5918_v47 = vld [vmem:[%s6748_s2 + $0x8c] ss:$16 sps:$4 sm:$0xff]   ;;  %v5960_v13 = vld [vmem:[%s6748_s2 + $0xc4] ss:$16 sps:$4 sm:$0xff]  }
 0x461   :  { %4377 = vrcp.f32 %v1321_v16  ;;  %v5930_v16 = vld [vmem:[%s6748_s2 + $0x88] ss:$16 sps:$4 sm:$0xff]  }
 0x462   :  { %4379 = vrcp.f32 %v1320_v58  ;;  %v5948_v58 = vld [vmem:[%s6748_s2 + $0xa0] ss:$16 sps:$4 sm:$0xff]  }
 0x463   :  { %4381 = vrcp.f32 %v1327_v61  ;;  %v5978_v61 = vld [vmem:[%s6748_s2 + $0xc8] ss:$16 sps:$4 sm:$0xff]  }
 0x464   :  { %4383 = vpow2.f32 %v3685_v4  ;;  %v5966_v4 = vld [vmem:[%s6748_s2 + $0xcc] ss:$16 sps:$4 sm:$0xff]  }
 0x465   :  { %4385 = vrcp.f32 %v1325_v17  ;;  %v5972_v17 = vld [vmem:[%s6748_s2 + $0xc0] ss:$16 sps:$4 sm:$0xff]  }
 0x466   :  { %4387 = vrcp.f32 %v1324_v62  ;;  %v5985_v62 = vld [vmem:[%s6748_s2 + $0xec] ss:$16 sps:$4 sm:$0xff]  }
 0x469   :  { %v4374_v2 = vpop.eup %4373 }
 0x46a   :  { %v4376_v6 = vpop.eup %4375  ;;  %v1344_v8 = vmul.f32 2.0, %v4374_v2 }
 0x46b   :  { %v4378_v10 = vpop.eup %4377  ;;  %v1322_v51 = vadd.f32 1.0, %v4376_v6 }
 0x46c   :  { %v4380_v11 = vpop.eup %4379  ;;  %v3687_v12 = vadd.f32 -1.0, %v1344_v8  ;;  %v1348_v15 = vmul.f32 %v4378_v10, %v5756_v60 }
 0x46d   :  { %v4382_v14 = vpop.eup %4381  ;;  %4389 = vrcp.f32 %v1322_v51 }
 0x46e   :  { %v4384_v9 = vpop.eup %4383  ;;  %v1350_v5 = vmul.f32 %v4380_v11, %v3687_v12  ;;  %v1345_v32 = vmul.f32 2.0, %v4382_v14 }
 0x46f   :  { %v4386_v41 = vpop.eup %4385  ;;  %v1326_v20 = vadd.f32 1.0, %v4384_v9 }
 0x470   :  { %v5816_v52 = vadd.f32 %v1350_v5, %v1348_v15  ;;  %v3688_v53 = vadd.f32 -1.0, %v1345_v32  ;;  %v4388_v55 = vpop.eup %4387  ;;  %v1349_v21 = vmul.f32 %v4386_v41, %v5760_v25  ;;  %v5826_v25 = vld [vmem:[%s6748_s2] ss:$16 sps:$4 sm:$0xff]  }
 0x472   :  { %v1351_v22 = vmul.f32 %v4388_v55, %v3688_v53  ;;  %4391 = vtanh.f32 %v5816_v52 }
 0x473   :  { %4393 = vrcp.f32 %v1326_v20 }
 0x474   :  { %v5820_v23 = vadd.f32 %v1351_v22, %v1349_v21 }
 0x476   :  { %4395 = vtanh.f32 %v5820_v23 }
 0x477   :  { %v4390_v60 = vpop.eup %4389 }
 0x47c   :  { %v4392_v24 = vpop.eup %4391 }
 0x47d   :  { %v4394_v26 = vpop.eup %4393  ;;  %v1356_v28 = vmul.f32 %v4392_v24, %v4390_v60 }
 0x480   :  { %v4396_v27 = vpop.eup %4395 }
 0x481   :  { %v1357_v29 = vmul.f32 %v4396_v27, %v4394_v26 }
 0x483   :  { %v1358_v30 = vpack.c.bf16 %v1357_v29, %v1356_v28 }
 0x485   :  { %1392 = vmatmul.mubr.bf16.vlgmr.msra.gmra.mrb[12].mxu0 %v1358_v30  ;;  %1435 = vmatmul.mubr.bf16.vlgmr.msra.gmra.mrb[12].mxu1 %v1358_v30 }
 0x486   :  { %1517 = vmatpush1.bf16.msra.mxu0 %v5826_v25  ;;  %1560 = vmatpush1.bf16.msra.mxu1 %v5832_v31 }
 0x487   :  { %1518 = vmatprep.subr.bf16.mxu0 %v5838_v33  ;;  %1561 = vmatprep.subr.bf16.mxu1 %v5844_v34 }
 0x488   :  { %1548 = vmatprep.mubr.bf16.mxu0 %v5082_v3  ;;  %1591 = vmatprep.mubr.bf16.mxu1 %v5082_v3 }
 0x48a   :  { %1519 = vmatpush1.bf16.msra.mxu0 %v5852_v35  ;;  %1562 = vmatpush1.bf16.msra.mxu1 %v5858_v36 }
 0x48b   :  { %1520 = vmatprep.subr.bf16.mxu0 %v5864_v37  ;;  %1563 = vmatprep.subr.bf16.mxu1 %v5870_v38 }
 0x48e   :  { %1521 = vmatpush1.bf16.msra.mxu0 %v5876_v39  ;;  %1564 = vmatpush1.bf16.msra.mxu1 %v5882_v40 }
 0x48f   :  { %1522 = vmatprep.subr.bf16.mxu0 %v5888_v42  ;;  %1565 = vmatprep.subr.bf16.mxu1 %v5894_v43 }
 0x492   :  { %1523 = vmatpush1.bf16.msra.mxu0 %v5900_v44  ;;  %1566 = vmatpush1.bf16.msra.mxu1 %v5906_v45 }
 0x493   :  { %1524 = vmatprep.subr.bf16.mxu0 %v5912_v46  ;;  %1567 = vmatprep.subr.bf16.mxu1 %v5918_v47 }
 0x496   :  { %1525 = vmatpush1.bf16.msra.mxu0 %v5924_v7  ;;  %1568 = vmatpush1.bf16.msra.mxu1 %v5930_v16 }
 0x497   :  { %1526 = vmatprep.subr.bf16.mxu0 %v5936_v56  ;;  %1569 = vmatprep.subr.bf16.mxu1 %v5942_v54 }
 0x49a   :  { %1527 = vmatpush1.bf16.msra.mxu0 %v5948_v58  ;;  %1570 = vmatpush1.bf16.msra.mxu1 %v5954_v59 }
 0x49b   :  { %1528 = vmatprep.subr.bf16.mxu0 %v5960_v13  ;;  %1571 = vmatprep.subr.bf16.mxu1 %v5966_v4 }
 0x49e   :  { %1529 = vmatpush1.bf16.msra.mxu0 %v5972_v17  ;;  %1572 = vmatpush1.bf16.msra.mxu1 %v5978_v61 }
 0x49f   :  { %1530 = vmatprep.subr.bf16.mxu0 %v5567_v48  ;;  %1573 = vmatprep.subr.bf16.mxu1 %v5985_v62 }
 0x4a2   :  { %1531 = vmatpush1.bf16.msra.mxu0 %v5572_v49  ;;  %1574 = vmatpush1.bf16.msra.mxu1 %v5581_v50 }
 0x4a3   :  { %1673 = vmatprep.subr.bf16.mxu0 %v5798_v18  ;;  %1716 = vmatprep.subr.bf16.mxu1 %v5804_v19 }
 0x558   :  { %v1393_v2 = vpop.f32.mrb[12].mxu0  ;;  %v1436_v6 = vpop.f32.mrb[12].mxu1 }
 0x559   :  { %v3997_v8 = vadd.f32 %v1393_v2, %v5690_v63  ;;  %v1395_v48 = vpop.f32.mrb[13].mxu0  ;;  %v1438_v10 = vpop.f32.mrb[13].mxu1  ;;  %v4045_v22 = vadd.f32 %v1436_v6, %v5703_v57 }
 0x55a   :  { %v3998_v11 = vadd.f32 %v1395_v48, %v5692_v0  ;;  %v4046_v12 = vadd.f32 %v1438_v10, %v5694_v1  ;;  %v1397_v14 = vpop.f32.mrb[14].mxu0  ;;  %v1440_v9 = vpop.f32.mrb[14].mxu1 }
 0x55b   :  { %v3689_v15 = vmul.f32 -1.442695, %v3997_v8  ;;  %v3999_v49 = vadd.f32 %v1397_v14, %v5690_v63  ;;  %v1399_v50 = vpop.f32.mrb[15].mxu0  ;;  %v1442_v5 = vpop.f32.mrb[15].mxu1  ;;  %v3691_v27 = vmul.f32 -1.442695, %v4045_v22  ;;  %v4047_v28 = vadd.f32 %v1440_v9, %v5703_v57 }
 0x55c   :  { %v3690_v32 = vmul.f32 -1.442695, %v3998_v11  ;;  %v3692_v41 = vmul.f32 -1.442695, %v4046_v12  ;;  %v4000_v51 = vadd.f32 %v1399_v50, %v5692_v0  ;;  %v4048_v53 = vadd.f32 %v1442_v5, %v5694_v1 }
 0x55d   :  { %4397 = vpow2.f32 %v3689_v15  ;;  %v3693_v55 = vmul.f32 -1.442695, %v3999_v49  ;;  %v3695_v11 = vmul.f32 -1.442695, %v4047_v28 }
 0x55e   :  { %4399 = vpow2.f32 %v3690_v32  ;;  %v3694_v20 = vmul.f32 -1.442695, %v4000_v51  ;;  %v3696_v21 = vmul.f32 -1.442695, %v4048_v53 }
 0x55f   :  { %4401 = vpow2.f32 %v3692_v41 }
 0x560   :  { %4403 = vpow2.f32 %v3693_v55 }
 0x561   :  { %4405 = vpow2.f32 %v3694_v20 }
 0x562   :  { %4407 = vpow2.f32 %v3696_v21 }
 0x567   :  { %v4398_v60 = vpop.eup %4397 }
 0x568   :  { %v4400_v24 = vpop.eup %4399  ;;  %v1477_v8 = vadd.f32 1.0, %v4398_v60 }
 0x569   :  { %v4402_v26 = vpop.eup %4401  ;;  %v1478_v29 = vadd.f32 1.0, %v4400_v24 }
 0x56a   :  { %v1480_v30 = vadd.f32 1.0, %v4402_v26  ;;  %v4404_v2 = vpop.eup %4403 }
 0x56b   :  { %v4406_v48 = vpop.eup %4405  ;;  %v1481_v6 = vadd.f32 1.0, %v4404_v2 }
 0x56c   :  { %4409 = vrcp.f32 %v1480_v30  ;;  %v4408_v10 = vpop.eup %4407  ;;  %v1482_v12 = vadd.f32 1.0, %v4406_v48 }
 0x56d   :  { %4411 = vpow2.f32 %v3691_v27  ;;  %v1484_v14 = vadd.f32 1.0, %v4408_v10 }
 0x56e   :  { %4413 = vrcp.f32 %v1478_v29 }
 0x56f   :  { %4415 = vrcp.f32 %v1477_v8 }
 0x570   :  { %4417 = vrcp.f32 %v1484_v14  ;;  %v6046_v14 = vld [vmem:[%s6748_s2 + $0xe0] ss:$16 sps:$4 sm:$0xff]  }
 0x571   :  { %4419 = vpow2.f32 %v3695_v11 }
 0x572   :  { %4421 = vrcp.f32 %v1482_v12 }
 0x573   :  { %4423 = vrcp.f32 %v1481_v6  ;;  %v6052_v6 = vld [vmem:[%s6748_s2 + $0xe8] ss:$16 sps:$4 sm:$0xff]  }
 0x576   :  { %v4410_v15 = vpop.eup %4409 }
 0x577   :  { %v4412_v9 = vpop.eup %4411  ;;  %v1501_v49 = vmul.f32 2.0, %v4410_v15 }
 0x578   :  { %v4414_v50 = vpop.eup %4413  ;;  %v1479_v22 = vadd.f32 1.0, %v4412_v9 }
 0x579   :  { %v4416_v5 = vpop.eup %4415  ;;  %v3697_v32 = vadd.f32 -1.0, %v1501_v49  ;;  %v1505_v53 = vmul.f32 %v4414_v50, %v5816_v52 }
 0x57a   :  { %v4418_v41 = vpop.eup %4417  ;;  %4425 = vrcp.f32 %v1479_v22 }
 0x57b   :  { %v4420_v51 = vpop.eup %4419  ;;  %v1507_v55 = vmul.f32 %v4416_v5, %v3697_v32  ;;  %v1502_v20 = vmul.f32 2.0, %v4418_v41 }
 0x57c   :  { %v4422_v21 = vpop.eup %4421  ;;  %v1483_v27 = vadd.f32 1.0, %v4420_v51 }
 0x57d   :  { %v6001_v60 = vadd.f32 %v1507_v55, %v1505_v53  ;;  %v3698_v24 = vadd.f32 -1.0, %v1502_v20  ;;  %v4424_v26 = vpop.eup %4423  ;;  %v1506_v28 = vmul.f32 %v4422_v21, %v5820_v23  ;;  %v6039_v23 = vld [vmem:[%s6748_s2 + $0xe4] ss:$16 sps:$4 sm:$0xff]  }
 0x57f   :  { %v1508_v29 = vmul.f32 %v4424_v26, %v3698_v24  ;;  %4427 = vtanh.f32 %v6001_v60 }
 0x580   :  { %4429 = vrcp.f32 %v1483_v27 }
 0x581   :  { %v6005_v30 = vadd.f32 %v1508_v29, %v1506_v28 }
 0x583   :  { %4431 = vtanh.f32 %v6005_v30 }
 0x584   :  { %v4426_v52 = vpop.eup %4425 }
 0x589   :  { %v4428_v2 = vpop.eup %4427 }
 0x58a   :  { %v4430_v8 = vpop.eup %4429  ;;  %v1513_v10 = vmul.f32 %v4428_v2, %v4426_v52 }
 0x58d   :  { %v4432_v48 = vpop.eup %4431 }
 0x58e   :  { %v1514_v11 = vmul.f32 %v4432_v48, %v4430_v8 }
 0x590   :  { %v1515_v12 = vpack.c.bf16 %v1514_v11, %v1513_v10 }
 0x592   :  { %1549 = vmatmul.mubr.bf16.vlgmr.msra.gmra.mrb[16].mxu0 %v1515_v12  ;;  %1592 = vmatmul.mubr.bf16.vlgmr.msra.gmra.mrb[16].mxu1 %v1515_v12 }
 0x593   :  { %1674 = vmatpush1.bf16.msra.mxu0 %v5826_v25  ;;  %1717 = vmatpush1.bf16.msra.mxu1 %v5832_v31 }
 0x594   :  { %1675 = vmatprep.subr.bf16.mxu0 %v5838_v33  ;;  %1718 = vmatprep.subr.bf16.mxu1 %v5844_v34 }
 0x595   :  { %1705 = vmatprep.mubr.bf16.mxu0 %v5082_v3  ;;  %1748 = vmatprep.mubr.bf16.mxu1 %v5082_v3 }
 0x597   :  { %1676 = vmatpush1.bf16.msra.mxu0 %v5852_v35  ;;  %1719 = vmatpush1.bf16.msra.mxu1 %v5858_v36 }
 0x598   :  { %1677 = vmatprep.subr.bf16.mxu0 %v5864_v37  ;;  %1720 = vmatprep.subr.bf16.mxu1 %v5870_v38 }
 0x59b   :  { %1678 = vmatpush1.bf16.msra.mxu0 %v5876_v39  ;;  %1721 = vmatpush1.bf16.msra.mxu1 %v5882_v40 }
 0x59c   :  { %1679 = vmatprep.subr.bf16.mxu0 %v5888_v42  ;;  %1722 = vmatprep.subr.bf16.mxu1 %v5894_v43 }
 0x59f   :  { %1680 = vmatpush1.bf16.msra.mxu0 %v5900_v44  ;;  %1723 = vmatpush1.bf16.msra.mxu1 %v5906_v45 }
 0x5a0   :  { %1681 = vmatprep.subr.bf16.mxu0 %v5912_v46  ;;  %1724 = vmatprep.subr.bf16.mxu1 %v5918_v47 }
 0x5a3   :  { %1682 = vmatpush1.bf16.msra.mxu0 %v5924_v7  ;;  %1725 = vmatpush1.bf16.msra.mxu1 %v5930_v16 }
 0x5a4   :  { %1683 = vmatprep.subr.bf16.mxu0 %v5936_v56  ;;  %1726 = vmatprep.subr.bf16.mxu1 %v5942_v54 }
 0x5a7   :  { %1684 = vmatpush1.bf16.msra.mxu0 %v5948_v58  ;;  %1727 = vmatpush1.bf16.msra.mxu1 %v5954_v59 }
 0x5a8   :  { %1685 = vmatprep.subr.bf16.mxu0 %v5960_v13  ;;  %1728 = vmatprep.subr.bf16.mxu1 %v5966_v4 }
 0x5ab   :  { %1686 = vmatpush1.bf16.msra.mxu0 %v5972_v17  ;;  %1729 = vmatpush1.bf16.msra.mxu1 %v5978_v61 }
 0x5ac   :  { %1687 = vmatprep.subr.bf16.mxu0 %v6039_v23  ;;  %1730 = vmatprep.subr.bf16.mxu1 %v5985_v62 }
 0x5af   :  { %1688 = vmatpush1.bf16.msra.mxu0 %v6046_v14  ;;  %1731 = vmatpush1.bf16.msra.mxu1 %v6052_v6 }
 0x5b0   :  { %1830 = vmatprep.subr.bf16.mxu0 %v5798_v18  ;;  %1873 = vmatprep.subr.bf16.mxu1 %v5804_v19 }
 0x665   :  { %v1550_v15 = vpop.f32.mrb[16].mxu0  ;;  %v1593_v9 = vpop.f32.mrb[16].mxu1 }
 0x666   :  { %v4001_v49 = vadd.f32 %v1550_v15, %v5690_v63  ;;  %v1552_v50 = vpop.f32.mrb[17].mxu0  ;;  %v1595_v5 = vpop.f32.mrb[17].mxu1  ;;  %v4049_v8 = vadd.f32 %v1593_v9, %v5703_v57 }
 0x667   :  { %v4002_v32 = vadd.f32 %v1552_v50, %v5692_v0  ;;  %v4050_v41 = vadd.f32 %v1595_v5, %v5694_v1  ;;  %v1554_v51 = vpop.f32.mrb[18].mxu0  ;;  %v1597_v53 = vpop.f32.mrb[18].mxu1 }
 0x668   :  { %v3699_v55 = vmul.f32 -1.442695, %v4001_v49  ;;  %v4003_v20 = vadd.f32 %v1554_v51, %v5690_v63  ;;  %v1556_v21 = vpop.f32.mrb[19].mxu0  ;;  %v1599_v22 = vpop.f32.mrb[19].mxu1  ;;  %v3701_v12 = vmul.f32 -1.442695, %v4049_v8  ;;  %v4051_v15 = vadd.f32 %v1597_v53, %v5703_v57 }
 0x669   :  { %v3700_v24 = vmul.f32 -1.442695, %v4002_v32  ;;  %v3702_v26 = vmul.f32 -1.442695, %v4050_v41  ;;  %v4004_v27 = vadd.f32 %v1556_v21, %v5692_v0  ;;  %v4052_v28 = vadd.f32 %v1599_v22, %v5694_v1 }
 0x66a   :  { %4433 = vpow2.f32 %v3699_v55  ;;  %v3703_v29 = vmul.f32 -1.442695, %v4003_v20  ;;  %v3705_v55 = vmul.f32 -1.442695, %v4051_v15 }
 0x66b   :  { %4435 = vpow2.f32 %v3700_v24  ;;  %v3704_v52 = vmul.f32 -1.442695, %v4004_v27  ;;  %v3706_v2 = vmul.f32 -1.442695, %v4052_v28 }
 0x66c   :  { %4437 = vpow2.f32 %v3702_v26 }
 0x66d   :  { %4439 = vpow2.f32 %v3703_v29 }
 0x66e   :  { %4441 = vpow2.f32 %v3704_v52 }
 0x66f   :  { %4443 = vpow2.f32 %v3706_v2 }
 0x674   :  { %v4434_v48 = vpop.eup %4433 }
 0x675   :  { %v4436_v10 = vpop.eup %4435  ;;  %v1634_v32 = vadd.f32 1.0, %v4434_v48 }
 0x676   :  { %v4438_v11 = vpop.eup %4437  ;;  %v1635_v49 = vadd.f32 1.0, %v4436_v10 }
 0x677   :  { %v1637_v50 = vadd.f32 1.0, %v4438_v11  ;;  %v4440_v5 = vpop.eup %4439 }
 0x678   :  { %v4442_v41 = vpop.eup %4441  ;;  %v1638_v9 = vadd.f32 1.0, %v4440_v5 }
 0x679   :  { %4445 = vrcp.f32 %v1637_v50  ;;  %v4444_v51 = vpop.eup %4443  ;;  %v1639_v20 = vadd.f32 1.0, %v4442_v41 }
 0x67a   :  { %4447 = vpow2.f32 %v3701_v12  ;;  %v1641_v21 = vadd.f32 1.0, %v4444_v51 }
 0x67b   :  { %4449 = vrcp.f32 %v1635_v49 }
 0x67c   :  { %4451 = vrcp.f32 %v1634_v32 }
 0x67d   :  { %4453 = vrcp.f32 %v1641_v21 }
 0x67e   :  { %4455 = vpow2.f32 %v3705_v55 }
 0x67f   :  { %4457 = vrcp.f32 %v1639_v20 }
 0x680   :  { %4459 = vrcp.f32 %v1638_v9 }
 0x683   :  { %v4446_v22 = vpop.eup %4445 }
 0x684   :  { %v4448_v53 = vpop.eup %4447  ;;  %v1658_v24 = vmul.f32 2.0, %v4446_v22 }
 0x685   :  { %v4450_v26 = vpop.eup %4449  ;;  %v1636_v11 = vadd.f32 1.0, %v4448_v53 }
 0x686   :  { %v4452_v27 = vpop.eup %4451  ;;  %v3707_v28 = vadd.f32 -1.0, %v1658_v24  ;;  %v1662_v2 = vmul.f32 %v4450_v26, %v6001_v60 }
 0x687   :  { %v4454_v29 = vpop.eup %4453  ;;  %4461 = vrcp.f32 %v1636_v11 }
 0x688   :  { %v4456_v52 = vpop.eup %4455  ;;  %v1664_v8 = vmul.f32 %v4452_v27, %v3707_v28  ;;  %v1659_v48 = vmul.f32 2.0, %v4454_v29 }
 0x689   :  { %v4458_v10 = vpop.eup %4457  ;;  %v1640_v50 = vadd.f32 1.0, %v4456_v52 }
 0x68a   :  { %v6066_v12 = vadd.f32 %v1664_v8, %v1662_v2  ;;  %v3708_v15 = vadd.f32 -1.0, %v1659_v48  ;;  %v4460_v49 = vpop.eup %4459  ;;  %v1663_v5 = vmul.f32 %v4458_v10, %v6005_v30 }
 0x68c   :  { %v1665_v32 = vmul.f32 %v4460_v49, %v3708_v15  ;;  %4463 = vtanh.f32 %v6066_v12 }
 0x68d   :  { %4465 = vrcp.f32 %v1640_v50 }
 0x68e   :  { %v6070_v41 = vadd.f32 %v1665_v32, %v1663_v5 }
 0x690   :  { %4467 = vtanh.f32 %v6070_v41 }
 0x691   :  { %v4462_v60 = vpop.eup %4461 }
 0x696   :  { %v4464_v51 = vpop.eup %4463 }
 0x697   :  { %v4466_v55 = vpop.eup %4465  ;;  %v1670_v21 = vmul.f32 %v4464_v51, %v4462_v60 }
 0x69a   :  { %v4468_v20 = vpop.eup %4467 }
 0x69b   :  { %v1671_v9 = vmul.f32 %v4468_v20, %v4466_v55 }
 0x69d   :  { %v1672_v22 = vpack.c.bf16 %v1671_v9, %v1670_v21 }
 0x69f   :  { %1706 = vmatmul.mubr.bf16.vlgmr.msra.gmra.mrb[20].mxu0 %v1672_v22  ;;  %1749 = vmatmul.mubr.bf16.vlgmr.msra.gmra.mrb[20].mxu1 %v1672_v22 }
 0x6a0   :  { %1831 = vmatpush1.bf16.msra.mxu0 %v5826_v25  ;;  %1874 = vmatpush1.bf16.msra.mxu1 %v5832_v31 }
 0x6a1   :  { %1832 = vmatprep.subr.bf16.mxu0 %v5838_v33  ;;  %1875 = vmatprep.subr.bf16.mxu1 %v5844_v34 }
 0x6a2   :  { %1862 = vmatprep.mubr.bf16.mxu0 %v5082_v3  ;;  %1905 = vmatprep.mubr.bf16.mxu1 %v5082_v3 }
 0x6a4   :  { %1833 = vmatpush1.bf16.msra.mxu0 %v5852_v35  ;;  %1876 = vmatpush1.bf16.msra.mxu1 %v5858_v36 }
 0x6a5   :  { %1834 = vmatprep.subr.bf16.mxu0 %v5864_v37  ;;  %1877 = vmatprep.subr.bf16.mxu1 %v5870_v38 }
 0x6a8   :  { %1835 = vmatpush1.bf16.msra.mxu0 %v5876_v39  ;;  %1878 = vmatpush1.bf16.msra.mxu1 %v5882_v40 }
 0x6a9   :  { %1836 = vmatprep.subr.bf16.mxu0 %v5888_v42  ;;  %1879 = vmatprep.subr.bf16.mxu1 %v5894_v43 }
 0x6ac   :  { %1837 = vmatpush1.bf16.msra.mxu0 %v5900_v44  ;;  %1880 = vmatpush1.bf16.msra.mxu1 %v5906_v45 }
 0x6ad   :  { %1838 = vmatprep.subr.bf16.mxu0 %v5912_v46  ;;  %1881 = vmatprep.subr.bf16.mxu1 %v5918_v47 }
 0x6b0   :  { %1839 = vmatpush1.bf16.msra.mxu0 %v5924_v7  ;;  %1882 = vmatpush1.bf16.msra.mxu1 %v5930_v16 }
 0x6b1   :  { %1840 = vmatprep.subr.bf16.mxu0 %v5936_v56  ;;  %1883 = vmatprep.subr.bf16.mxu1 %v5942_v54 }
 0x6b4   :  { %1841 = vmatpush1.bf16.msra.mxu0 %v5948_v58  ;;  %1884 = vmatpush1.bf16.msra.mxu1 %v5954_v59 }
 0x6b5   :  { %1842 = vmatprep.subr.bf16.mxu0 %v5960_v13  ;;  %1885 = vmatprep.subr.bf16.mxu1 %v5966_v4 }
 0x6b8   :  { %1843 = vmatpush1.bf16.msra.mxu0 %v5972_v17  ;;  %1886 = vmatpush1.bf16.msra.mxu1 %v5978_v61 }
 0x6b9   :  { %1844 = vmatprep.subr.bf16.mxu0 %v6039_v23  ;;  %1887 = vmatprep.subr.bf16.mxu1 %v5985_v62 }
 0x6bc   :  { %1845 = vmatpush1.bf16.msra.mxu0 %v6046_v14  ;;  %1888 = vmatpush1.bf16.msra.mxu1 %v6052_v6 }
 0x6bd   :  { %1987 = vmatprep.subr.bf16.mxu0 %v5798_v18  ;;  %2030 = vmatprep.subr.bf16.mxu1 %v5804_v19 }
 0x772   :  { %v1707_v30 = vpop.f32.mrb[20].mxu0  ;;  %v1750_v53 = vpop.f32.mrb[20].mxu1 }
 0x773   :  { %v4005_v24 = vadd.f32 %v1707_v30, %v5690_v63  ;;  %v1709_v26 = vpop.f32.mrb[21].mxu0  ;;  %v1752_v27 = vpop.f32.mrb[21].mxu1  ;;  %v4053_v55 = vadd.f32 %v1750_v53, %v5703_v57 }
 0x774   :  { %v4006_v28 = vadd.f32 %v1709_v26, %v5692_v0  ;;  %v4054_v29 = vadd.f32 %v1752_v27, %v5694_v1  ;;  %v1711_v52 = vpop.f32.mrb[22].mxu0  ;;  %v1754_v2 = vpop.f32.mrb[22].mxu1 }
 0x775   :  { %v3709_v8 = vmul.f32 -1.442695, %v4005_v24  ;;  %v4007_v48 = vadd.f32 %v1711_v52, %v5690_v63  ;;  %v1713_v10 = vpop.f32.mrb[23].mxu0  ;;  %v1756_v11 = vpop.f32.mrb[23].mxu1  ;;  %v3711_v22 = vmul.f32 -1.442695, %v4053_v55  ;;  %v4055_v30 = vadd.f32 %v1754_v2, %v5703_v57 }
 0x776   :  { %v3710_v15 = vmul.f32 -1.442695, %v4006_v28  ;;  %v3712_v49 = vmul.f32 -1.442695, %v4054_v29  ;;  %v4008_v50 = vadd.f32 %v1713_v10, %v5692_v0  ;;  %v4056_v5 = vadd.f32 %v1756_v11, %v5694_v1 }
 0x777   :  { %4469 = vpow2.f32 %v3709_v8  ;;  %v3713_v32 = vmul.f32 -1.442695, %v4007_v48  ;;  %v3715_v8 = vmul.f32 -1.442695, %v4055_v30 }
 0x778   :  { %4471 = vpow2.f32 %v3710_v15  ;;  %v3714_v60 = vmul.f32 -1.442695, %v4008_v50  ;;  %v3716_v51 = vmul.f32 -1.442695, %v4056_v5 }
 0x779   :  { %4473 = vpow2.f32 %v3712_v49 }
 0x77a   :  { %4475 = vpow2.f32 %v3713_v32 }
 0x77b   :  { %4477 = vpow2.f32 %v3714_v60 }
 0x77c   :  { %4479 = vpow2.f32 %v3716_v51 }
 0x781   :  { %v4470_v20 = vpop.eup %4469 }
 0x782   :  { %v4472_v21 = vpop.eup %4471  ;;  %v1791_v28 = vadd.f32 1.0, %v4470_v20 }
 0x783   :  { %v4474_v9 = vpop.eup %4473  ;;  %v1792_v24 = vadd.f32 1.0, %v4472_v21 }
 0x784   :  { %v1794_v26 = vadd.f32 1.0, %v4474_v9  ;;  %v4476_v27 = vpop.eup %4475 }
 0x785   :  { %v4478_v29 = vpop.eup %4477  ;;  %v1795_v53 = vadd.f32 1.0, %v4476_v27 }
 0x786   :  { %4481 = vrcp.f32 %v1794_v26  ;;  %v4480_v52 = vpop.eup %4479  ;;  %v1796_v48 = vadd.f32 1.0, %v4478_v29 }
 0x787   :  { %4483 = vpow2.f32 %v3711_v22  ;;  %v1798_v10 = vadd.f32 1.0, %v4480_v52 }
 0x788   :  { %4485 = vrcp.f32 %v1792_v24 }
 0x789   :  { %4487 = vrcp.f32 %v1791_v28 }
 0x78a   :  { %4489 = vrcp.f32 %v1798_v10 }
 0x78b   :  { %4491 = vpow2.f32 %v3715_v8 }
 0x78c   :  { %4493 = vrcp.f32 %v1796_v48 }
 0x78d   :  { %4495 = vrcp.f32 %v1795_v53 }
 0x790   :  { %v4482_v11 = vpop.eup %4481 }
 0x791   :  { %v4484_v2 = vpop.eup %4483  ;;  %v1815_v15 = vmul.f32 2.0, %v4482_v11 }
 0x792   :  { %v4486_v49 = vpop.eup %4485  ;;  %v1793_v9 = vadd.f32 1.0, %v4484_v2 }
 0x793   :  { %v4488_v50 = vpop.eup %4487  ;;  %v3717_v5 = vadd.f32 -1.0, %v1815_v15  ;;  %v1819_v51 = vmul.f32 %v4486_v49, %v6066_v12 }
 0x794   :  { %v4490_v32 = vpop.eup %4489  ;;  %4497 = vrcp.f32 %v1793_v9 }
 0x795   :  { %v4492_v60 = vpop.eup %4491  ;;  %v1821_v55 = vmul.f32 %v4488_v50, %v3717_v5  ;;  %v1816_v20 = vmul.f32 2.0, %v4490_v32 }
 0x796   :  { %v4494_v21 = vpop.eup %4493  ;;  %v1797_v26 = vadd.f32 1.0, %v4492_v60 }
 0x797   :  { %v6116_v22 = vadd.f32 %v1821_v55, %v1819_v51  ;;  %v3718_v30 = vadd.f32 -1.0, %v1816_v20  ;;  %v4496_v24 = vpop.eup %4495  ;;  %v1820_v27 = vmul.f32 %v4494_v21, %v6070_v41 }
 0x799   :  { %v1822_v28 = vmul.f32 %v4496_v24, %v3718_v30  ;;  %4499 = vtanh.f32 %v6116_v22 }
 0x79a   :  { %4501 = vrcp.f32 %v1797_v26 }
 0x79b   :  { %v6120_v29 = vadd.f32 %v1822_v28, %v1820_v27 }
 0x79d   :  { %4503 = vtanh.f32 %v6120_v29 }
 0x79e   :  { %v4498_v12 = vpop.eup %4497 }
 0x7a3   :  { %v4500_v52 = vpop.eup %4499 }
 0x7a4   :  { %v4502_v8 = vpop.eup %4501  ;;  %v1827_v10 = vmul.f32 %v4500_v52, %v4498_v12 }
 0x7a7   :  { %v4504_v48 = vpop.eup %4503 }
 0x7a8   :  { %v1828_v53 = vmul.f32 %v4504_v48, %v4502_v8 }
 0x7aa   :  { %v1829_v11 = vpack.c.bf16 %v1828_v53, %v1827_v10 }
 0x7ac   :  { %1863 = vmatmul.mubr.bf16.vlgmr.msra.gmra.mrb[24].mxu0 %v1829_v11  ;;  %1906 = vmatmul.mubr.bf16.vlgmr.msra.gmra.mrb[24].mxu1 %v1829_v11 }
 0x7ad   :  { %1988 = vmatpush1.bf16.msra.mxu0 %v5826_v25  ;;  %2031 = vmatpush1.bf16.msra.mxu1 %v5832_v31 }
 0x7ae   :  { %1989 = vmatprep.subr.bf16.mxu0 %v5838_v33  ;;  %2032 = vmatprep.subr.bf16.mxu1 %v5844_v34 }
 0x7af   :  { %2019 = vmatprep.mubr.bf16.mxu0 %v5082_v3  ;;  %2062 = vmatprep.mubr.bf16.mxu1 %v5082_v3 }
 0x7b1   :  { %1990 = vmatpush1.bf16.msra.mxu0 %v5852_v35  ;;  %2033 = vmatpush1.bf16.msra.mxu1 %v5858_v36 }
 0x7b2   :  { %1991 = vmatprep.subr.bf16.mxu0 %v5864_v37  ;;  %2034 = vmatprep.subr.bf16.mxu1 %v5870_v38 }
 0x7b5   :  { %1992 = vmatpush1.bf16.msra.mxu0 %v5876_v39  ;;  %2035 = vmatpush1.bf16.msra.mxu1 %v5882_v40 }
 0x7b6   :  { %1993 = vmatprep.subr.bf16.mxu0 %v5888_v42  ;;  %2036 = vmatprep.subr.bf16.mxu1 %v5894_v43 }
 0x7b9   :  { %1994 = vmatpush1.bf16.msra.mxu0 %v5900_v44  ;;  %2037 = vmatpush1.bf16.msra.mxu1 %v5906_v45 }
 0x7ba   :  { %1995 = vmatprep.subr.bf16.mxu0 %v5912_v46  ;;  %2038 = vmatprep.subr.bf16.mxu1 %v5918_v47 }
 0x7bd   :  { %1996 = vmatpush1.bf16.msra.mxu0 %v5924_v7  ;;  %2039 = vmatpush1.bf16.msra.mxu1 %v5930_v16 }
 0x7be   :  { %1997 = vmatprep.subr.bf16.mxu0 %v5936_v56  ;;  %2040 = vmatprep.subr.bf16.mxu1 %v5942_v54 }
 0x7c1   :  { %1998 = vmatpush1.bf16.msra.mxu0 %v5948_v58  ;;  %2041 = vmatpush1.bf16.msra.mxu1 %v5954_v59 }
 0x7c2   :  { %1999 = vmatprep.subr.bf16.mxu0 %v5960_v13  ;;  %2042 = vmatprep.subr.bf16.mxu1 %v5966_v4 }
 0x7c5   :  { %2000 = vmatpush1.bf16.msra.mxu0 %v5972_v17  ;;  %2043 = vmatpush1.bf16.msra.mxu1 %v5978_v61 }
 0x7c6   :  { %2001 = vmatprep.subr.bf16.mxu0 %v6039_v23  ;;  %2044 = vmatprep.subr.bf16.mxu1 %v5985_v62 }
 0x7c9   :  { %2002 = vmatpush1.bf16.msra.mxu0 %v6046_v14  ;;  %2045 = vmatpush1.bf16.msra.mxu1 %v6052_v6 }
 0x7ca   :  { %2144 = vmatprep.subr.bf16.mxu0 %v5798_v18  ;;  %2187 = vmatprep.subr.bf16.mxu1 %v5804_v19 }
 0x87f   :  { %v1864_v41 = vpop.f32.mrb[24].mxu0  ;;  %v1907_v2 = vpop.f32.mrb[24].mxu1 }
 0x880   :  { %v4009_v15 = vadd.f32 %v1864_v41, %v5690_v63  ;;  %v1866_v49 = vpop.f32.mrb[25].mxu0  ;;  %v1909_v50 = vpop.f32.mrb[25].mxu1  ;;  %v4057_v12 = vadd.f32 %v1907_v2, %v5703_v57 }
 0x881   :  { %v4010_v5 = vadd.f32 %v1866_v49, %v5692_v0  ;;  %v4058_v32 = vadd.f32 %v1909_v50, %v5694_v1  ;;  %v1868_v60 = vpop.f32.mrb[26].mxu0  ;;  %v1911_v51 = vpop.f32.mrb[26].mxu1 }
 0x882   :  { %v3719_v55 = vmul.f32 -1.442695, %v4009_v15  ;;  %v4011_v20 = vadd.f32 %v1868_v60, %v5690_v63  ;;  %v1870_v21 = vpop.f32.mrb[27].mxu0  ;;  %v1913_v9 = vpop.f32.mrb[27].mxu1  ;;  %v3721_v10 = vmul.f32 -1.442695, %v4057_v12  ;;  %v4059_v53 = vadd.f32 %v1911_v51, %v5703_v57 }
 0x883   :  { %v3720_v18 = vmul.f32 -1.442695, %v4010_v5  ;;  %v3722_v30 = vmul.f32 -1.442695, %v4058_v32  ;;  %v4012_v19 = vadd.f32 %v1870_v21, %v5692_v0  ;;  %v4060_v24 = vadd.f32 %v1913_v9, %v5694_v1 }
 0x884   :  { %4505 = vpow2.f32 %v3719_v55  ;;  %v3723_v26 = vmul.f32 -1.442695, %v4011_v20  ;;  %v3725_v32 = vmul.f32 -1.442695, %v4059_v53 }
 0x885   :  { %4507 = vpow2.f32 %v3720_v18  ;;  %v3724_v27 = vmul.f32 -1.442695, %v4012_v19  ;;  %v3726_v28 = vmul.f32 -1.442695, %v4060_v24 }
 0x886   :  { %4509 = vpow2.f32 %v3722_v30 }
 0x887   :  { %4511 = vpow2.f32 %v3723_v26 }
 0x888   :  { %4513 = vpow2.f32 %v3724_v27 }
 0x889   :  { %4515 = vpow2.f32 %v3726_v28 }
 0x88e   :  { %v4506_v52 = vpop.eup %4505 }
 0x88f   :  { %v4508_v8 = vpop.eup %4507  ;;  %v1948_v49 = vadd.f32 1.0, %v4506_v52 }
 0x890   :  { %v4510_v48 = vpop.eup %4509  ;;  %v1949_v11 = vadd.f32 1.0, %v4508_v8 }
 0x891   :  { %v1951_v41 = vadd.f32 1.0, %v4510_v48  ;;  %v4512_v15 = vpop.eup %4511 }
 0x892   :  { %v4514_v50 = vpop.eup %4513  ;;  %v1952_v2 = vadd.f32 1.0, %v4512_v15 }
 0x893   :  { %4517 = vrcp.f32 %v1951_v41  ;;  %v4516_v5 = vpop.eup %4515  ;;  %v1953_v60 = vadd.f32 1.0, %v4514_v50 }
 0x894   :  { %4519 = vpow2.f32 %v3721_v10  ;;  %v1955_v55 = vadd.f32 1.0, %v4516_v5 }
 0x895   :  { %4521 = vrcp.f32 %v1949_v11 }
 0x896   :  { %4523 = vrcp.f32 %v1948_v49 }
 0x897   :  { %4525 = vrcp.f32 %v1955_v55 }
 0x898   :  { %4527 = vpow2.f32 %v3725_v32 }
 0x899   :  { %4529 = vrcp.f32 %v1953_v60 }
 0x89a   :  { %4531 = vrcp.f32 %v1952_v2 }
 0x89d   :  { %v4518_v20 = vpop.eup %4517 }
 0x89e   :  { %v4520_v51 = vpop.eup %4519  ;;  %v1972_v21 = vmul.f32 2.0, %v4518_v20 }
 0x89f   :  { %v4522_v9 = vpop.eup %4521  ;;  %v1950_v52 = vadd.f32 1.0, %v4520_v51 }
 0x8a0   :  { %v4524_v18 = vpop.eup %4523  ;;  %v3727_v30 = vadd.f32 -1.0, %v1972_v21  ;;  %v1976_v26 = vmul.f32 %v4522_v9, %v6116_v22 }
 0x8a1   :  { %v4526_v19 = vpop.eup %4525  ;;  %4533 = vrcp.f32 %v1950_v52 }
 0x8a2   :  { %v4528_v24 = vpop.eup %4527  ;;  %v1978_v27 = vmul.f32 %v4524_v18, %v3727_v30  ;;  %v1973_v28 = vmul.f32 2.0, %v4526_v19 }
 0x8a3   :  { %v4530_v12 = vpop.eup %4529  ;;  %v1954_v53 = vadd.f32 1.0, %v4528_v24 }
 0x8a4   :  { %v6166_v8 = vadd.f32 %v1978_v27, %v1976_v26  ;;  %v3728_v48 = vadd.f32 -1.0, %v1973_v28  ;;  %v4532_v10 = vpop.eup %4531  ;;  %v1977_v11 = vmul.f32 %v4530_v12, %v6120_v29 }
 0x8a6   :  { %v1979_v41 = vmul.f32 %v4532_v10, %v3728_v48  ;;  %4535 = vtanh.f32 %v6166_v8 }
 0x8a7   :  { %4537 = vrcp.f32 %v1954_v53 }
 0x8a8   :  { %v6170_v15 = vadd.f32 %v1979_v41, %v1977_v11 }
 0x8aa   :  { %4539 = vtanh.f32 %v6170_v15 }
 0x8ab   :  { %v4534_v22 = vpop.eup %4533 }
 0x8b0   :  { %v4536_v49 = vpop.eup %4535 }
 0x8b1   :  { %v4538_v50 = vpop.eup %4537  ;;  %v1984_v32 = vmul.f32 %v4536_v49, %v4534_v22 }
 0x8b4   :  { %v4540_v5 = vpop.eup %4539 }
 0x8b5   :  { %v1985_v60 = vmul.f32 %v4540_v5, %v4538_v50 }
 0x8b7   :  { %v1986_v55 = vpack.c.bf16 %v1985_v60, %v1984_v32 }
 0x8b9   :  { %2020 = vmatmul.mubr.bf16.vlgmr.msra.gmra.mrb[28].mxu0 %v1986_v55  ;;  %2063 = vmatmul.mubr.bf16.vlgmr.msra.gmra.mrb[28].mxu1 %v1986_v55 }
 0x8ba   :  { %2145 = vmatpush1.bf16.msra.mxu0 %v5826_v25  ;;  %2188 = vmatpush1.bf16.msra.mxu1 %v5832_v31  ;;  %v6208_v25 = vld [vmem:[%s6748_s2 + $0x4] ss:$16 sps:$4 sm:$0xff]   ;;  %v6214_v31 = vld [vmem:[%s6748_s2 + $0xc] ss:$16 sps:$4 sm:$0xff]  }
 0x8bb   :  { %2146 = vmatprep.subr.bf16.mxu0 %v5838_v33  ;;  %2189 = vmatprep.subr.bf16.mxu1 %v5844_v34 }
 0x8bc   :  { %2176 = vmatprep.mubr.bf16.mxu0 %v5082_v3  ;;  %2219 = vmatprep.mubr.bf16.mxu1 %v5082_v3 }
 0x8be   :  { %2147 = vmatpush1.bf16.msra.mxu0 %v5852_v35  ;;  %2190 = vmatpush1.bf16.msra.mxu1 %v5858_v36 }
 0x8bf   :  { %2148 = vmatprep.subr.bf16.mxu0 %v5864_v37  ;;  %2191 = vmatprep.subr.bf16.mxu1 %v5870_v38 }
 0x8c2   :  { %2149 = vmatpush1.bf16.msra.mxu0 %v5876_v39  ;;  %2192 = vmatpush1.bf16.msra.mxu1 %v5882_v40 }
 0x8c3   :  { %2150 = vmatprep.subr.bf16.mxu0 %v5888_v42  ;;  %2193 = vmatprep.subr.bf16.mxu1 %v5894_v43 }
 0x8c6   :  { %2151 = vmatpush1.bf16.msra.mxu0 %v5900_v44  ;;  %2194 = vmatpush1.bf16.msra.mxu1 %v5906_v45 }
 0x8c7   :  { %2152 = vmatprep.subr.bf16.mxu0 %v5912_v46  ;;  %2195 = vmatprep.subr.bf16.mxu1 %v5918_v47 }
 0x8ca   :  { %2153 = vmatpush1.bf16.msra.mxu0 %v5924_v7  ;;  %2196 = vmatpush1.bf16.msra.mxu1 %v5930_v16 }
 0x8cb   :  { %2154 = vmatprep.subr.bf16.mxu0 %v5936_v56  ;;  %2197 = vmatprep.subr.bf16.mxu1 %v5942_v54 }
 0x8ce   :  { %2155 = vmatpush1.bf16.msra.mxu0 %v5948_v58  ;;  %2198 = vmatpush1.bf16.msra.mxu1 %v5954_v59 }
 0x8cf   :  { %2156 = vmatprep.subr.bf16.mxu0 %v5960_v13  ;;  %2199 = vmatprep.subr.bf16.mxu1 %v5966_v4 }
 0x8d2   :  { %2157 = vmatpush1.bf16.msra.mxu0 %v5972_v17  ;;  %2200 = vmatpush1.bf16.msra.mxu1 %v5978_v61 }
 0x8d3   :  { %2158 = vmatprep.subr.bf16.mxu0 %v6039_v23  ;;  %2201 = vmatprep.subr.bf16.mxu1 %v5985_v62 }
 0x8d6   :  { %2159 = vmatpush1.bf16.msra.mxu0 %v6046_v14  ;;  %2202 = vmatpush1.bf16.msra.mxu1 %v6052_v6 }
 0x8d7   :  { %2301 = vmatprep.subr.bf16.mxu0 %v6208_v25  ;;  %2344 = vmatprep.subr.bf16.mxu1 %v6214_v31 }
 0x98c   :  { %v2021_v33 = vpop.f32.mrb[28].mxu0  ;;  %v2064_v34 = vpop.f32.mrb[28].mxu1 }
 0x98d   :  { %v4013_v35 = vadd.f32 %v2021_v33, %v5690_v63  ;;  %v2023_v36 = vpop.f32.mrb[29].mxu0  ;;  %v2066_v37 = vpop.f32.mrb[29].mxu1  ;;  %v4061_v13 = vadd.f32 %v2064_v34, %v5703_v57 }
 0x98e   :  { %v4014_v38 = vadd.f32 %v2023_v36, %v5692_v0  ;;  %v4062_v39 = vadd.f32 %v2066_v37, %v5694_v1  ;;  %v2025_v40 = vpop.f32.mrb[30].mxu0  ;;  %v2068_v42 = vpop.f32.mrb[30].mxu1 }
 0x98f   :  { %v3729_v43 = vmul.f32 -1.442695, %v4013_v35  ;;  %v4015_v44 = vadd.f32 %v2025_v40, %v5690_v63  ;;  %v2027_v45 = vpop.f32.mrb[31].mxu0  ;;  %v2070_v46 = vpop.f32.mrb[31].mxu1  ;;  %v3731_v62 = vmul.f32 -1.442695, %v4061_v13  ;;  %v4063_v29 = vadd.f32 %v2068_v42, %v5703_v57 }
 0x990   :  { %v3730_v47 = vmul.f32 -1.442695, %v4014_v38  ;;  %v3732_v7 = vmul.f32 -1.442695, %v4062_v39  ;;  %v4016_v16 = vadd.f32 %v2027_v45, %v5692_v0  ;;  %v4064_v56 = vadd.f32 %v2070_v46, %v5694_v1  ;;  %v6248_v45 = vld [vmem:[%s6748_s2 + $0x24] ss:$16 sps:$4 sm:$0xff]  }
 0x991   :  { %4541 = vpow2.f32 %v3729_v43  ;;  %v3733_v54 = vmul.f32 -1.442695, %v4015_v44  ;;  %v3735_v30 = vmul.f32 -1.442695, %v4063_v29  ;;  %v6242_v44 = vld [vmem:[%s6748_s2 + $0x8] ss:$16 sps:$4 sm:$0xff]  }
 0x992   :  { %4543 = vpow2.f32 %v3730_v47  ;;  %v3734_v58 = vmul.f32 -1.442695, %v4016_v16  ;;  %v3736_v59 = vmul.f32 -1.442695, %v4064_v56  ;;  %v6254_v46 = vld [vmem:[%s6748_s2 + $0x2c] ss:$16 sps:$4 sm:$0xff]  }
 0x993   :  { %4545 = vpow2.f32 %v3732_v7  ;;  %v6262_v47 = vld [vmem:[%s6748_s2 + $0x20] ss:$16 sps:$4 sm:$0xff]   ;;  %v6268_v7 = vld [vmem:[%s6748_s2 + $0x28] ss:$16 sps:$4 sm:$0xff]   ;;  %v6274_v16 = vld [vmem:[%s6748_s2 + $0x44] ss:$16 sps:$4 sm:$0xff]  }
 0x994   :  { %4547 = vpow2.f32 %v3733_v54  ;;  %v6280_v56 = vld [vmem:[%s6748_s2 + $0x4c] ss:$16 sps:$4 sm:$0xff]   ;;  %v6286_v54 = vld [vmem:[%s6748_s2 + $0x40] ss:$16 sps:$4 sm:$0xff]  }
 0x995   :  { %4549 = vpow2.f32 %v3734_v58  ;;  %v6292_v58 = vld [vmem:[%s6748_s2 + $0x48] ss:$16 sps:$4 sm:$0xff]   ;;  %v6304_v13 = vld [vmem:[%s6748_s2 + $0x6c] ss:$16 sps:$4 sm:$0xff]   ;;  %v6334_v29 = vld [vmem:[%s6748_s2 + $0x80] ss:$16 sps:$4 sm:$0xff]  }
 0x996   :  { %4551 = vpow2.f32 %v3736_v59  ;;  %v6298_v59 = vld [vmem:[%s6748_s2 + $0x64] ss:$16 sps:$4 sm:$0xff]  }
 0x99b   :  { %v4542_v4 = vpop.eup %4541 }
 0x99c   :  { %v4544_v17 = vpop.eup %4543  ;;  %v2105_v21 = vadd.f32 1.0, %v4542_v4  ;;  %v6310_v4 = vld [vmem:[%s6748_s2 + $0x60] ss:$16 sps:$4 sm:$0xff]  }
 0x99d   :  { %v4546_v61 = vpop.eup %4545  ;;  %v2106_v2 = vadd.f32 1.0, %v4544_v17  ;;  %v6316_v17 = vld [vmem:[%s6748_s2 + $0x68] ss:$16 sps:$4 sm:$0xff]  }
 0x99e   :  { %v2108_v20 = vadd.f32 1.0, %v4546_v61  ;;  %v4548_v51 = vpop.eup %4547  ;;  %v6322_v61 = vld [vmem:[%s6748_s2 + $0x84] ss:$16 sps:$4 sm:$0xff]  }
 0x99f   :  { %v4550_v9 = vpop.eup %4549  ;;  %v2109_v26 = vadd.f32 1.0, %v4548_v51  ;;  %v6352_v51 = vld [vmem:[%s6748_s2 + $0xac] ss:$16 sps:$4 sm:$0xff]  }
 0x9a0   :  { %4553 = vrcp.f32 %v2108_v20  ;;  %v4552_v18 = vpop.eup %4551  ;;  %v2110_v19 = vadd.f32 1.0, %v4550_v9  ;;  %v6346_v20 = vld [vmem:[%s6748_s2 + $0xa4] ss:$16 sps:$4 sm:$0xff]   ;;  %v6364_v9 = vld [vmem:[%s6748_s2 + $0xa8] ss:$16 sps:$4 sm:$0xff]  }
 0x9a1   :  { %4555 = vpow2.f32 %v3731_v62  ;;  %v2112_v24 = vadd.f32 1.0, %v4552_v18  ;;  %v6328_v62 = vld [vmem:[%s6748_s2 + $0x8c] ss:$16 sps:$4 sm:$0xff]   ;;  %v6370_v18 = vld [vmem:[%s6748_s2 + $0xc4] ss:$16 sps:$4 sm:$0xff]  }
 0x9a2   :  { %4557 = vrcp.f32 %v2106_v2  ;;  %v6340_v2 = vld [vmem:[%s6748_s2 + $0x88] ss:$16 sps:$4 sm:$0xff]  }
 0x9a3   :  { %4559 = vrcp.f32 %v2105_v21  ;;  %v6358_v21 = vld [vmem:[%s6748_s2 + $0xa0] ss:$16 sps:$4 sm:$0xff]  }
 0x9a4   :  { %4561 = vrcp.f32 %v2112_v24  ;;  %v6388_v24 = vld [vmem:[%s6748_s2 + $0xc8] ss:$16 sps:$4 sm:$0xff]  }
 0x9a5   :  { %4563 = vpow2.f32 %v3735_v30  ;;  %v6376_v30 = vld [vmem:[%s6748_s2 + $0xcc] ss:$16 sps:$4 sm:$0xff]  }
 0x9a6   :  { %4565 = vrcp.f32 %v2110_v19  ;;  %v6382_v19 = vld [vmem:[%s6748_s2 + $0xc0] ss:$16 sps:$4 sm:$0xff]  }
 0x9a7   :  { %4567 = vrcp.f32 %v2109_v26  ;;  %v6395_v26 = vld [vmem:[%s6748_s2 + $0xec] ss:$16 sps:$4 sm:$0xff]  }
 0x9aa   :  { %v4554_v27 = vpop.eup %4553 }
 0x9ab   :  { %v4556_v28 = vpop.eup %4555  ;;  %v2129_v12 = vmul.f32 2.0, %v4554_v27 }
 0x9ac   :  { %v4558_v52 = vpop.eup %4557  ;;  %v2107_v5 = vadd.f32 1.0, %v4556_v28 }
 0x9ad   :  { %v4560_v48 = vpop.eup %4559  ;;  %v3737_v10 = vadd.f32 -1.0, %v2129_v12  ;;  %v2133_v41 = vmul.f32 %v4558_v52, %v6166_v8 }
 0x9ae   :  { %v4562_v53 = vpop.eup %4561  ;;  %4569 = vrcp.f32 %v2107_v5 }
 0x9af   :  { %v4564_v11 = vpop.eup %4563  ;;  %v2135_v22 = vmul.f32 %v4560_v48, %v3737_v10  ;;  %v2130_v49 = vmul.f32 2.0, %v4562_v53 }
 0x9b0   :  { %v4566_v50 = vpop.eup %4565  ;;  %v2111_v33 = vadd.f32 1.0, %v4564_v11 }
 0x9b1   :  { %v6226_v32 = vadd.f32 %v2135_v22, %v2133_v41  ;;  %v3738_v60 = vadd.f32 -1.0, %v2130_v49  ;;  %v4568_v55 = vpop.eup %4567  ;;  %v2134_v34 = vmul.f32 %v4566_v50, %v6170_v15  ;;  %v6236_v15 = vld [vmem:[%s6748_s2] ss:$16 sps:$4 sm:$0xff]  }
 0x9b3   :  { %v2136_v35 = vmul.f32 %v4568_v55, %v3738_v60  ;;  %4571 = vtanh.f32 %v6226_v32 }
 0x9b4   :  { %4573 = vrcp.f32 %v2111_v33 }
 0x9b5   :  { %v6230_v36 = vadd.f32 %v2136_v35, %v2134_v34 }
 0x9b7   :  { %4575 = vtanh.f32 %v6230_v36 }
 0x9b8   :  { %v4570_v8 = vpop.eup %4569 }
 0x9bd   :  { %v4572_v37 = vpop.eup %4571 }
 0x9be   :  { %v4574_v38 = vpop.eup %4573  ;;  %v2141_v40 = vmul.f32 %v4572_v37, %v4570_v8 }
 0x9c1   :  { %v4576_v39 = vpop.eup %4575 }
 0x9c2   :  { %v2142_v42 = vmul.f32 %v4576_v39, %v4574_v38 }
 0x9c4   :  { %v2143_v43 = vpack.c.bf16 %v2142_v42, %v2141_v40 }
 0x9c6   :  { %2177 = vmatmul.mubr.bf16.vlgmr.msra.gmra.mrb[32].mxu0 %v2143_v43  ;;  %2220 = vmatmul.mubr.bf16.vlgmr.msra.gmra.mrb[32].mxu1 %v2143_v43 }
 0x9c7   :  { %2302 = vmatpush1.bf16.msra.mxu0 %v6236_v15  ;;  %2345 = vmatpush1.bf16.msra.mxu1 %v6242_v44 }
 0x9c8   :  { %2303 = vmatprep.subr.bf16.mxu0 %v6248_v45  ;;  %2346 = vmatprep.subr.bf16.mxu1 %v6254_v46 }
 0x9c9   :  { %2333 = vmatprep.mubr.bf16.mxu0 %v5082_v3  ;;  %2376 = vmatprep.mubr.bf16.mxu1 %v5082_v3 }
 0x9cb   :  { %2304 = vmatpush1.bf16.msra.mxu0 %v6262_v47  ;;  %2347 = vmatpush1.bf16.msra.mxu1 %v6268_v7 }
 0x9cc   :  { %2305 = vmatprep.subr.bf16.mxu0 %v6274_v16  ;;  %2348 = vmatprep.subr.bf16.mxu1 %v6280_v56 }
 0x9cf   :  { %2306 = vmatpush1.bf16.msra.mxu0 %v6286_v54  ;;  %2349 = vmatpush1.bf16.msra.mxu1 %v6292_v58 }
 0x9d0   :  { %2307 = vmatprep.subr.bf16.mxu0 %v6298_v59  ;;  %2350 = vmatprep.subr.bf16.mxu1 %v6304_v13 }
 0x9d3   :  { %2308 = vmatpush1.bf16.msra.mxu0 %v6310_v4  ;;  %2351 = vmatpush1.bf16.msra.mxu1 %v6316_v17 }
 0x9d4   :  { %2309 = vmatprep.subr.bf16.mxu0 %v6322_v61  ;;  %2352 = vmatprep.subr.bf16.mxu1 %v6328_v62 }
 0x9d7   :  { %2310 = vmatpush1.bf16.msra.mxu0 %v6334_v29  ;;  %2353 = vmatpush1.bf16.msra.mxu1 %v6340_v2 }
 0x9d8   :  { %2311 = vmatprep.subr.bf16.mxu0 %v6346_v20  ;;  %2354 = vmatprep.subr.bf16.mxu1 %v6352_v51 }
 0x9db   :  { %2312 = vmatpush1.bf16.msra.mxu0 %v6358_v21  ;;  %2355 = vmatpush1.bf16.msra.mxu1 %v6364_v9 }
 0x9dc   :  { %2313 = vmatprep.subr.bf16.mxu0 %v6370_v18  ;;  %2356 = vmatprep.subr.bf16.mxu1 %v6376_v30 }
 0x9df   :  { %2314 = vmatpush1.bf16.msra.mxu0 %v6382_v19  ;;  %2357 = vmatpush1.bf16.msra.mxu1 %v6388_v24 }
 0x9e0   :  { %2315 = vmatprep.subr.bf16.mxu0 %v6039_v23  ;;  %2358 = vmatprep.subr.bf16.mxu1 %v6395_v26 }
 0x9e3   :  { %2316 = vmatpush1.bf16.msra.mxu0 %v6046_v14  ;;  %2359 = vmatpush1.bf16.msra.mxu1 %v6052_v6 }
 0x9e4   :  { %2458 = vmatprep.subr.bf16.mxu0 %v6208_v25  ;;  %2501 = vmatprep.subr.bf16.mxu1 %v6214_v31 }
 0xa99   :  { %v2178_v27 = vpop.f32.mrb[32].mxu0  ;;  %v2221_v28 = vpop.f32.mrb[32].mxu1 }
 0xa9a   :  { %v4017_v12 = vadd.f32 %v2178_v27, %v5690_v63  ;;  %v2180_v23 = vpop.f32.mrb[33].mxu0  ;;  %v2223_v52 = vpop.f32.mrb[33].mxu1  ;;  %v4065_v35 = vadd.f32 %v2221_v28, %v5703_v57 }
 0xa9b   :  { %v4018_v48 = vadd.f32 %v2180_v23, %v5692_v0  ;;  %v4066_v10 = vadd.f32 %v2223_v52, %v5694_v1  ;;  %v2182_v53 = vpop.f32.mrb[34].mxu0  ;;  %v2225_v11 = vpop.f32.mrb[34].mxu1 }
 0xa9c   :  { %v3739_v41 = vmul.f32 -1.442695, %v4017_v12  ;;  %v4019_v14 = vadd.f32 %v2182_v53, %v5690_v63  ;;  %v2184_v6 = vpop.f32.mrb[35].mxu0  ;;  %v2227_v22 = vpop.f32.mrb[35].mxu1  ;;  %v3741_v39 = vmul.f32 -1.442695, %v4065_v35  ;;  %v4067_v40 = vadd.f32 %v2225_v11, %v5703_v57 }
 0xa9d   :  { %v3740_v49 = vmul.f32 -1.442695, %v4018_v48  ;;  %v3742_v50 = vmul.f32 -1.442695, %v4066_v10  ;;  %v4020_v5 = vadd.f32 %v2184_v6, %v5692_v0  ;;  %v4068_v60 = vadd.f32 %v2227_v22, %v5694_v1 }
 0xa9e   :  { %4577 = vpow2.f32 %v3739_v41  ;;  %v3743_v55 = vmul.f32 -1.442695, %v4019_v14  ;;  %v3745_v48 = vmul.f32 -1.442695, %v4067_v40 }
 0xa9f   :  { %4579 = vpow2.f32 %v3740_v49  ;;  %v3744_v33 = vmul.f32 -1.442695, %v4020_v5  ;;  %v3746_v34 = vmul.f32 -1.442695, %v4068_v60 }
 0xaa0   :  { %4581 = vpow2.f32 %v3742_v50 }
 0xaa1   :  { %4583 = vpow2.f32 %v3743_v55 }
 0xaa2   :  { %4585 = vpow2.f32 %v3744_v33 }
 0xaa3   :  { %4587 = vpow2.f32 %v3746_v34 }
 0xaa8   :  { %v4578_v8 = vpop.eup %4577 }
 0xaa9   :  { %v4580_v37 = vpop.eup %4579  ;;  %v2262_v12 = vadd.f32 1.0, %v4578_v8 }
 0xaaa   :  { %v4582_v38 = vpop.eup %4581  ;;  %v2263_v42 = vadd.f32 1.0, %v4580_v37 }
 0xaab   :  { %v2265_v43 = vadd.f32 1.0, %v4582_v38  ;;  %v4584_v27 = vpop.eup %4583 }
 0xaac   :  { %v4586_v23 = vpop.eup %4585  ;;  %v2266_v28 = vadd.f32 1.0, %v4584_v27 }
 0xaad   :  { %4589 = vrcp.f32 %v2265_v43  ;;  %v4588_v52 = vpop.eup %4587  ;;  %v2267_v10 = vadd.f32 1.0, %v4586_v23 }
 0xaae   :  { %4591 = vpow2.f32 %v3741_v39  ;;  %v2269_v53 = vadd.f32 1.0, %v4588_v52 }
 0xaaf   :  { %4593 = vrcp.f32 %v2263_v42 }
 0xab0   :  { %4595 = vrcp.f32 %v2262_v12 }
 0xab1   :  { %4597 = vrcp.f32 %v2269_v53  ;;  %v6462_v53 = vld [vmem:[%s6748_s2 + $0xe0] ss:$16 sps:$4 sm:$0xff]  }
 0xab2   :  { %4599 = vpow2.f32 %v3745_v48 }
 0xab3   :  { %4601 = vrcp.f32 %v2267_v10  ;;  %v6455_v10 = vld [vmem:[%s6748_s2 + $0xe4] ss:$16 sps:$4 sm:$0xff]  }
 0xab4   :  { %4603 = vrcp.f32 %v2266_v28  ;;  %v6468_v28 = vld [vmem:[%s6748_s2 + $0xe8] ss:$16 sps:$4 sm:$0xff]  }
 0xab7   :  { %v4590_v41 = vpop.eup %4589 }
 0xab8   :  { %v4592_v11 = vpop.eup %4591  ;;  %v2286_v14 = vmul.f32 2.0, %v4590_v41 }
 0xab9   :  { %v4594_v6 = vpop.eup %4593  ;;  %v2264_v35 = vadd.f32 1.0, %v4592_v11 }
 0xaba   :  { %v4596_v22 = vpop.eup %4595  ;;  %v3747_v49 = vadd.f32 -1.0, %v2286_v14  ;;  %v2290_v60 = vmul.f32 %v4594_v6, %v6226_v32 }
 0xabb   :  { %v4598_v50 = vpop.eup %4597  ;;  %4605 = vrcp.f32 %v2264_v35 }
 0xabc   :  { %v4600_v5 = vpop.eup %4599  ;;  %v2292_v55 = vmul.f32 %v4596_v22, %v3747_v49  ;;  %v2287_v33 = vmul.f32 2.0, %v4598_v50 }
 0xabd   :  { %v4602_v34 = vpop.eup %4601  ;;  %v2268_v39 = vadd.f32 1.0, %v4600_v5 }
 0xabe   :  { %v6411_v8 = vadd.f32 %v2292_v55, %v2290_v60  ;;  %v3748_v37 = vadd.f32 -1.0, %v2287_v33  ;;  %v4604_v38 = vpop.eup %4603  ;;  %v2291_v40 = vmul.f32 %v4602_v34, %v6230_v36 }
 0xac0   :  { %v2293_v42 = vmul.f32 %v4604_v38, %v3748_v37  ;;  %4607 = vtanh.f32 %v6411_v8 }
 0xac1   :  { %4609 = vrcp.f32 %v2268_v39 }
 0xac2   :  { %v6415_v43 = vadd.f32 %v2293_v42, %v2291_v40 }
 0xac4   :  { %4611 = vtanh.f32 %v6415_v43 }
 0xac5   :  { %v4606_v32 = vpop.eup %4605 }
 0xaca   :  { %v4608_v27 = vpop.eup %4607 }
 0xacb   :  { %v4610_v12 = vpop.eup %4609  ;;  %v6418_v52 = vmul.f32 %v4608_v27, %v4606_v32 }
 0xace   :  { %v4612_v23 = vpop.eup %4611 }
 0xacf   :  { %v6420_v48 = vmul.f32 %v4612_v23, %v4610_v12 }
 0xad1   :  { %v2300_v36 = vpack.c.bf16 %v6420_v48, %v6418_v52 }
 0xad3   :  { %2334 = vmatmul.mubr.bf16.vlgmr.msra.gmra.mrb[36].mxu0 %v2300_v36  ;;  %2377 = vmatmul.mubr.bf16.vlgmr.msra.gmra.mrb[36].mxu1 %v2300_v36 }
 0xad4   :  { %2459 = vmatpush1.bf16.msra.mxu0 %v6236_v15  ;;  %2502 = vmatpush1.bf16.msra.mxu1 %v6242_v44 }
 0xad5   :  { %2460 = vmatprep.subr.bf16.mxu0 %v6248_v45  ;;  %2503 = vmatprep.subr.bf16.mxu1 %v6254_v46 }
 0xad6   :  { %2490 = vmatprep.mubr.bf16.mxu0 %v5082_v3  ;;  %2533 = vmatprep.mubr.bf16.mxu1 %v5082_v3 }
 0xad8   :  { %2461 = vmatpush1.bf16.msra.mxu0 %v6262_v47  ;;  %2504 = vmatpush1.bf16.msra.mxu1 %v6268_v7 }
 0xad9   :  { %2462 = vmatprep.subr.bf16.mxu0 %v6274_v16  ;;  %2505 = vmatprep.subr.bf16.mxu1 %v6280_v56 }
 0xadc   :  { %2463 = vmatpush1.bf16.msra.mxu0 %v6286_v54  ;;  %2506 = vmatpush1.bf16.msra.mxu1 %v6292_v58 }
 0xadd   :  { %2464 = vmatprep.subr.bf16.mxu0 %v6298_v59  ;;  %2507 = vmatprep.subr.bf16.mxu1 %v6304_v13 }
 0xae0   :  { %2465 = vmatpush1.bf16.msra.mxu0 %v6310_v4  ;;  %2508 = vmatpush1.bf16.msra.mxu1 %v6316_v17 }
 0xae1   :  { %2466 = vmatprep.subr.bf16.mxu0 %v6322_v61  ;;  %2509 = vmatprep.subr.bf16.mxu1 %v6328_v62 }
 0xae4   :  { %2467 = vmatpush1.bf16.msra.mxu0 %v6334_v29  ;;  %2510 = vmatpush1.bf16.msra.mxu1 %v6340_v2 }
 0xae5   :  { %2468 = vmatprep.subr.bf16.mxu0 %v6346_v20  ;;  %2511 = vmatprep.subr.bf16.mxu1 %v6352_v51 }
 0xae8   :  { %2469 = vmatpush1.bf16.msra.mxu0 %v6358_v21  ;;  %2512 = vmatpush1.bf16.msra.mxu1 %v6364_v9 }
 0xae9   :  { %2470 = vmatprep.subr.bf16.mxu0 %v6370_v18  ;;  %2513 = vmatprep.subr.bf16.mxu1 %v6376_v30 }
 0xaec   :  { %2471 = vmatpush1.bf16.msra.mxu0 %v6382_v19  ;;  %2514 = vmatpush1.bf16.msra.mxu1 %v6388_v24 }
 0xaed   :  { %2472 = vmatprep.subr.bf16.mxu0 %v6455_v10  ;;  %2515 = vmatprep.subr.bf16.mxu1 %v6395_v26 }
 0xaf0   :  { %2473 = vmatpush1.bf16.msra.mxu0 %v6462_v53  ;;  %2516 = vmatpush1.bf16.msra.mxu1 %v6468_v28 }
 0xaf1   :  { %2615 = vmatprep.subr.bf16.mxu0 %v6208_v25  ;;  %2658 = vmatprep.subr.bf16.mxu1 %v6214_v31 }
 0xba6   :  { %v2335_v41 = vpop.f32.mrb[36].mxu0  ;;  %v2378_v11 = vpop.f32.mrb[36].mxu1 }
 0xba7   :  { %v4021_v14 = vadd.f32 %v2335_v41, %v5690_v63  ;;  %v2337_v6 = vpop.f32.mrb[37].mxu0  ;;  %v2380_v22 = vpop.f32.mrb[37].mxu1  ;;  %v4069_v32 = vadd.f32 %v2378_v11, %v5703_v57 }
 0xba8   :  { %v4022_v49 = vadd.f32 %v2337_v6, %v5692_v0  ;;  %v4070_v50 = vadd.f32 %v2380_v22, %v5694_v1  ;;  %v2339_v5 = vpop.f32.mrb[38].mxu0  ;;  %v2382_v60 = vpop.f32.mrb[38].mxu1 }
 0xba9   :  { %v3749_v55 = vmul.f32 -1.442695, %v4021_v14  ;;  %v4023_v33 = vadd.f32 %v2339_v5, %v5690_v63  ;;  %v2341_v34 = vpop.f32.mrb[39].mxu0  ;;  %v2384_v35 = vpop.f32.mrb[39].mxu1  ;;  %v3751_v36 = vmul.f32 -1.442695, %v4069_v32  ;;  %v4071_v41 = vadd.f32 %v2382_v60, %v5703_v57 }
 0xbaa   :  { %v3750_v25 = vmul.f32 -1.442695, %v4022_v49  ;;  %v3752_v37 = vmul.f32 -1.442695, %v4070_v50  ;;  %v4024_v31 = vadd.f32 %v2341_v34, %v5692_v0  ;;  %v4072_v38 = vadd.f32 %v2384_v35, %v5694_v1 }
 0xbab   :  { %4613 = vpow2.f32 %v3749_v55  ;;  %v3753_v39 = vmul.f32 -1.442695, %v4023_v33  ;;  %v3755_v55 = vmul.f32 -1.442695, %v4071_v41 }
 0xbac   :  { %4615 = vpow2.f32 %v3750_v25  ;;  %v3754_v40 = vmul.f32 -1.442695, %v4024_v31  ;;  %v3756_v42 = vmul.f32 -1.442695, %v4072_v38 }
 0xbad   :  { %4617 = vpow2.f32 %v3752_v37 }
 0xbae   :  { %4619 = vpow2.f32 %v3753_v39 }
 0xbaf   :  { %4621 = vpow2.f32 %v3754_v40 }
 0xbb0   :  { %4623 = vpow2.f32 %v3756_v42 }
 0xbb5   :  { %v4614_v27 = vpop.eup %4613 }
 0xbb6   :  { %v4616_v12 = vpop.eup %4615  ;;  %v2419_v49 = vadd.f32 1.0, %v4614_v27 }
 0xbb7   :  { %v4618_v23 = vpop.eup %4617  ;;  %v2420_v14 = vadd.f32 1.0, %v4616_v12 }
 0xbb8   :  { %v2422_v6 = vadd.f32 1.0, %v4618_v23  ;;  %v4620_v22 = vpop.eup %4619 }
 0xbb9   :  { %v4622_v50 = vpop.eup %4621  ;;  %v2423_v11 = vadd.f32 1.0, %v4620_v22 }
 0xbba   :  { %4625 = vrcp.f32 %v2422_v6  ;;  %v4624_v5 = vpop.eup %4623  ;;  %v2424_v33 = vadd.f32 1.0, %v4622_v50 }
 0xbbb   :  { %4627 = vpow2.f32 %v3751_v36  ;;  %v2426_v34 = vadd.f32 1.0, %v4624_v5 }
 0xbbc   :  { %4629 = vrcp.f32 %v2420_v14 }
 0xbbd   :  { %4631 = vrcp.f32 %v2419_v49 }
 0xbbe   :  { %4633 = vrcp.f32 %v2426_v34 }
 0xbbf   :  { %4635 = vpow2.f32 %v3755_v55 }
 0xbc0   :  { %4637 = vrcp.f32 %v2424_v33 }
 0xbc1   :  { %4639 = vrcp.f32 %v2423_v11 }
 0xbc4   :  { %v4626_v35 = vpop.eup %4625 }
 0xbc5   :  { %v4628_v60 = vpop.eup %4627  ;;  %v2443_v25 = vmul.f32 2.0, %v4626_v35 }
 0xbc6   :  { %v4630_v37 = vpop.eup %4629  ;;  %v2421_v23 = vadd.f32 1.0, %v4628_v60 }
 0xbc7   :  { %v4632_v31 = vpop.eup %4631  ;;  %v3757_v38 = vadd.f32 -1.0, %v2443_v25  ;;  %v2447_v42 = vmul.f32 %v4630_v37, %v6411_v8 }
 0xbc8   :  { %v4634_v39 = vpop.eup %4633  ;;  %4641 = vrcp.f32 %v2421_v23 }
 0xbc9   :  { %v4636_v40 = vpop.eup %4635  ;;  %v2449_v32 = vmul.f32 %v4632_v31, %v3757_v38  ;;  %v2444_v27 = vmul.f32 2.0, %v4634_v39 }
 0xbca   :  { %v4638_v12 = vpop.eup %4637  ;;  %v2425_v6 = vadd.f32 1.0, %v4636_v40 }
 0xbcb   :  { %v6482_v36 = vadd.f32 %v2449_v32, %v2447_v42  ;;  %v3758_v41 = vadd.f32 -1.0, %v2444_v27  ;;  %v4640_v14 = vpop.eup %4639  ;;  %v2448_v22 = vmul.f32 %v4638_v12, %v6415_v43 }
 0xbcd   :  { %v2450_v49 = vmul.f32 %v4640_v14, %v3758_v41  ;;  %4643 = vtanh.f32 %v6482_v36 }
 0xbce   :  { %4645 = vrcp.f32 %v2425_v6 }
 0xbcf   :  { %v6486_v50 = vadd.f32 %v2450_v49, %v2448_v22 }
 0xbd1   :  { %4647 = vtanh.f32 %v6486_v50 }
 0xbd2   :  { %v4642_v8 = vpop.eup %4641 }
 0xbd7   :  { %v4644_v5 = vpop.eup %4643 }
 0xbd8   :  { %v4646_v55 = vpop.eup %4645  ;;  %v2455_v34 = vmul.f32 %v4644_v5, %v4642_v8 }
 0xbdb   :  { %v4648_v33 = vpop.eup %4647 }
 0xbdc   :  { %v2456_v11 = vmul.f32 %v4648_v33, %v4646_v55 }
 0xbde   :  { %v2457_v35 = vpack.c.bf16 %v2456_v11, %v2455_v34 }
 0xbe0   :  { %2491 = vmatmul.mubr.bf16.vlgmr.msra.gmra.mrb[40].mxu0 %v2457_v35  ;;  %2534 = vmatmul.mubr.bf16.vlgmr.msra.gmra.mrb[40].mxu1 %v2457_v35 }
 0xbe1   :  { %2616 = vmatpush1.bf16.msra.mxu0 %v6236_v15  ;;  %2659 = vmatpush1.bf16.msra.mxu1 %v6242_v44 }
 0xbe2   :  { %2617 = vmatprep.subr.bf16.mxu0 %v6248_v45  ;;  %2660 = vmatprep.subr.bf16.mxu1 %v6254_v46 }
 0xbe3   :  { %2647 = vmatprep.mubr.bf16.mxu0 %v5082_v3  ;;  %2690 = vmatprep.mubr.bf16.mxu1 %v5082_v3 }
 0xbe5   :  { %2618 = vmatpush1.bf16.msra.mxu0 %v6262_v47  ;;  %2661 = vmatpush1.bf16.msra.mxu1 %v6268_v7 }
 0xbe6   :  { %2619 = vmatprep.subr.bf16.mxu0 %v6274_v16  ;;  %2662 = vmatprep.subr.bf16.mxu1 %v6280_v56 }
 0xbe9   :  { %2620 = vmatpush1.bf16.msra.mxu0 %v6286_v54  ;;  %2663 = vmatpush1.bf16.msra.mxu1 %v6292_v58 }
 0xbea   :  { %2621 = vmatprep.subr.bf16.mxu0 %v6298_v59  ;;  %2664 = vmatprep.subr.bf16.mxu1 %v6304_v13 }
 0xbed   :  { %2622 = vmatpush1.bf16.msra.mxu0 %v6310_v4  ;;  %2665 = vmatpush1.bf16.msra.mxu1 %v6316_v17 }
 0xbee   :  { %2623 = vmatprep.subr.bf16.mxu0 %v6322_v61  ;;  %2666 = vmatprep.subr.bf16.mxu1 %v6328_v62 }
 0xbf1   :  { %2624 = vmatpush1.bf16.msra.mxu0 %v6334_v29  ;;  %2667 = vmatpush1.bf16.msra.mxu1 %v6340_v2 }
 0xbf2   :  { %2625 = vmatprep.subr.bf16.mxu0 %v6346_v20  ;;  %2668 = vmatprep.subr.bf16.mxu1 %v6352_v51 }
 0xbf5   :  { %2626 = vmatpush1.bf16.msra.mxu0 %v6358_v21  ;;  %2669 = vmatpush1.bf16.msra.mxu1 %v6364_v9 }
 0xbf6   :  { %2627 = vmatprep.subr.bf16.mxu0 %v6370_v18  ;;  %2670 = vmatprep.subr.bf16.mxu1 %v6376_v30 }
 0xbf9   :  { %2628 = vmatpush1.bf16.msra.mxu0 %v6382_v19  ;;  %2671 = vmatpush1.bf16.msra.mxu1 %v6388_v24 }
 0xbfa   :  { %2629 = vmatprep.subr.bf16.mxu0 %v6455_v10  ;;  %2672 = vmatprep.subr.bf16.mxu1 %v6395_v26 }
 0xbfd   :  { %2630 = vmatpush1.bf16.msra.mxu0 %v6462_v53  ;;  %2673 = vmatpush1.bf16.msra.mxu1 %v6468_v28 }
 0xcb3   :  { %v2492_v3 = vpop.f32.mrb[40].mxu0  ;;  %v2535_v15 = vpop.f32.mrb[40].mxu1 }
 0xcb4   :  { %v4025_v44 = vadd.f32 %v2492_v3, %v5690_v63  ;;  %v2494_v45 = vpop.f32.mrb[41].mxu0  ;;  %v2537_v46 = vpop.f32.mrb[41].mxu1  ;;  %v4073_v51 = vadd.f32 %v2535_v15, %v5703_v57 }
 0xcb5   :  { %v4026_v47 = vadd.f32 %v2494_v45, %v5692_v0  ;;  %v4074_v7 = vadd.f32 %v2537_v46, %v5694_v1  ;;  %v2496_v16 = vpop.f32.mrb[42].mxu0  ;;  %v2539_v56 = vpop.f32.mrb[42].mxu1 }
 0xcb6   :  { %v3759_v54 = vmul.f32 -1.442695, %v4025_v44  ;;  %v4027_v58 = vadd.f32 %v2496_v16, %v5690_v63  ;;  %v2498_v59 = vpop.f32.mrb[43].mxu0  ;;  %v2541_v13 = vpop.f32.mrb[43].mxu1  ;;  %v3761_v30 = vmul.f32 -1.442695, %v4073_v51  ;;  %v4075_v19 = vadd.f32 %v2539_v56, %v5703_v57 }
 0xcb7   :  { %v3760_v4 = vmul.f32 -1.442695, %v4026_v47  ;;  %v3762_v17 = vmul.f32 -1.442695, %v4074_v7  ;;  %v4028_v61 = vadd.f32 %v2498_v59, %v5692_v0  ;;  %v4076_v62 = vadd.f32 %v2541_v13, %v5694_v1  ;;  %v4258_v16 = vld [vmem:[%s6721_s10 + $0x8] sm:$0xff]   ;;  %v4259_v56 = vld [vmem:[%s6721_s10 + $0x10] sm:$0xff]  }
 0xcb8   :  { %4649 = vpow2.f32 %v3759_v54  ;;  %v3763_v29 = vmul.f32 -1.442695, %v4027_v58  ;;  %v3765_v60 = vmul.f32 -1.442695, %v4075_v19  ;;  %v5083_v7 = vmov 0.0   ;;  %v4260_v54 = vld [vmem:[%s6721_s10 + $0x18] sm:$0xff]  }
 0xcb9   :  { %4651 = vpow2.f32 %v3760_v4  ;;  %v3764_v2 = vmul.f32 -1.442695, %v4028_v61  ;;  %v3766_v20 = vmul.f32 -1.442695, %v4076_v62  ;;  %3873 = vmatprep.subr.bf16.mxu0 %v5083_v7  ;;  %3899 = vmatprep.subr.bf16.mxu1 %v5083_v7  ;;  %v4261_v58 = vld [vmem:[%s6721_s10 + $0x20] sm:$0xff]   ;;  %v4262_v59 = vld [vmem:[%s6721_s10 + $0x28] sm:$0xff]  }
 0xcba   :  { %4653 = vpow2.f32 %v3762_v17  ;;  %v4263_v13 = vld [vmem:[%s6721_s10 + $0x30] sm:$0xff]   ;;  %v4264_v4 = vld [vmem:[%s6721_s10 + $0x38] sm:$0xff]   ;;  %v6575_v17 = vld [vmem:[#allocation2] sm:$0x3] }
 0xcbb   :  { %4655 = vpow2.f32 %v3763_v29  ;;  %3310 = vrot.lane.b32.xlu0 %v6575_v17, %s5074_s0 }
 0xcbc   :  { %4657 = vpow2.f32 %v3764_v2 }
 0xcbd   :  { %4659 = vpow2.f32 %v3766_v20 }
 0xcc2   :  { %v4650_v21 = vpop.eup %4649 }
 0xcc3   :  { %v4652_v9 = vpop.eup %4651  ;;  %v2576_v10 = vadd.f32 1.0, %v4650_v21 }
 0xcc4   :  { %v4654_v18 = vpop.eup %4653  ;;  %v2577_v24 = vadd.f32 1.0, %v4652_v9 }
 0xcc5   :  { %v2579_v26 = vadd.f32 1.0, %v4654_v18  ;;  %v4656_v43 = vpop.eup %4655 }
 0xcc6   :  { %v4658_v53 = vpop.eup %4657  ;;  %v2580_v31 = vadd.f32 1.0, %v4656_v43 }
 0xcc7   :  { %4661 = vrcp.f32 %v2579_v26  ;;  %v4660_v28 = vpop.eup %4659  ;;  %v2581_v25 = vadd.f32 1.0, %v4658_v53 }
 0xcc8   :  { %4663 = vpow2.f32 %v3761_v30  ;;  %v2583_v37 = vadd.f32 1.0, %v4660_v28 }
 0xcc9   :  { %4665 = vrcp.f32 %v2577_v24 }
 0xcca   :  { %4667 = vrcp.f32 %v2576_v10 }
 0xccb   :  { %4669 = vrcp.f32 %v2583_v37 }
 0xccc   :  { %4671 = vpow2.f32 %v3765_v60 }
 0xccd   :  { %4673 = vrcp.f32 %v2581_v25 }
 0xcce   :  { %4675 = vrcp.f32 %v2580_v31 }
 0xcd1   :  { %v4662_v38 = vpop.eup %4661 }
 0xcd2   :  { %v4664_v39 = vpop.eup %4663  ;;  %v2600_v40 = vmul.f32 2.0, %v4662_v38 }
 0xcd3   :  { %v4666_v42 = vpop.eup %4665  ;;  %v2578_v49 = vadd.f32 1.0, %v4664_v39 }
 0xcd4   :  { %v4668_v32 = vpop.eup %4667  ;;  %v3767_v27 = vadd.f32 -1.0, %v2600_v40  ;;  %v2604_v41 = vmul.f32 %v4666_v42, %v6482_v36 }
 0xcd5   :  { %v4670_v12 = vpop.eup %4669  ;;  %4677 = vrcp.f32 %v2578_v49 }
 0xcd6   :  { %v4672_v23 = vpop.eup %4671  ;;  %v2606_v14 = vmul.f32 %v4668_v32, %v3767_v27  ;;  %v2601_v6 = vmul.f32 2.0, %v4670_v12 }
 0xcd7   :  { %v4674_v22 = vpop.eup %4673  ;;  %v2582_v33 = vadd.f32 1.0, %v4672_v23 }
 0xcd8   :  { %v6530_v8 = vadd.f32 %v2606_v14, %v2604_v41  ;;  %v3768_v5 = vadd.f32 -1.0, %v2601_v6  ;;  %v4676_v55 = vpop.eup %4675  ;;  %v2605_v34 = vmul.f32 %v4674_v22, %v6486_v50  ;;  %v4257_v50 = vld [vmem:[%s6721_s10] sm:$0xff]  }
 0xcda   :  { %v2607_v11 = vmul.f32 %v4676_v55, %v3768_v5  ;;  %4679 = vtanh.f32 %v6530_v8 }
 0xcdb   :  { %4681 = vrcp.f32 %v2582_v33 }
 0xcdc   :  { %v6534_v35 = vadd.f32 %v2607_v11, %v2605_v34 }
 0xcde   :  { %4683 = vtanh.f32 %v6534_v35 }
 0xcdf   :  { %v4678_v36 = vpop.eup %4677 }
 0xce4   :  { %v4680_v3 = vpop.eup %4679 }
 0xce5   :  { %v4682_v15 = vpop.eup %4681  ;;  %v2612_v45 = vmul.f32 %v4680_v3, %v4678_v36 }
 0xce8   :  { %v4684_v44 = vpop.eup %4683 }
 0xce9   :  { %v2613_v46 = vmul.f32 %v4684_v44, %v4682_v15 }
 0xceb   :  { %v2614_v47 = vpack.c.bf16 %v2613_v46, %v2612_v45 }
 0xced   :  { %2648 = vmatmul.mubr.bf16.vlgmr.msra.gmra.mrb[44].mxu0 %v2614_v47  ;;  %2691 = vmatmul.mubr.bf16.vlgmr.msra.gmra.mrb[44].mxu1 %v2614_v47 }
 0xcee   :  { %3874 = vmatpush3.bf16.msra.mxu0 %v4257_v50  ;;  %3889 = vmatprep.mubr.msk.bf16.mxu0 %vm5084_vm2, %v5083_v7 }
 0xcef   :  { %3875 = vmatprep.subr.bf16.mxu0 %v5083_v7  ;;  %3907 = vmatprep.mubr.msk.bf16.mxu1 %vm5084_vm2, %v5083_v7 }
 0xcf2   :  { %3876 = vmatpush3.bf16.msra.mxu0 %v4258_v16 }
 0xcf3   :  { %3877 = vmatprep.subr.bf16.mxu0 %v5083_v7 }
 0xcf6   :  { %3878 = vmatpush3.bf16.msra.mxu0 %v4259_v56 }
 0xcf7   :  { %3879 = vmatprep.subr.bf16.mxu0 %v5083_v7 }
 0xcfa   :  { %3880 = vmatpush3.bf16.msra.mxu0 %v4260_v54 }
 0xcfb   :  { %3881 = vmatprep.subr.bf16.mxu0 %v5083_v7 }
 0xcfe   :  { %3882 = vmatpush3.bf16.msra.mxu0 %v4261_v58 }
 0xcff   :  { %3883 = vmatprep.subr.bf16.mxu0 %v5083_v7 }
 0xd02   :  { %3884 = vmatpush3.bf16.msra.mxu0 %v4262_v59 }
 0xd03   :  { %3885 = vmatprep.subr.bf16.mxu0 %v5083_v7 }
 0xd06   :  { %3886 = vmatpush3.bf16.msra.mxu0 %v4263_v13 }
 0xd07   :  { %3887 = vmatprep.subr.bf16.mxu0 %v5083_v7 }
 0xd0a   :  { %3888 = vmatpush3.bf16.msra.mxu0 %v4264_v4 }
 0xd0b   :  { %3893 = vmatprep.subr.bf16.mxu0 %v5083_v7 }
 0xdc0   :  { %v2649_v61 = vpop.f32.mrb[44].mxu0  ;;  %v2692_v62 = vpop.f32.mrb[44].mxu1 }
 0xdc1   :  { %v4029_v29 = vadd.f32 %v2649_v61, %v5690_v63  ;;  %v2651_v2 = vpop.f32.mrb[45].mxu0  ;;  %v2694_v20 = vpop.f32.mrb[45].mxu1  ;;  %v4077_v31 = vadd.f32 %v2692_v62, %v5703_v57 }
 0xdc2   :  { %v4030_v51 = vadd.f32 %v2651_v2, %v5692_v0  ;;  %v4078_v21 = vadd.f32 %v2694_v20, %v5694_v1  ;;  %v2653_v9 = vpop.f32.mrb[46].mxu0  ;;  %v2696_v18 = vpop.f32.mrb[46].mxu1 }
 0xdc3   :  { %v3769_v30 = vmul.f32 -1.442695, %v4029_v29  ;;  %v4031_v19 = vadd.f32 %v2653_v9, %v5690_v63  ;;  %v2655_v24 = vpop.f32.mrb[47].mxu0  ;;  %v2698_v26 = vpop.f32.mrb[47].mxu1  ;;  %v3771_v40 = vmul.f32 -1.442695, %v4077_v31  ;;  %v4079_v42 = vadd.f32 %v2696_v18, %v5703_v57 }
 0xdc4   :  { %v3770_v43 = vmul.f32 -1.442695, %v4030_v51  ;;  %v3772_v10 = vmul.f32 -1.442695, %v4078_v21  ;;  %v4032_v53 = vadd.f32 %v2655_v24, %v5692_v0  ;;  %v4080_v28 = vadd.f32 %v2698_v26, %v5694_v1  ;;  %v2892_v51 = vld [vmem:[#allocation4] sm:$0x3] }
 0xdc5   :  { %4685 = vpow2.f32 %v3769_v30  ;;  %v3773_v60 = vmul.f32 -1.442695, %v4031_v19  ;;  %v3775_v41 = vmul.f32 -1.442695, %v4079_v42  ;;  %v2905_v18 = vsel %vm377_vm0, %v2892_v51, 0  ;;  %v4267_v19 = vld [vmem:[%s6719_s8] sm:$0xff]  }
 0xdc6   :  { %4687 = vpow2.f32 %v3770_v43  ;;  %v3774_v25 = vmul.f32 -1.442695, %v4032_v53  ;;  %v3776_v37 = vmul.f32 -1.442695, %v4080_v28  ;;  %v2893_v30 = vpack.c.bf16 %v6575_v17, %v6575_v17  ;;  %3900 = vmatpush3.bf16.msra.mxu1 %v4267_v19  ;;  %v4268_v24 = vld [vmem:[%s6725_s14 + $0x10] sm:$0xff]   ;;  %v4269_v26 = vld [vmem:[%s6719_s8 + $0x8] sm:$0xff]  }
 0xdc7   :  { %4689 = vpow2.f32 %v3772_v10  ;;  %3901 = vmatprep.subr.bf16.mxu1 %v5083_v7  ;;  %v4270_v43 = vld [vmem:[%s6725_s14 + $0x18] sm:$0xff]   ;;  %v4271_v10 = vld [vmem:[%s6719_s8 + $0x10] sm:$0xff]   ;;  %v3779_v28 = vld [vmem:[#allocation7] ss:$0 sm:$0xff] }
 0xdc8   :  { %4691 = vpow2.f32 %v3773_v60  ;;  %v4272_v53 = vld [vmem:[%s6719_s8 + $0x18] sm:$0xff]   ;;  %v3788_v42 = vld [vmem:[%s6718_s7] ss:$0 sm:$0xff]  ;;  %s5085_s7 = smov 124  }
 0xdc9   :  { %4693 = vpow2.f32 %v3774_v25 }
 0xdca   :  { %4695 = vpow2.f32 %v3776_v37  ;;  %3902 = vmatpush3.bf16.msra.mxu1 %v4269_v26  ;;  %v3320_v26 = vld [vmem:[#allocation13] sm:$0x3] }
 0xdcb   :  { %3903 = vmatprep.subr.bf16.mxu1 %v5083_v7 }
 0xdce   :  { %3904 = vmatpush3.bf16.msra.mxu1 %v4271_v10  ;;  %v3333_v10 = vsel %vm377_vm0, %v3320_v26, 0 }
 0xdcf   :  { %v4686_v63 = vpop.eup %4685  ;;  %3905 = vmatprep.subr.bf16.mxu1 %v5083_v7 }
 0xdd0   :  { %v4688_v38 = vpop.eup %4687  ;;  %v2733_v27 = vadd.f32 1.0, %v4686_v63 }
 0xdd1   :  { %v4690_v39 = vpop.eup %4689  ;;  %v2734_v0 = vadd.f32 1.0, %v4688_v38 }
 0xdd2   :  { %v2736_v32 = vadd.f32 1.0, %v4690_v39  ;;  %v4692_v1 = vpop.eup %4691  ;;  %3906 = vmatpush3.bf16.msra.mxu1 %v4272_v53 }
 0xdd3   :  { %v4694_v12 = vpop.eup %4693  ;;  %v2737_v22 = vadd.f32 1.0, %v4692_v1  ;;  %3911 = vmatprep.subr.bf16.mxu1 %v5083_v7 }
 0xdd4   :  { %4697 = vrcp.f32 %v2736_v32  ;;  %v4696_v23 = vpop.eup %4695  ;;  %v2738_v14 = vadd.f32 1.0, %v4694_v12 }
 0xdd5   :  { %4699 = vpow2.f32 %v3771_v40  ;;  %v2740_v6 = vadd.f32 1.0, %v4696_v23 }
 0xdd6   :  { %4701 = vrcp.f32 %v2734_v0 }
 0xdd7   :  { %4703 = vrcp.f32 %v2733_v27 }
 0xdd8   :  { %4705 = vrcp.f32 %v2740_v6 }
 0xdd9   :  { %4707 = vpow2.f32 %v3775_v41 }
 0xdda   :  { %4709 = vrcp.f32 %v2738_v14  ;;  %v4273_v14 = vld [vmem:[#allocation9] sm:$0xff]  }
 0xddb   :  { %4711 = vrcp.f32 %v2737_v22  ;;  %v4274_v22 = vld [vmem:[#allocation9 + $0x8] sm:$0xff]  }
 0xdde   :  { %v4698_v49 = vpop.eup %4697 }
 0xddf   :  { %v4700_v57 = vpop.eup %4699  ;;  %v2757_v5 = vmul.f32 2.0, %v4698_v49  ;;  %v4275_v49 = vld [vmem:[#allocation9 + $0x10] sm:$0xff]  }
 0xde0   :  { %v4702_v55 = vpop.eup %4701  ;;  %v2735_v36 = vadd.f32 1.0, %v4700_v57  ;;  %v3311_v57 = vpop.permute.xlu0 %3310 }
 0xde1   :  { %v4704_v33 = vpop.eup %4703  ;;  %v3777_v34 = vadd.f32 -1.0, %v2757_v5  ;;  %v2761_v15 = vmul.f32 %v4702_v55, %v6530_v8  ;;  %v3313_v5 = vsub.f32 %v6575_v17, %v3311_v57  ;;  %v4276_v55 = vld [vmem:[#allocation9 + $0x18] sm:$0xff]   ;;  %v4283_v57 = vld [vmem:[%s6731_s20 + $0x10] sm:$0xff]  }
 0xde2   :  { %v4706_v11 = vpop.eup %4705  ;;  %4713 = vrcp.f32 %v2735_v36 }
 0xde3   :  { %v4708_v3 = vpop.eup %4707  ;;  %v2763_v44 = vmul.f32 %v4704_v33, %v3777_v34  ;;  %v2758_v45 = vmul.f32 2.0, %v4706_v11  ;;  %3315 = vrot.lane.b32.xlu0 %v3313_v5, %s5085_s7  ;;  %v3802_v33 = vld [vmem:[#allocation12] ss:$0 sm:$0xff]  ;;  %v4284_v5 = vld [vmem:[%s6731_s20 + $0x18] sm:$0xff]  }
 0xde4   :  { %v4710_v46 = vpop.eup %4709  ;;  %v2739_v56 = vadd.f32 1.0, %v4708_v3 }
 0xde5   :  { %v2765_v47 = vadd.f32 %v2763_v44, %v2761_v15  ;;  %v3778_v50 = vadd.f32 -1.0, %v2758_v45  ;;  %v4712_v16 = vpop.eup %4711  ;;  %v2762_v54 = vmul.f32 %v4710_v46, %v6534_v35  ;;  %v3790_v45 = vld [vmem:[#allocation6] ss:$0 sm:$0xff] }
 0xde7   :  { %4715 = vtanh.f32 %v2765_v47  ;;  %v2764_v58 = vmul.f32 %v4712_v16, %v3778_v50 }
 0xde8   :  { %4717 = vrcp.f32 %v2739_v56 }
 0xde9   :  { %v2766_v59 = vadd.f32 %v2764_v58, %v2762_v54 }
 0xdeb   :  { %4719 = vtanh.f32 %v2766_v59 }
 0xdec   :  { %v4714_v13 = vpop.eup %4713 }
 0xdf1   :  { %v4716_v4 = vpop.eup %4715 }
 0xdf2   :  { %v2769_v61 = vmul.f32 %v4716_v4, %v4714_v13  ;;  %v4718_v8 = vpop.eup %4717 }
 0xdf4   :  { %v2772_v2 = vsel %vm2771_vm3, %v6418_v52, %v2769_v61  ;;  %v4265_v52 = vld [vmem:[%s6725_s14] sm:$0xff]  }
 0xdf5   :  { %v4720_v62 = vpop.eup %4719  ;;  %v2774_v21 = vmax.f32 %v2772_v2, 0.0 }
 0xdf6   :  { %v2770_v29 = vmul.f32 %v4720_v62, %v4718_v8  ;;  %v3796_v8 = vld [vmem:[#allocation10] ss:$0 sm:$0xff] }
 0xdf8   :  { %v2773_v20 = vsel %vm2771_vm3, %v6420_v48, %v2770_v29  ;;  %v4266_v48 = vld [vmem:[%s6725_s14 + $0x8] sm:$0xff]  }
 0xdf9   :  { %v2775_v35 = vmax.f32 %v2773_v20, 0.0 }
 0xdfb   :  { %v2792_v9 = vpack.c.bf16 %v2775_v35, %v2774_v21  ;;  %v3201_v35 = vld [vmem:[%s6751_s27] sm:$0x3] }
 0xdfd   :  { %3890 = vmatmul.mubr.bf16.vlgmr.msra.gmra.mrb[48].mxu0 %v2792_v9 }
 0xdfe   :  { %3894 = vmatpush3.bf16.msra.mxu0 %v2905_v18  ;;  %3895 = vmatprep.mubr.msk.bf16.mxu0 %vm5084_vm2, %v5083_v7 }
 0xdff   :  { %3923 = vmatprep.subr.bf16.mxu0 %v5083_v7 }
 0xe05   :  { %3896 = vmatmul.mubr.msk.bf16.vlgmr.msra.gmra.mrb[52].mxu0 %vm340_vm1, %v2893_v30 }
 0xe06   :  { %3924 = vmatpush3.bf16.msra.mxu0 %v4265_v52  ;;  %3931 = vmatprep.mubr.msk.bf16.mxu0 %vm5084_vm2, %v5083_v7 }
 0xe07   :  { %3925 = vmatprep.subr.bf16.mxu0 %v5083_v7 }
 0xe0a   :  { %3926 = vmatpush3.bf16.msra.mxu0 %v4266_v48 }
 0xe0b   :  { %3927 = vmatprep.subr.bf16.mxu0 %v5083_v7 }
 0xe0e   :  { %3928 = vmatpush3.bf16.msra.mxu0 %v4268_v24 }
 0xe0f   :  { %3929 = vmatprep.subr.bf16.mxu0 %v5083_v7 }
 0xe12   :  { %3930 = vmatpush3.bf16.msra.mxu0 %v4270_v43 }
 0xe13   :  { %3941 = vmatprep.subr.bf16.mxu0 %v5083_v7 }
 0xe55   :  { %v3316_v4 = vpop.permute.xlu0 %3315 }
 0xe56   :  { %v3319_v24 = vsel %vm3318_vm5, %v3316_v4, %v6575_v17 }
 0xe57   :  { %v3321_v43 = vpack.c.bf16 %v3319_v24, %v3319_v24 }
 0xed0   :  { %v2882_v60 = vpop.f32.mrb[48].mxu0 }
 0xed1   :  { %v2883_v25 = vadd.f32 %v3779_v28, %v2882_v60  ;;  %v3891_v37 = vpop.f32.mrb[49].mxu0 }
 0xed2   :  { %v2885_v31 = vpop.f32.mrb[50].mxu0 }
 0xed3   :  { %v2886_v63 = vadd.f32 %v3779_v28, %v2885_v31  ;;  %v3892_v38 = vpop.f32.mrb[51].mxu0  ;;  %v2889_v39 = vmax.f32 %v2883_v25, 0.0 }
 0xed5   :  { %v2890_v40 = vmax.f32 %v2886_v63, 0.0 }
 0xed7   :  { %v3123_v0 = vpack.c.bf16 %v2890_v40, %v2889_v39 }
 0xed8   :  { %v2941_v32 = vpop.f32.mrb[52].mxu0 }
 0xed9   :  { %v2942_v1 = vadd.f32 %v3788_v42, %v2941_v32  ;;  %v3897_v27 = vpop.f32.mrb[53].mxu0  ;;  %3932 = vmatmul.mubr.msk.bf16.vlgmr.msra.gmra.mrb[56].mxu0 %vm2771_vm3, %v3123_v0  ;;  %v4277_v0 = vld [vmem:[#allocation16] sm:$0xff]  }
 0xeda   :  { %v2944_v12 = vpop.f32.mrb[54].mxu0  ;;  %3943 = vmatprep.mubr.msk.bf16.mxu0 %vm5084_vm2, %v5083_v7  ;;  %v3810_v27 = vld [vmem:[#allocation15] ss:$0 sm:$0xff] }
 0xedb   :  { %v2947_v23 = vmax.f32 %v2942_v1, 0.0  ;;  %v3898_v41 = vpop.f32.mrb[55].mxu0  ;;  %v4278_v1 = vld [vmem:[#allocation16 + $0x8] sm:$0xff]  }
 0xedd   :  { %v2956_v6 = vpack.c.bf16 %v2947_v23, %v2947_v23  ;;  %v4279_v23 = vld [vmem:[#allocation16 + $0x10] sm:$0xff]  }
 0xedf   :  { %3908 = vmatmul.mubr.msk.bf16.vlgmr.msra.gmra.mrb[48].mxu1 %vm2771_vm3, %v2956_v6 }
 0xee0   :  { %3912 = vmatpush3.bf16.msra.mxu1 %v4273_v14  ;;  %3919 = vmatprep.mubr.msk.bf16.mxu1 %vm5084_vm2, %v5083_v7  ;;  %v4280_v14 = vld [vmem:[#allocation16 + $0x18] sm:$0xff]  }
 0xee1   :  { %3913 = vmatprep.subr.bf16.mxu1 %v5083_v7 }
 0xee4   :  { %3914 = vmatpush3.bf16.msra.mxu1 %v4274_v22  ;;  %v4281_v22 = vld [vmem:[%s6731_s20] sm:$0xff]  }
 0xee5   :  { %3915 = vmatprep.subr.bf16.mxu1 %v5083_v7 }
 0xee8   :  { %3916 = vmatpush3.bf16.msra.mxu1 %v4275_v49  ;;  %v4282_v49 = vld [vmem:[%s6731_s20 + $0x8] sm:$0xff]  }
 0xee9   :  { %3917 = vmatprep.subr.bf16.mxu1 %v5083_v7 }
 0xeec   :  { %3918 = vmatpush3.bf16.msra.mxu1 %v4276_v55  ;;  %v4285_v55 = vld [vmem:[%s6731_s20 + $0x20] sm:$0xff]  }
 0xeed   :  { %3935 = vmatprep.subr.bf16.mxu1 %v5083_v7 }
 0xfac   :  { %v3192_v34 = vpop.f32.mrb[56].mxu0 }
 0xfad   :  { %v3933_v11 = vpop.f32.mrb[57].mxu0  ;;  %v3193_v3 = vadd.f32 %v3802_v33, %v3192_v34  ;;  %v4287_v34 = vld [vmem:[%s6731_s20 + $0x30] sm:$0xff]  }
 0xfae   :  { %v3195_v36 = vpop.f32.mrb[58].mxu0  ;;  %v4288_v11 = vld [vmem:[%s6731_s20 + $0x38] sm:$0xff]  }
 0xfaf   :  { %v3196_v15 = vadd.f32 %v3802_v33, %v3195_v36  ;;  %v3934_v44 = vpop.f32.mrb[59].mxu0  ;;  %v4286_v33 = vld [vmem:[%s6731_s20 + $0x28] sm:$0xff]  }
 0xfb1   :  { %v3200_v46 = vpack.c.bf16 %v3196_v15, %v3193_v3 }
 0xfb2   :  { %v3025_v47 = vpop.f32.mrb[48].mxu1 }
 0xfb3   :  { %v3026_v50 = vadd.f32 %v3790_v45, %v3025_v47  ;;  %v3909_v16 = vpop.f32.mrb[49].mxu1  ;;  %3262 = vrot.lane.b32.xlu0 %v3200_v46, %s5073_s3  ;;  %v3206_v13 = vsel %vm2771_vm3, %v3200_v46, 0 }
 0xfb4   :  { %v3028_v56 = vpop.f32.mrb[50].mxu1  ;;  %v3812_v16 = vld [vmem:[#allocation18] ss:$0 sm:$0xff] }
 0xfb5   :  { %v3031_v54 = vmax.f32 %v3026_v50, 0.0  ;;  %v3910_v58 = vpop.f32.mrb[51].mxu1 }
 0xfb7   :  { %v3040_v59 = vpack.c.bf16 %v3031_v54, %v3031_v54 }
 0xfb9   :  { %3920 = vmatmul.mubr.msk.bf16.vlgmr.msra.gmra.mrb[52].mxu1 %vm2771_vm3, %v3040_v59 }
 0xfba   :  { %3936 = vmatpush3.bf16.xpose.msra.mxu1 %v3206_v13  ;;  %3937 = vmatprep.mubr.msk.bf16.mxu1 %vm5084_vm2, %v5083_v7  ;;  %v3818_v13 = vld [vmem:[#allocation19] ss:$0 sm:$0xff] }
 0xfbb   :  { %3947 = vmatprep.subr.bf16.mxu1 %v5083_v7 }
0x1025   :  { %v3263_v61 = vpop.permute.xlu0 %3262 }
0x1026   :  { %3942 = vmatpush3.bf16.msra.mxu0 %v3263_v61 }
0x1027   :  { %3953 = vmatprep.subr.bf16.mxu0 %v5083_v7 }
0x108c   :  { %v3109_v62 = vpop.f32.mrb[52].mxu1 }
0x108d   :  { %v3110_v29 = vadd.f32 %v3796_v8, %v3109_v62  ;;  %v3921_v2 = vpop.f32.mrb[53].mxu1 }
0x108e   :  { %v3112_v20 = vpop.f32.mrb[54].mxu1 }
0x108f   :  { %v3199_v51 = vpack.c.bf16 %v3110_v29, %v3110_v29  ;;  %v3922_v21 = vpop.f32.mrb[55].mxu1 }
0x1091   :  { %3938 = vmatmul.mubr.msk.bf16.vlgmr.msra.gmra.mrb[56].mxu1 %vm2771_vm3, %v3199_v51 }
0x1092   :  { %3949 = vmatprep.mubr.msk.bf16.mxu1 %vm5084_vm2, %v5083_v7  ;;  %3948 = vmatpush3.bf16.msra.mxu1 %v3333_v10 }
0x1093   :  { %3965 = vmatprep.subr.bf16.mxu1 %v5083_v7 }
0x1099   :  { %3950 = vmatmul.mubr.msk.bf16.vlgmr.msra.gmra.mrb[60].mxu1 %vm340_vm1, %v3321_v43 }
0x109a   :  { %3981 = vmatprep.mubr.msk.bf16.mxu1 %vm5084_vm2, %v5083_v7  ;;  %3966 = vmatpush3.bf16.msra.mxu1 %v4281_v22 }
0x109b   :  { %3967 = vmatprep.subr.bf16.mxu1 %v5083_v7 }
0x109e   :  { %3968 = vmatpush3.bf16.msra.mxu1 %v4282_v49 }
0x109f   :  { %3969 = vmatprep.subr.bf16.mxu1 %v5083_v7 }
0x10a2   :  { %3970 = vmatpush3.bf16.msra.mxu1 %v4283_v57 }
0x10a3   :  { %3971 = vmatprep.subr.bf16.mxu1 %v5083_v7 }
0x10a6   :  { %3972 = vmatpush3.bf16.msra.mxu1 %v4284_v5 }
0x10a7   :  { %3973 = vmatprep.subr.bf16.mxu1 %v5083_v7 }
0x10aa   :  { %3974 = vmatpush3.bf16.msra.mxu1 %v4285_v55 }
0x10ab   :  { %3975 = vmatprep.subr.bf16.mxu1 %v5083_v7 }
0x10ae   :  { %3976 = vmatpush3.bf16.msra.mxu1 %v4286_v33 }
0x10af   :  { %3977 = vmatprep.subr.bf16.mxu1 %v5083_v7 }
0x10b2   :  { %3978 = vmatpush3.bf16.msra.mxu1 %v4287_v34 }
0x10b3   :  { %3979 = vmatprep.subr.bf16.mxu1 %v5083_v7 }
0x10b6   :  { %3980 = vmatpush3.bf16.msra.mxu1 %v4288_v11 }
0x1164   :  { %v3242_v9 = vpop.f32.mrb[56].mxu1 }
0x1165   :  { %v3243_v18 = vadd.f32 %v3242_v9, %v3201_v35  ;;  %v3939_v30 = vpop.f32.mrb[57].mxu1 }
0x1166   :  { %v3245_v52 = vpop.f32.mrb[58].mxu1 }
0x1167   :  { %v3940_v48 = vpop.f32.mrb[59].mxu1  ;;  %v3249_v19 = vsel %vm3248_vm4, %v3243_v18, -inf }
0x1168   :  { %3250 = vmax.xlane.f32.xlu1 %v3249_v19 }
0x116c   :  { %v3369_v17 = vpop.f32.mrb[60].mxu1 }
0x116d   :  { %v3951_v31 = vpop.f32.mrb[61].mxu1  ;;  %v3370_v12 = vadd.f32 %v3810_v27, %v3369_v17 }
0x116e   :  { %v3372_v63 = vpop.f32.mrb[62].mxu1 }
0x116f   :  { %v3952_v38 = vpop.f32.mrb[63].mxu1  ;;  %v3375_v41 = vmax.f32 %v3370_v12, 0.0 }
0x1171   :  { %v3384_v6 = vpack.c.bf16 %v3375_v41, %v3375_v41 }
0x11f5   :  { %v3251_v53 = vpop.xlane.xlu1 %3250 }
0x11f6   :  { %v3252_v28 = vsub.f32 %v3243_v18, %v3251_v53 }
0x11f8   :  { %v3253_v60 = vmul.f32 1.442695, %v3252_v28 }
0x11fa   :  { %4721 = vpow2.f32 %v3253_v60 }
0x1204   :  { %v4722_v25 = vpop.eup %4721 }
0x1205   :  { %v3255_v37 = vsel %vm3248_vm4, %v4722_v25, 0.0 }
0x1206   :  { %3256 = vadd.xlane.f32.xlu1 %v3255_v37 }
0x1293   :  { %v3257_v39 = vpop.xlane.xlu1 %3256 }
0x1294   :  { %4723 = vrcp.f32 %v3257_v39 }
0x129e   :  { %v4724_v40 = vpop.eup %4723 }
0x129f   :  { %v3259_v42 = vmul.f32 %v4724_v40, %v4722_v25 }
0x12a1   :  { %v3260_v32 = vpack.c.bf16 %v3259_v42, %v3259_v42 }
0x12a3   :  { %3944 = vmatmul.mubr.msk.bf16.vlgmr.msra.gmra.mrb[60].mxu0 %vm3265_vm6, %v3260_v32 }
0x12a4   :  { %3954 = vmatpush3.bf16.msra.mxu0 %v4277_v0  ;;  %3961 = vmatprep.mubr.msk.bf16.mxu0 %vm5084_vm2, %v5083_v7 }
0x12a5   :  { %3955 = vmatprep.subr.bf16.mxu0 %v5083_v7 }
0x12a8   :  { %3956 = vmatpush3.bf16.msra.mxu0 %v4278_v1 }
0x12a9   :  { %3957 = vmatprep.subr.bf16.mxu0 %v5083_v7 }
0x12ac   :  { %3958 = vmatpush3.bf16.msra.mxu0 %v4279_v23 }
0x12ad   :  { %3959 = vmatprep.subr.bf16.mxu0 %v5083_v7 }
0x12b0   :  { %3960 = vmatpush3.bf16.msra.mxu0 %v4280_v14 }
0x12b3   :  { %3962 = vmatmul.mubr.msk.bf16.vlgmr.msra.gmra.mrb[64].mxu0 %vm2771_vm3, %v3384_v6 }
0x1376   :  { %v3303_v36 = vpop.f32.mrb[60].mxu0 }
0x1377   :  { %3461 = vrot.lane.b32.xlu1 %v3303_v36, %s5073_s3  ;;  %v3945_v3 = vpop.f32.mrb[61].mxu0 }
0x1378   :  { %v3306_v15 = vpop.f32.mrb[62].mxu0 }
0x1379   :  { %v3946_v44 = vpop.f32.mrb[63].mxu0 }
0x1386   :  { %v3453_v45 = vpop.f32.mrb[64].mxu0 }
0x1387   :  { %v3963_v46 = vpop.f32.mrb[65].mxu0  ;;  %v3454_v56 = vadd.f32 %v3812_v16, %v3453_v45 }
0x1388   :  { %v3456_v47 = vpop.f32.mrb[66].mxu0 }
0x1389   :  { %v3964_v50 = vpop.f32.mrb[67].mxu0  ;;  %v3459_v54 = vmax.f32 %v3454_v56, 0.0 }
0x13e9   :  { %v3462_v58 = vpop.permute.xlu1 %3461 }
0x13ea   :  { %v3464_v7 = vsel %vm2771_vm3, %v3459_v54, %v3462_v58 }
0x13eb   :  { %v3481_v59 = vpack.c.bf16 %v3464_v7, %v3464_v7 }
0x13ed   :  { %3982 = vmatmul.mubr.bf16.vlgmr.msra.gmra.mrb[64].mxu1 %v3481_v59 }
0x14c0   :  { %v3571_v4 = vpop.f32.mrb[64].mxu1 }
0x14c1   :  { %v3572_v61 = vadd.f32 %v3818_v13, %v3571_v4  ;;  %v3983_v8 = vpop.f32.mrb[65].mxu1 }
0x14c2   :  { %v3574_v62 = vpop.f32.mrb[66].mxu1 }
0x14c3   :  { %3577 = vst [vmem:[%s6733_s22] sm:$0x3] %v3572_v61  ;;  %v3984_v29 = vpop.f32.mrb[67].mxu1 }
0x14c4   :  { %3582 = vsyncpa [#allocation3], 1 }
0x14c5   :  { %3583 = vsyncpa [#allocation5], 1 }
0x14c6   :  { %3584 = vsyncpa [#allocation8], 1 }
0x14c7   :  { %3585 = vsyncpa [#allocation11], 1 }
0x14c8   :  { %3586 = vsyncpa [#allocation14], 1 }
0x14c9   :  { %3587 = vsyncpa [#allocation17], 1 }
0x14ca   :  { %3588 = vsyncpa [#allocation20], 1 }

</bundles_post_ra>
